<compile_context>
chip_gen: v7x
topology: tpu7x:2x2x1
jax: 0.10.0
libtpu: 0.0.40
codegen_flags: <defaults>
</compile_context>

<pallas_src>
import math
from functools import partial

import jax
import jax.numpy as jnp
from jax import lax
from jax.experimental import pallas as pl
from jax.experimental.pallas import tpu as pltpu


# ----------------------------- tiling / VMEM helpers -------------------------
def _pick_tile(dim, target, align):
    """Largest multiple of `align` that divides `dim` and is <= `target`,
    otherwise the full dim (full-extent blocks are always legal)."""
    if dim <= target:
        return dim
    t = (target // align) * align
    while t >= align:
        if dim % t == 0:
            return t
        t -= align
    return dim


def _compiler_params(dims, pipelined_block_bytes, scratch_bytes=0):
    """dimension_semantics + an explicit scoped-VMEM limit sized to the actual
    double-buffered block footprint.  Raises the 16 MiB (v5e) / 32 MiB
    (v6e/v7x) scoped defaults when needed and errors out instead of silently
    picking blocks that cannot fit (e.g. _pick_tile falling back to a huge
    full-extent block)."""
    need = 2 * pipelined_block_bytes + scratch_bytes + (2 << 20)
    if need > (96 << 20):
        raise ValueError(
            f"Pallas block footprint ~{need >> 20} MiB exceeds the VMEM budget; "
            "shrink the tile sizes.")
    limit = int(min(max(need, 32 << 20), 96 << 20))
    return pltpu.CompilerParams(dimension_semantics=dims,
                                vmem_limit_bytes=limit)


# ------------------------- exact (erf) GELU helpers --------------------------
def _erf_f32(x):
    # Rational approximation XLA uses for f32 erf (|x| clamped to 4), so the
    # in-kernel GELU matches torch/XLA's exact-erf GELU to f32 accuracy.
    a = (0.00022905065861350646, 0.0034082910107109506, 0.050955695062380861,
         0.18520832239976145, 1.128379143519084)
    b = (-1.1791602954361697e-7, 0.000023547966471313185, 0.0010179625278914885,
         0.014070470171167667, 0.11098505178285362, 0.49746925110067538, 1.0)
    x = jnp.clip(x, -4.0, 4.0)
    x2 = x * x
    num = a[0]
    for c in a[1:]:
        num = num * x2 + c
    den = b[0]
    for c in b[1:]:
        den = den * x2 + c
    return x * num / den


def _gelu_exact(x):
    return 0.5 * x * (1.0 + _erf_f32(x * (1.0 / math.sqrt(2.0))))


# --------------------- tiled matmul (+bias, optional GELU) -------------------
def _mm_bias_kernel(x_ref, w_ref, b_ref, o_ref, acc_ref, *, act):
    @pl.when(pl.program_id(2) == 0)
    def _():
        acc_ref[...] = jnp.zeros_like(acc_ref)

    # bf16 MXU operands, f32 accumulation (astype is a no-op if already bf16).
    acc_ref[...] += jnp.dot(x_ref[...].astype(jnp.bfloat16), w_ref[...],
                            preferred_element_type=jnp.float32)

    @pl.when(pl.program_id(2) == pl.num_programs(2) - 1)
    def _():
        y = acc_ref[...] + b_ref[...]
        if act == "gelu":
            y = _gelu_exact(y)
        o_ref[...] = y.astype(o_ref.dtype)


def matmul_bias(x, w, b, act="none", out_dtype=jnp.bfloat16,
                tm=256, tn=512, tk=512):
    """Tiled x[M,K] @ w[K,N] + b[1,N] (optionally fused GELU).  Weights stream
    bf16; bias-add / GELU in f32; output dtype selectable (bf16 when it only
    feeds another matmul)."""
    M, K = x.shape
    N = w.shape[1]
    w = w.astype(jnp.bfloat16)
    tm = _pick_tile(M, tm, 16)          # 16-row sublane tiles for bf16 operands
    tn = _pick_tile(N, tn, 128)
    tk = _pick_tile(K, tk, 128)
    grid = (M // tm, N // tn, K // tk)
    x_isz = x.dtype.itemsize
    out_isz = jnp.dtype(out_dtype).itemsize
    pipelined = tm * tk * x_isz + tk * tn * 2 + tn * 4 + tm * tn * out_isz
    return pl.pallas_call(
        partial(_mm_bias_kernel, act=act),
        out_shape=jax.ShapeDtypeStruct((M, N), out_dtype),
        grid_spec=pltpu.PrefetchScalarGridSpec(
            num_scalar_prefetch=0,
            grid=grid,
            in_specs=[
                pl.BlockSpec((tm, tk), lambda i, j, k: (i, k)),
                pl.BlockSpec((tk, tn), lambda i, j, k: (k, j)),
                pl.BlockSpec((1, tn), lambda i, j, k: (0, j)),
            ],
            out_specs=pl.BlockSpec((tm, tn), lambda i, j, k: (i, j)),
            scratch_shapes=[pltpu.VMEM((tm, tn), jnp.float32)],
        ),
        compiler_params=_compiler_params(
            ("parallel", "parallel", "arbitrary"), pipelined, tm * tn * 4),
        cost_estimate=pl.CostEstimate(
            flops=2 * M * N * K,
            transcendentals=(M * N if act == "gelu" else 0),
            bytes_accessed=M * K * x_isz + K * N * 2 + N * 4 + M * N * out_isz),
    )(x, w, b)


# --------------- tiled matmul + bias + residual + LayerNorm ------------------
def _mm_bias_resid_ln_kernel(x_ref, w_ref, b_ref, r_ref, g_ref, bt_ref,
                             o_ref, acc_ref):
    @pl.when(pl.program_id(1) == 0)
    def _():
        acc_ref[...] = jnp.zeros_like(acc_ref)

    acc_ref[...] += jnp.dot(x_ref[...].astype(jnp.bfloat16), w_ref[...],
                            preferred_element_type=jnp.float32)

    @pl.when(pl.program_id(1) == pl.num_programs(1) - 1)
    def _():
        y = acc_ref[...] + b_ref[...] + r_ref[...]
        mean = jnp.mean(y, axis=-1, keepdims=True)
        var = jnp.mean(jnp.square(y - mean), axis=-1, keepdims=True)
        o_ref[...] = ((y - mean) * lax.rsqrt(var + 1e-5)
                      * g_ref[...] + bt_ref[...]).astype(o_ref.dtype)


def matmul_bias_resid_ln(x, w, b, resid, gamma, beta, tm=128, tk=256):
    """LayerNorm(resid + (x @ w + b)); output width D is kept whole because the
    LN reduction needs the full row; M and K are tiled with v7x-friendly
    defaults (W tile halved vs. the plain matmul)."""
    M, K = x.shape
    D = w.shape[1]
    w = w.astype(jnp.bfloat16)
    tm = _pick_tile(M, tm, 16)
    tk = _pick_tile(K, tk, 128)
    grid = (M // tm, K // tk)
    x_isz = x.dtype.itemsize
    pipelined = (tm * tk * x_isz + tk * D * 2 + D * 4        # x, w, b
                 + tm * D * 4 + 2 * D * 4                    # resid, gamma, beta
                 + tm * D * 4)                                # out (f32 residual stream)
    return pl.pallas_call(
        _mm_bias_resid_ln_kernel,
        out_shape=jax.ShapeDtypeStruct((M, D), jnp.float32),
        grid_spec=pltpu.PrefetchScalarGridSpec(
            num_scalar_prefetch=0,
            grid=grid,
            in_specs=[
                pl.BlockSpec((tm, tk), lambda i, k: (i, k)),
                pl.BlockSpec((tk, D), lambda i, k: (k, 0)),
                pl.BlockSpec((1, D), lambda i, k: (0, 0)),
                pl.BlockSpec((tm, D), lambda i, k: (i, 0)),
                pl.BlockSpec((1, D), lambda i, k: (0, 0)),
                pl.BlockSpec((1, D), lambda i, k: (0, 0)),
            ],
            out_specs=pl.BlockSpec((tm, D), lambda i, k: (i, 0)),
            scratch_shapes=[pltpu.VMEM((tm, D), jnp.float32)],
        ),
        compiler_params=_compiler_params(
            ("parallel", "arbitrary"), pipelined, tm * D * 4),
        cost_estimate=pl.CostEstimate(
            flops=2 * M * D * K + 10 * M * D,
            transcendentals=M,                                # rsqrt per row
            bytes_accessed=M * K * x_isz + K * D * 2 + 2 * M * D * 4 + 4 * D * 4),
    )(x, w, b, resid, gamma, beta)


# --------------------- tied logits: x @ emb^T (no transpose) -----------------
def _tied_logits_kernel(x_ref, e_ref, o_ref, acc_ref):
    @pl.when(pl.program_id(2) == 0)
    def _():
        acc_ref[...] = jnp.zeros_like(acc_ref)

    # Contract x dim 1 against emb dim 1: same rhs-contracted-on-last-dim
    # pattern the standard flash kernel uses, so the MXU consumes the
    # untransposed weight without an XLU transpose per K-step.
    acc_ref[...] += lax.dot_general(
        x_ref[...].astype(jnp.bfloat16), e_ref[...],
        dimension_numbers=(((1,), (1,)), ((), ())),
        preferred_element_type=jnp.float32)

    @pl.when(pl.program_id(2) == pl.num_programs(2) - 1)
    def _():
        o_ref[...] = acc_ref[...]


def tied_logits(x, emb, tm=256, tn=512, tk=512):
    """x[M,D] @ emb[V,D]^T -> [M,V] f32, vocab tiled lane-dense, no bias."""
    M, D = x.shape
    V = emb.shape[0]
    emb = emb.astype(jnp.bfloat16)
    tm = _pick_tile(M, tm, 16)
    tn = _pick_tile(V, tn, 128)
    tk = _pick_tile(D, tk, 128)
    grid = (M // tm, V // tn, D // tk)
    x_isz = x.dtype.itemsize
    pipelined = tm * tk * x_isz + tn * tk * 2 + tm * tn * 4
    return pl.pallas_call(
        _tied_logits_kernel,
        out_shape=jax.ShapeDtypeStruct((M, V), jnp.float32),
        grid_spec=pltpu.PrefetchScalarGridSpec(
            num_scalar_prefetch=0,
            grid=grid,
            in_specs=[
                pl.BlockSpec((tm, tk), lambda i, j, k: (i, k)),
                pl.BlockSpec((tn, tk), lambda i, j, k: (j, k)),
            ],
            out_specs=pl.BlockSpec((tm, tn), lambda i, j, k: (i, j)),
            scratch_shapes=[pltpu.VMEM((tm, tn), jnp.float32)],
        ),
        compiler_params=_compiler_params(
            ("parallel", "parallel", "arbitrary"), pipelined, tm * tn * 4),
        cost_estimate=pl.CostEstimate(
            flops=2 * M * V * D, transcendentals=0,
            bytes_accessed=M * D * x_isz + V * D * 2 + M * V * 4),
    )(x, emb)


# ----------------------------- standalone LayerNorm --------------------------
def _ln_kernel(x_ref, g_ref, b_ref, o_ref):
    y = x_ref[...]
    mean = jnp.mean(y, axis=-1, keepdims=True)
    var = jnp.mean(jnp.square(y - mean), axis=-1, keepdims=True)
    o_ref[...] = ((y - mean) * lax.rsqrt(var + 1e-5)
                  * g_ref[...] + b_ref[...]).astype(o_ref.dtype)


def layernorm(x, gamma, beta, out_dtype=jnp.bfloat16, tm=512):
    M, D = x.shape
    tm = _pick_tile(M, tm, 8)
    out_isz = jnp.dtype(out_dtype).itemsize
    pipelined = tm * D * 4 + 2 * D * 4 + tm * D * out_isz
    return pl.pallas_call(
        _ln_kernel,
        out_shape=jax.ShapeDtypeStruct((M, D), out_dtype),
        grid=(M // tm,),
        in_specs=[
            pl.BlockSpec((tm, D), lambda i: (i, 0)),
            pl.BlockSpec((1, D), lambda i: (0, 0)),
            pl.BlockSpec((1, D), lambda i: (0, 0)),
        ],
        out_specs=pl.BlockSpec((tm, D), lambda i: (i, 0)),
        compiler_params=_compiler_params(("parallel",), pipelined),
        cost_estimate=pl.CostEstimate(
            flops=8 * M * D, transcendentals=M,
            bytes_accessed=M * D * (4 + out_isz) + 2 * D * 4),
    )(x, gamma, beta)


# ------------------------ flash-style multi-head attention -------------------
def _flash_mha_kernel(q_ref, k_ref, v_ref, o_ref, m_ref, l_ref, acc_ref):
    ki = pl.program_id(2)

    @pl.when(ki == 0)
    def _():
        m_ref[...] = jnp.full_like(m_ref, -jnp.inf)
        l_ref[...] = jnp.zeros_like(l_ref)
        acc_ref[...] = jnp.zeros_like(acc_ref)

    # (tq, dh) x (tk, dh) contracted on dh -> (tq, tk) f32 scores (q already
    # carries the 1/sqrt(dh) scale, folded into the in_proj Q columns).
    s = lax.dot_general(q_ref[0], k_ref[0],
                        dimension_numbers=(((1,), (1,)), ((), ())),
                        preferred_element_type=jnp.float32)

    m_prev = m_ref[...]
    m_new = jnp.maximum(m_prev, jnp.max(s, axis=-1, keepdims=True))
    alpha = jnp.exp(m_prev - m_new)
    p = jnp.exp(s - m_new)
    l_ref[...] = alpha * l_ref[...] + jnp.sum(p, axis=-1, keepdims=True)
    acc_ref[...] = alpha * acc_ref[...] + jnp.dot(
        p.astype(jnp.bfloat16), v_ref[0], preferred_element_type=jnp.float32)
    m_ref[...] = m_new

    @pl.when(ki == pl.num_programs(2) - 1)
    def _():
        # approx reciprocal runs on the EUP slot; deliberate numerics tradeoff
        # (set approx=False if bit-closeness to the exact softmax matters).
        inv_l = pl.reciprocal(l_ref[...], approx=True)
        o_ref[0] = (acc_ref[...] * inv_l).astype(o_ref.dtype)


def flash_mha(q, k, v, tq=128, tk=256):
    """q, k, v: head-major [B*H, T, dh] bf16.  Online-softmax flash attention:
    grid = (B*H, Tq, Tk) with KV innermost/"arbitrary" so VMEM stays
    O(tq*dh + tk*dh + tq*tk) and B*H*Tq tiles feed megacore."""
    BH, T, dh = q.shape
    tq = _pick_tile(T, tq, 16)
    tk = _pick_tile(T, tk, 16)
    grid = (BH, T // tq, T // tk)
    pipelined = tq * dh * 2 + 2 * (tk * dh * 2) + tq * dh * 2
    scratch = tq * dh * 4 + 2 * tq * 4
    return pl.pallas_call(
        _flash_mha_kernel,
        out_shape=jax.ShapeDtypeStruct((BH, T, dh), jnp.bfloat16),
        grid_spec=pltpu.PrefetchScalarGridSpec(
            num_scalar_prefetch=0,
            grid=grid,
            in_specs=[
                pl.BlockSpec((1, tq, dh), lambda b, qi, ki: (b, qi, 0)),
                pl.BlockSpec((1, tk, dh), lambda b, qi, ki: (b, ki, 0)),
                pl.BlockSpec((1, tk, dh), lambda b, qi, ki: (b, ki, 0)),
            ],
            out_specs=pl.BlockSpec((1, tq, dh), lambda b, qi, ki: (b, qi, 0)),
            scratch_shapes=[pltpu.VMEM((tq, 1), jnp.float32),
                            pltpu.VMEM((tq, 1), jnp.float32),
                            pltpu.VMEM((tq, dh), jnp.float32)],
        ),
        compiler_params=_compiler_params(
            ("parallel", "parallel", "arbitrary"), pipelined, scratch),
        cost_estimate=pl.CostEstimate(
            flops=4 * BH * T * T * dh,
            transcendentals=BH * T * (T + 1),
            bytes_accessed=2 * 4 * BH * T * dh),
    )(q, k, v)


# ------------------------------ model assembly -------------------------------
def encoder_layer(x, p, n_heads):
    """nn.TransformerEncoderLayer(norm_first=False, activation='gelu'), eval."""
    B, T, D = x.shape
    H = n_heads
    dh = D // H
    xf = x.reshape(B * T, D)                                  # f32 residual stream

    # --- self-attention block (residual + LN fused into out_proj epilogue) ---
    # Fold 1/sqrt(dh) into the Q columns of in_proj (weight + bias), so no
    # score-matrix scaling is needed inside the attention kernel.
    qscale = jnp.concatenate([jnp.full((1, D), 1.0 / math.sqrt(dh), jnp.float32),
                              jnp.ones((1, 2 * D), jnp.float32)], axis=1)
    qkv = matmul_bias(xf, p["in_proj_w"] * qscale, p["in_proj_b"] * qscale,
                      out_dtype=jnp.bfloat16)                 # [B*T, 3D] bf16
    # Head-major, lane-dense per-head tiles: [B*H, T, dh].
    # TODO(synk): emit head-major layout directly from the in_proj out_spec to
    # avoid this one-pass XLA transpose of the (small) QKV activation.
    qkv5 = qkv.reshape(B, T, 3, H, dh).transpose(2, 0, 3, 1, 4)   # [3,B,H,T,dh]
    q = qkv5[0].reshape(B * H, T, dh)
    k = qkv5[1].reshape(B * H, T, dh)
    v = qkv5[2].reshape(B * H, T, dh)
    attn = flash_mha(q, k, v)                                 # [B*H, T, dh] bf16
    attn = attn.reshape(B, H, T, dh).transpose(0, 2, 1, 3).reshape(B * T, D)
    x1 = matmul_bias_resid_ln(attn, p["out_proj_w"], p["out_proj_b"],
                              xf, p["ln1_g"], p["ln1_b"])     # [B*T, D] f32

    # --- feed-forward block (residual + LN fused into lin2 epilogue) ---
    h = matmul_bias(x1, p["lin1_w"], p["lin1_b"], act="gelu",
                    out_dtype=jnp.bfloat16)                   # [B*T, 4D] bf16
    x2 = matmul_bias_resid_ln(h, p["lin2_w"], p["lin2_b"],
                              x1, p["ln2_g"], p["ln2_b"])     # [B*T, D] f32
    return x2.reshape(B, T, D)


def transformer_forward(params, tokens, n_heads):
    B, T = tokens.shape
    emb = params["token_emb"]                 # [V, D] f32
    x = emb[tokens]                           # TODO(synk): embedding gather left to XLA
    x = x + params["pos_emb"][:, :T, :]
    # dropout: identity (eval-mode semantics)
    for p in params["blocks"]:
        x = encoder_layer(x, p, n_heads)
    D = x.shape[-1]
    xf = layernorm(x.reshape(B * T, D), params["norm_g"], params["norm_b"],
                   out_dtype=jnp.bfloat16)    # feeds only the logits matmul
    logits = tied_logits(xf, emb)             # weight-tied, untransposed weight
    return logits.reshape(B, T, emb.shape[0]), None


# ----------------------------- deterministic init ----------------------------
def _xavier_uniform(key, shape):
    fan_out, fan_in = shape                   # PyTorch (out_features, in_features)
    limit = math.sqrt(6.0 / (fan_in + fan_out))
    return jax.random.uniform(key, shape, jnp.float32, -limit, limit)


def init_params(key, vocab, dim, n_layers, n_heads, max_seq_len):
    keys = jax.random.split(key, 2 + 4 * n_layers)
    token_emb = 0.02 * jax.random.normal(keys[0], (vocab, dim), jnp.float32)
    pos_emb = jnp.zeros((1, max_seq_len, dim), jnp.float32)
    blocks = []
    ki = 2
    for _ in range(n_layers):
        in_proj_w = _xavier_uniform(keys[ki], (3 * dim, dim)); ki += 1
        out_proj_w = _xavier_uniform(keys[ki], (dim, dim)); ki += 1
        lin1_w = _xavier_uniform(keys[ki], (4 * dim, dim)); ki += 1
        lin2_w = _xavier_uniform(keys[ki], (dim, 4 * dim)); ki += 1
        blocks.append(dict(
            in_proj_w=in_proj_w.T, in_proj_b=jnp.zeros((1, 3 * dim), jnp.float32),
            out_proj_w=out_proj_w.T, out_proj_b=jnp.zeros((1, dim), jnp.float32),
            lin1_w=lin1_w.T, lin1_b=jnp.zeros((1, 4 * dim), jnp.float32),
            lin2_w=lin2_w.T, lin2_b=jnp.zeros((1, dim), jnp.float32),
            ln1_g=jnp.ones((1, dim), jnp.float32), ln1_b=jnp.zeros((1, dim), jnp.float32),
            ln2_g=jnp.ones((1, dim), jnp.float32), ln2_b=jnp.zeros((1, dim), jnp.float32),
        ))
    return dict(token_emb=token_emb, pos_emb=pos_emb, blocks=blocks,
                norm_g=jnp.ones((1, dim), jnp.float32),
                norm_b=jnp.zeros((1, dim), jnp.float32))


# ------------------------------ pure-JAX reference ---------------------------
def _ln_ref(y, g, b, eps=1e-5):
    mean = jnp.mean(y, axis=-1, keepdims=True)
    var = jnp.mean(jnp.square(y - mean), axis=-1, keepdims=True)
    return (y - mean) * lax.rsqrt(var + eps) * g + b


def reference_forward(params, tokens, n_heads):
    B, T = tokens.shape
    emb = params["token_emb"]
    x = emb[tokens] + params["pos_emb"][:, :T, :]
    D = x.shape[-1]
    dh = D // n_heads
    for p in params["blocks"]:
        qkv = x @ p["in_proj_w"] + p["in_proj_b"][0]
        qkv = qkv.reshape(B, T, 3, n_heads, dh)
        q = qkv[:, :, 0].transpose(0, 2, 1, 3)
        k = qkv[:, :, 1].transpose(0, 2, 1, 3)
        v = qkv[:, :, 2].transpose(0, 2, 1, 3)
        s = jnp.einsum("bhqd,bhkd->bhqk", q, k) / math.sqrt(dh)
        a = jax.nn.softmax(s, axis=-1)
        o = jnp.einsum("bhqk,bhkd->bhqd", a, v).transpose(0, 2, 1, 3).reshape(B, T, D)
        o = o @ p["out_proj_w"] + p["out_proj_b"][0]
        x = _ln_ref(x + o, p["ln1_g"][0], p["ln1_b"][0])
        h = jax.nn.gelu(x @ p["lin1_w"] + p["lin1_b"][0], approximate=False)
        h = h @ p["lin2_w"] + p["lin2_b"][0]
        x = _ln_ref(x + h, p["ln2_g"][0], p["ln2_b"][0])
    x = _ln_ref(x, params["norm_g"][0], params["norm_b"][0])
    return x @ emb.T


# ------------------------------------ main -----------------------------------
if __name__ == "__main__":
    B, T = 2, 16
    VOCAB, DIM, N_LAYERS, N_HEADS, MAX_SEQ = 256, 128, 2, 2, 32

    key = jax.random.PRNGKey(0)
    kp, kt = jax.random.split(key)
    params = init_params(kp, VOCAB, DIM, N_LAYERS, N_HEADS, MAX_SEQ)
    tokens = jax.random.randint(kt, (B, T), 0, VOCAB, dtype=jnp.int32)

    fwd = jax.jit(transformer_forward, static_argnums=2)
    logits, attn = fwd(params, tokens, N_HEADS)
    logits = jax.block_until_ready(logits)

    assert logits.shape == (B, T, VOCAB) and attn is None
    ref = reference_forward(params, tokens, N_HEADS)
    max_diff = float(jnp.max(jnp.abs(logits - ref)))
    assert max_diff < 5e-2, f"kernel/reference mismatch: {max_diff}"

    print("KERNEL_OK")
</pallas_src>

<mosaic_0001>
module attributes {stable_mosaic.version = 11 : i64} {
  func.func @_mm_bias_kernel(%arg0: i32, %arg1: i32, %arg2: i32, %arg3: memref<32x128xf32, #tpu.memory_space<vmem>>, %arg4: memref<128x384xbf16, #tpu.memory_space<vmem>>, %arg5: memref<1x384xf32, #tpu.memory_space<vmem>>, %arg6: memref<32x384xbf16, #tpu.memory_space<vmem>>, %arg7: memref<32x384xf32, #tpu.memory_space<vmem>>) attributes {dimension_semantics = [#tpu.dimension_semantics<parallel>, #tpu.dimension_semantics<parallel>, #tpu.dimension_semantics<arbitrary>], iteration_bounds = array<i64: 1, 1, 1>, scalar_prefetch = 0 : i64, scratch_operands = 1 : i64, tpu.core_type = #tpu.core_type<tc>, window_params = [{transform_indices = @transform_0, window_bounds = array<i64: 32, 128>}, {transform_indices = @transform_1, window_bounds = array<i64: 128, 384>}, {transform_indices = @transform_2, window_bounds = array<i64: 1, 384>}, {transform_indices = @transform_3, window_bounds = array<i64: 32, 384>}]} {
    %c0_i32 = arith.constant 0 : i32
    %0 = arith.cmpi eq, %arg2, %c0_i32 : i32
    %1 = arith.extui %0 : i1 to i32
    %c0_i32_0 = arith.constant 0 : i32
    %2 = arith.cmpi ne, %1, %c0_i32_0 : i32
    scf.if %2 {
      %cst_10 = arith.constant 0.000000e+00 : f32
      %13 = vector.broadcast %cst_10 : f32 to vector<32x384xf32>
      %c0_11 = arith.constant 0 : index
      %c0_12 = arith.constant 0 : index
      %14 = vector.load %arg7[%c0_11, %c0_12] : memref<32x384xf32, #tpu.memory_space<vmem>>, vector<32x384xf32>
      tpu.vector_store %arg7[%c0_11, %c0_12], %13 {strides = array<i32>} : memref<32x384xf32, #tpu.memory_space<vmem>>, vector<32x384xf32>,
    } else {
    }
    %c0 = arith.constant 0 : index
    %c0_1 = arith.constant 0 : index
    %3 = vector.load %arg7[%c0, %c0_1] : memref<32x384xf32, #tpu.memory_space<vmem>>, vector<32x384xf32>
    %c0_2 = arith.constant 0 : index
    %c0_3 = arith.constant 0 : index
    %4 = vector.load %arg3[%c0_2, %c0_3] : memref<32x128xf32, #tpu.memory_space<vmem>>, vector<32x128xf32>
    %5 = arith.truncf %4 : vector<32x128xf32> to vector<32x128xbf16>
    %c0_4 = arith.constant 0 : index
    %c0_5 = arith.constant 0 : index
    %6 = vector.load %arg4[%c0_4, %c0_5] : memref<128x384xbf16, #tpu.memory_space<vmem>>, vector<128x384xbf16>
    %cst = arith.constant dense<0.000000e+00> : vector<32x384xf32>
    %7 = tpu.matmul %5, %6, %cst {dimension_numbers = #tpu.dot_dimension_numbers<[1], [0], [0], [1], [0, 0, 1, 1], [], []>} : vector<32x128xbf16>, vector<128x384xbf16>, vector<32x384xf32> -> vector<32x384xf32>
    %8 = arith.addf %3, %7 : vector<32x384xf32>
    %c0_6 = arith.constant 0 : index
    %c0_7 = arith.constant 0 : index
    %9 = vector.load %arg7[%c0_6, %c0_7] : memref<32x384xf32, #tpu.memory_space<vmem>>, vector<32x384xf32>
    tpu.vector_store %arg7[%c0_6, %c0_7], %8 {strides = array<i32>} : memref<32x384xf32, #tpu.memory_space<vmem>>, vector<32x384xf32>,
    %c0_i32_8 = arith.constant 0 : i32
    %10 = arith.cmpi eq, %arg2, %c0_i32_8 : i32
    %11 = arith.extui %10 : i1 to i32
    %c0_i32_9 = arith.constant 0 : i32
    %12 = arith.cmpi ne, %11, %c0_i32_9 : i32
    scf.if %12 {
      %c0_10 = arith.constant 0 : index
      %c0_11 = arith.constant 0 : index
      %13 = vector.load %arg7[%c0_10, %c0_11] : memref<32x384xf32, #tpu.memory_space<vmem>>, vector<32x384xf32>
      %c0_12 = arith.constant 0 : index
      %c0_13 = arith.constant 0 : index
      %14 = vector.load %arg5[%c0_12, %c0_13] : memref<1x384xf32, #tpu.memory_space<vmem>>, vector<1x384xf32>
      %15 = vector.broadcast %14 : vector<1x384xf32> to vector<32x384xf32>
      %16 = arith.addf %13, %15 : vector<32x384xf32>
      %17 = arith.truncf %16 : vector<32x384xf32> to vector<32x384xbf16>
      %c0_14 = arith.constant 0 : index
      %c0_15 = arith.constant 0 : index
      %18 = vector.load %arg6[%c0_14, %c0_15] : memref<32x384xbf16, #tpu.memory_space<vmem>>, vector<32x384xbf16>
      tpu.vector_store %arg6[%c0_14, %c0_15], %17 {strides = array<i32>} : memref<32x384xbf16, #tpu.memory_space<vmem>>, vector<32x384xbf16>,
    } else {
    }
    return
  }
  func.func @transform_0(%arg0: i32, %arg1: i32, %arg2: i32) -> (i32, i32) {
    %c0_i32 = arith.constant 0 : i32
    return %arg0, %arg2 : i32, i32
  }
  func.func @transform_1(%arg0: i32, %arg1: i32, %arg2: i32) -> (i32, i32) {
    %c0_i32 = arith.constant 0 : i32
    return %arg2, %arg1 : i32, i32
  }
  func.func @transform_2(%arg0: i32, %arg1: i32, %arg2: i32) -> (i32, i32) {
    %c0_i32 = arith.constant 0 : i32
    %c0_i32_0 = arith.constant 0 : i32
    return %c0_i32, %arg1 : i32, i32
  }
  func.func @transform_3(%arg0: i32, %arg1: i32, %arg2: i32) -> (i32, i32) {
    %c0_i32 = arith.constant 0 : i32
    return %arg0, %arg1 : i32, i32
  }
}

module attributes {stable_mosaic.version = 11 : i64} {
  func.func @_flash_mha_kernel(%arg0: i32, %arg1: i32, %arg2: i32, %arg3: memref<1x16x64xbf16, #tpu.memory_space<vmem>>, %arg4: memref<1x16x64xbf16, #tpu.memory_space<vmem>>, %arg5: memref<1x16x64xbf16, #tpu.memory_space<vmem>>, %arg6: memref<1x16x64xbf16, #tpu.memory_space<vmem>>, %arg7: memref<16x1xf32, #tpu.memory_space<vmem>>, %arg8: memref<16x1xf32, #tpu.memory_space<vmem>>, %arg9: memref<16x64xf32, #tpu.memory_space<vmem>>) attributes {dimension_semantics = [#tpu.dimension_semantics<parallel>, #tpu.dimension_semantics<parallel>, #tpu.dimension_semantics<arbitrary>], iteration_bounds = array<i64: 4, 1, 1>, scalar_prefetch = 0 : i64, scratch_operands = 3 : i64, tpu.core_type = #tpu.core_type<tc>, window_params = [{transform_indices = @transform_0, window_bounds = array<i64: 1, 16, 64>}, {transform_indices = @transform_1, window_bounds = array<i64: 1, 16, 64>}, {transform_indices = @transform_2, window_bounds = array<i64: 1, 16, 64>}, {transform_indices = @transform_3, window_bounds = array<i64: 1, 16, 64>}]} {
    %c0_i32 = arith.constant 0 : i32
    %0 = arith.cmpi eq, %arg2, %c0_i32 : i32
    %1 = arith.extui %0 : i1 to i32
    %c0_i32_0 = arith.constant 0 : i32
    %2 = arith.cmpi ne, %1, %c0_i32_0 : i32
    scf.if %2 {
      %cst_26 = arith.constant 0xFF800000 : f32
      %36 = vector.broadcast %cst_26 : f32 to vector<16x1xf32>
      %c0_27 = arith.constant 0 : index
      %c0_28 = arith.constant 0 : index
      %37 = vector.load %arg7[%c0_27, %c0_28] : memref<16x1xf32, #tpu.memory_space<vmem>>, vector<16x1xf32>
      tpu.vector_store %arg7[%c0_27, %c0_28], %36 {strides = array<i32>} : memref<16x1xf32, #tpu.memory_space<vmem>>, vector<16x1xf32>,
      %cst_29 = arith.constant 0.000000e+00 : f32
      %38 = vector.broadcast %cst_29 : f32 to vector<16x1xf32>
      %c0_30 = arith.constant 0 : index
      %c0_31 = arith.constant 0 : index
      %39 = vector.load %arg8[%c0_30, %c0_31] : memref<16x1xf32, #tpu.memory_space<vmem>>, vector<16x1xf32>
      tpu.vector_store %arg8[%c0_30, %c0_31], %38 {strides = array<i32>} : memref<16x1xf32, #tpu.memory_space<vmem>>, vector<16x1xf32>,
      %cst_32 = arith.constant 0.000000e+00 : f32
      %40 = vector.broadcast %cst_32 : f32 to vector<16x64xf32>
      %c0_33 = arith.constant 0 : index
      %c0_34 = arith.constant 0 : index
      %41 = vector.load %arg9[%c0_33, %c0_34] : memref<16x64xf32, #tpu.memory_space<vmem>>, vector<16x64xf32>
      tpu.vector_store %arg9[%c0_33, %c0_34], %40 {strides = array<i32>} : memref<16x64xf32, #tpu.memory_space<vmem>>, vector<16x64xf32>,
    } else {
    }
    %c0 = arith.constant 0 : index
    %c0_1 = arith.constant 0 : index
    %c0_2 = arith.constant 0 : index
    %3 = vector.load %arg3[%c0, %c0_1, %c0_2] : memref<1x16x64xbf16, #tpu.memory_space<vmem>>, vector<1x16x64xbf16>
    %4 = vector.shape_cast %3 : vector<1x16x64xbf16> to vector<16x64xbf16>
    %c0_3 = arith.constant 0 : index
    %c0_4 = arith.constant 0 : index
    %c0_5 = arith.constant 0 : index
    %5 = vector.load %arg4[%c0_3, %c0_4, %c0_5] : memref<1x16x64xbf16, #tpu.memory_space<vmem>>, vector<1x16x64xbf16>
    %6 = vector.shape_cast %5 : vector<1x16x64xbf16> to vector<16x64xbf16>
    %cst = arith.constant dense<0.000000e+00> : vector<16x16xf32>
    %7 = tpu.matmul %4, %6, %cst {dimension_numbers = #tpu.dot_dimension_numbers<[1], [1], [0], [0], [0, 0, 1, 0], [], []>} : vector<16x64xbf16>, vector<16x64xbf16>, vector<16x16xf32> -> vector<16x16xf32>
    %c0_6 = arith.constant 0 : index
    %c0_7 = arith.constant 0 : index
    %8 = vector.load %arg7[%c0_6, %c0_7] : memref<16x1xf32, #tpu.memory_space<vmem>>, vector<16x1xf32>
    %cst_8 = arith.constant dense<0xFF800000> : vector<16xf32>
    %9 = vector.multi_reduction <maximumf>, %7, %cst_8 [1] : vector<16x16xf32> to vector<16xf32>
    %10 = vector.shape_cast %9 : vector<16xf32> to vector<16x1xf32>
    %11 = arith.maximumf %8, %10 : vector<16x1xf32>
    %12 = arith.subf %8, %11 : vector<16x1xf32>
    %13 = math.exp %12 : vector<16x1xf32>
    %14 = vector.broadcast %11 : vector<16x1xf32> to vector<16x16xf32>
    %15 = arith.subf %7, %14 : vector<16x16xf32>
    %16 = math.exp %15 : vector<16x16xf32>
    %c0_9 = arith.constant 0 : index
    %c0_10 = arith.constant 0 : index
    %17 = vector.load %arg8[%c0_9, %c0_10] : memref<16x1xf32, #tpu.memory_space<vmem>>, vector<16x1xf32>
    %18 = arith.mulf %13, %17 : vector<16x1xf32>
    %cst_11 = arith.constant dense<0.000000e+00> : vector<16xf32>
    %19 = vector.multi_reduction <add>, %16, %cst_11 [1] : vector<16x16xf32> to vector<16xf32>
    %20 = vector.shape_cast %19 : vector<16xf32> to vector<16x1xf32>
    %21 = arith.addf %18, %20 : vector<16x1xf32>
    %c0_12 = arith.constant 0 : index
    %c0_13 = arith.constant 0 : index
    %22 = vector.load %arg8[%c0_12, %c0_13] : memref<16x1xf32, #tpu.memory_space<vmem>>, vector<16x1xf32>
    tpu.vector_store %arg8[%c0_12, %c0_13], %21 {strides = array<i32>} : memref<16x1xf32, #tpu.memory_space<vmem>>, vector<16x1xf32>,
    %c0_14 = arith.constant 0 : index
    %c0_15 = arith.constant 0 : index
    %23 = vector.load %arg9[%c0_14, %c0_15] : memref<16x64xf32, #tpu.memory_space<vmem>>, vector<16x64xf32>
    %24 = vector.broadcast %13 : vector<16x1xf32> to vector<16x64xf32>
    %25 = arith.mulf %24, %23 : vector<16x64xf32>
    %26 = arith.truncf %16 : vector<16x16xf32> to vector<16x16xbf16>
    %c0_16 = arith.constant 0 : index
    %c0_17 = arith.constant 0 : index
    %c0_18 = arith.constant 0 : index
    %27 = vector.load %arg5[%c0_16, %c0_17, %c0_18] : memref<1x16x64xbf16, #tpu.memory_space<vmem>>, vector<1x16x64xbf16>
    %28 = vector.shape_cast %27 : vector<1x16x64xbf16> to vector<16x64xbf16>
    %cst_19 = arith.constant dense<0.000000e+00> : vector<16x64xf32>
    %29 = tpu.matmul %26, %28, %cst_19 {dimension_numbers = #tpu.dot_dimension_numbers<[1], [0], [0], [1], [0, 0, 1, 1], [], []>} : vector<16x16xbf16>, vector<16x64xbf16>, vector<16x64xf32> -> vector<16x64xf32>
    %30 = arith.addf %25, %29 : vector<16x64xf32>
    %c0_20 = arith.constant 0 : index
    %c0_21 = arith.constant 0 : index
    %31 = vector.load %arg9[%c0_20, %c0_21] : memref<16x64xf32, #tpu.memory_space<vmem>>, vector<16x64xf32>
    tpu.vector_store %arg9[%c0_20, %c0_21], %30 {strides = array<i32>} : memref<16x64xf32, #tpu.memory_space<vmem>>, vector<16x64xf32>,
    %c0_22 = arith.constant 0 : index
    %c0_23 = arith.constant 0 : index
    %32 = vector.load %arg7[%c0_22, %c0_23] : memref<16x1xf32, #tpu.memory_space<vmem>>, vector<16x1xf32>
    tpu.vector_store %arg7[%c0_22, %c0_23], %11 {strides = array<i32>} : memref<16x1xf32, #tpu.memory_space<vmem>>, vector<16x1xf32>,
    %c0_i32_24 = arith.constant 0 : i32
    %33 = arith.cmpi eq, %arg2, %c0_i32_24 : i32
    %34 = arith.extui %33 : i1 to i32
    %c0_i32_25 = arith.constant 0 : i32
    %35 = arith.cmpi ne, %34, %c0_i32_25 : i32
    scf.if %35 {
      %c0_26 = arith.constant 0 : index
      %c0_27 = arith.constant 0 : index
      %36 = vector.load %arg8[%c0_26, %c0_27] : memref<16x1xf32, #tpu.memory_space<vmem>>, vector<16x1xf32>
      %37 = tpu.reciprocal %36 {approx = true} : vector<16x1xf32> -> vector<16x1xf32>
      %c0_28 = arith.constant 0 : index
      %c0_29 = arith.constant 0 : index
      %38 = vector.load %arg9[%c0_28, %c0_29] : memref<16x64xf32, #tpu.memory_space<vmem>>, vector<16x64xf32>
      %39 = vector.broadcast %37 : vector<16x1xf32> to vector<16x64xf32>
      %40 = arith.mulf %38, %39 : vector<16x64xf32>
      %41 = arith.truncf %40 : vector<16x64xf32> to vector<16x64xbf16>
      %c0_30 = arith.constant 0 : index
      %c0_31 = arith.constant 0 : index
      %c0_32 = arith.constant 0 : index
      %42 = vector.load %arg6[%c0_30, %c0_31, %c0_32] : memref<1x16x64xbf16, #tpu.memory_space<vmem>>, vector<1x16x64xbf16>
      %43 = vector.shape_cast %42 : vector<1x16x64xbf16> to vector<16x64xbf16>
      %44 = vector.shape_cast %41 : vector<16x64xbf16> to vector<1x16x64xbf16>
      tpu.vector_store %arg6[%c0_30, %c0_31, %c0_32], %44 {strides = array<i32>} : memref<1x16x64xbf16, #tpu.memory_space<vmem>>, vector<1x16x64xbf16>,
    } else {
    }
    return
  }
  func.func @transform_0(%arg0: i32, %arg1: i32, %arg2: i32) -> (i32, i32, i32) {
    %c0_i32 = arith.constant 0 : i32
    %c0_i32_0 = arith.constant 0 : i32
    return %arg0, %arg1, %c0_i32 : i32, i32, i32
  }
  func.func @transform_1(%arg0: i32, %arg1: i32, %arg2: i32) -> (i32, i32, i32) {
    %c0_i32 = arith.constant 0 : i32
    %c0_i32_0 = arith.constant 0 : i32
    return %arg0, %arg2, %c0_i32 : i32, i32, i32
  }
  func.func @transform_2(%arg0: i32, %arg1: i32, %arg2: i32) -> (i32, i32, i32) {
    %c0_i32 = arith.constant 0 : i32
    %c0_i32_0 = arith.constant 0 : i32
    return %arg0, %arg2, %c0_i32 : i32, i32, i32
  }
  func.func @transform_3(%arg0: i32, %arg1: i32, %arg2: i32) -> (i32, i32, i32) {
    %c0_i32 = arith.constant 0 : i32
    %c0_i32_0 = arith.constant 0 : i32
    return %arg0, %arg1, %c0_i32 : i32, i32, i32
  }
}

module attributes {stable_mosaic.version = 11 : i64} {
  func.func @_mm_bias_resid_ln_kernel(%arg0: i32, %arg1: i32, %arg2: memref<32x128xbf16, #tpu.memory_space<vmem>>, %arg3: memref<128x128xbf16, #tpu.memory_space<vmem>>, %arg4: memref<1x128xf32, #tpu.memory_space<vmem>>, %arg5: memref<32x128xf32, #tpu.memory_space<vmem>>, %arg6: memref<1x128xf32, #tpu.memory_space<vmem>>, %arg7: memref<1x128xf32, #tpu.memory_space<vmem>>, %arg8: memref<32x128xf32, #tpu.memory_space<vmem>>, %arg9: memref<32x128xf32, #tpu.memory_space<vmem>>) attributes {dimension_semantics = [#tpu.dimension_semantics<parallel>, #tpu.dimension_semantics<arbitrary>], iteration_bounds = array<i64: 1, 1>, scalar_prefetch = 0 : i64, scratch_operands = 1 : i64, tpu.core_type = #tpu.core_type<tc>, window_params = [{transform_indices = @transform_0, window_bounds = array<i64: 32, 128>}, {transform_indices = @transform_1, window_bounds = array<i64: 128, 128>}, {pipeline_mode = #tpu.pipeline_mode<synchronous>, transform_indices = @transform_2, window_bounds = array<i64: 1, 128>}, {transform_indices = @transform_3, window_bounds = array<i64: 32, 128>}, {pipeline_mode = #tpu.pipeline_mode<synchronous>, transform_indices = @transform_4, window_bounds = array<i64: 1, 128>}, {pipeline_mode = #tpu.pipeline_mode<synchronous>, transform_indices = @transform_5, window_bounds = array<i64: 1, 128>}, {transform_indices = @transform_6, window_bounds = array<i64: 32, 128>}]} {
    %c0_i32 = arith.constant 0 : i32
    %0 = arith.cmpi eq, %arg1, %c0_i32 : i32
    %1 = arith.extui %0 : i1 to i32
    %c0_i32_0 = arith.constant 0 : i32
    %2 = arith.cmpi ne, %1, %c0_i32_0 : i32
    scf.if %2 {
      %cst_10 = arith.constant 0.000000e+00 : f32
      %12 = vector.broadcast %cst_10 : f32 to vector<32x128xf32>
      %c0_11 = arith.constant 0 : index
      %c0_12 = arith.constant 0 : index
      %13 = vector.load %arg9[%c0_11, %c0_12] : memref<32x128xf32, #tpu.memory_space<vmem>>, vector<32x128xf32>
      tpu.vector_store %arg9[%c0_11, %c0_12], %12 {strides = array<i32>} : memref<32x128xf32, #tpu.memory_space<vmem>>, vector<32x128xf32>,
    } else {
    }
    %c0 = arith.constant 0 : index
    %c0_1 = arith.constant 0 : index
    %3 = vector.load %arg9[%c0, %c0_1] : memref<32x128xf32, #tpu.memory_space<vmem>>, vector<32x128xf32>
    %c0_2 = arith.constant 0 : index
    %c0_3 = arith.constant 0 : index
    %4 = vector.load %arg2[%c0_2, %c0_3] : memref<32x128xbf16, #tpu.memory_space<vmem>>, vector<32x128xbf16>
    %c0_4 = arith.constant 0 : index
    %c0_5 = arith.constant 0 : index
    %5 = vector.load %arg3[%c0_4, %c0_5] : memref<128x128xbf16, #tpu.memory_space<vmem>>, vector<128x128xbf16>
    %cst = arith.constant dense<0.000000e+00> : vector<32x128xf32>
    %6 = tpu.matmul %4, %5, %cst {dimension_numbers = #tpu.dot_dimension_numbers<[1], [0], [0], [1], [0, 0, 1, 1], [], []>} : vector<32x128xbf16>, vector<128x128xbf16>, vector<32x128xf32> -> vector<32x128xf32>
    %7 = arith.addf %3, %6 : vector<32x128xf32>
    %c0_6 = arith.constant 0 : index
    %c0_7 = arith.constant 0 : index
    %8 = vector.load %arg9[%c0_6, %c0_7] : memref<32x128xf32, #tpu.memory_space<vmem>>, vector<32x128xf32>
    tpu.vector_store %arg9[%c0_6, %c0_7], %7 {strides = array<i32>} : memref<32x128xf32, #tpu.memory_space<vmem>>, vector<32x128xf32>,
    %c0_i32_8 = arith.constant 0 : i32
    %9 = arith.cmpi eq, %arg1, %c0_i32_8 : i32
    %10 = arith.extui %9 : i1 to i32
    %c0_i32_9 = arith.constant 0 : i32
    %11 = arith.cmpi ne, %10, %c0_i32_9 : i32
    scf.if %11 {
      %c0_10 = arith.constant 0 : index
      %c0_11 = arith.constant 0 : index
      %12 = vector.load %arg9[%c0_10, %c0_11] : memref<32x128xf32, #tpu.memory_space<vmem>>, vector<32x128xf32>
      %c0_12 = arith.constant 0 : index
      %c0_13 = arith.constant 0 : index
      %13 = vector.load %arg4[%c0_12, %c0_13] : memref<1x128xf32, #tpu.memory_space<vmem>>, vector<1x128xf32>
      %14 = vector.broadcast %13 : vector<1x128xf32> to vector<32x128xf32>
      %15 = arith.addf %12, %14 : vector<32x128xf32>
      %c0_14 = arith.constant 0 : index
      %c0_15 = arith.constant 0 : index
      %16 = vector.load %arg5[%c0_14, %c0_15] : memref<32x128xf32, #tpu.memory_space<vmem>>, vector<32x128xf32>
      %17 = arith.addf %15, %16 : vector<32x128xf32>
      %cst_16 = arith.constant dense<0.000000e+00> : vector<32xf32>
      %18 = vector.multi_reduction <add>, %17, %cst_16 [1] : vector<32x128xf32> to vector<32xf32>
      %19 = vector.shape_cast %18 : vector<32xf32> to vector<32x1xf32>
      %cst_17 = arith.constant 1.280000e+02 : f32
      %20 = vector.broadcast %cst_17 : f32 to vector<32x1xf32>
      %21 = arith.divf %19, %20 : vector<32x1xf32>
      %22 = vector.broadcast %21 : vector<32x1xf32> to vector<32x128xf32>
      %23 = arith.subf %17, %22 : vector<32x128xf32>
      %24 = arith.mulf %23, %23 : vector<32x128xf32>
      %cst_18 = arith.constant dense<0.000000e+00> : vector<32xf32>
      %25 = vector.multi_reduction <add>, %24, %cst_18 [1] : vector<32x128xf32> to vector<32xf32>
      %26 = vector.shape_cast %25 : vector<32xf32> to vector<32x1xf32>
      %cst_19 = arith.constant 1.280000e+02 : f32
      %27 = vector.broadcast %cst_19 : f32 to vector<32x1xf32>
      %28 = arith.divf %26, %27 : vector<32x1xf32>
      %29 = vector.broadcast %21 : vector<32x1xf32> to vector<32x128xf32>
      %30 = arith.subf %17, %29 : vector<32x128xf32>
      %cst_20 = arith.constant 9.99999974E-6 : f32
      %31 = vector.broadcast %cst_20 : f32 to vector<32x1xf32>
      %32 = arith.addf %28, %31 : vector<32x1xf32>
      %33 = math.rsqrt %32 : vector<32x1xf32>
      %34 = vector.broadcast %33 : vector<32x1xf32> to vector<32x128xf32>
      %35 = arith.mulf %30, %34 : vector<32x128xf32>
      %c0_21 = arith.constant 0 : index
      %c0_22 = arith.constant 0 : index
      %36 = vector.load %arg6[%c0_21, %c0_22] : memref<1x128xf32, #tpu.memory_space<vmem>>, vector<1x128xf32>
      %37 = vector.broadcast %36 : vector<1x128xf32> to vector<32x128xf32>
      %38 = arith.mulf %35, %37 : vector<32x128xf32>
      %c0_23 = arith.constant 0 : index
      %c0_24 = arith.constant 0 : index
      %39 = vector.load %arg7[%c0_23, %c0_24] : memref<1x128xf32, #tpu.memory_space<vmem>>, vector<1x128xf32>
      %40 = vector.broadcast %39 : vector<1x128xf32> to vector<32x128xf32>
      %41 = arith.addf %38, %40 : vector<32x128xf32>
      %c0_25 = arith.constant 0 : index
      %c0_26 = arith.constant 0 : index
      %42 = vector.load %arg8[%c0_25, %c0_26] : memref<32x128xf32, #tpu.memory_space<vmem>>, vector<32x128xf32>
      tpu.vector_store %arg8[%c0_25, %c0_26], %41 {strides = array<i32>} : memref<32x128xf32, #tpu.memory_space<vmem>>, vector<32x128xf32>,
    } else {
    }
    return
  }
  func.func @transform_0(%arg0: i32, %arg1: i32) -> (i32, i32) {
    %c0_i32 = arith.constant 0 : i32
    return %arg0, %arg1 : i32, i32
  }
  func.func @transform_1(%arg0: i32, %arg1: i32) -> (i32, i32) {
    %c0_i32 = arith.constant 0 : i32
    %c0_i32_0 = arith.constant 0 : i32
    return %arg1, %c0_i32 : i32, i32
  }
  func.func @transform_2(%arg0: i32, %arg1: i32) -> (i32, i32) {
    %c0_i32 = arith.constant 0 : i32
    %c0_i32_0 = arith.constant 0 : i32
    %c0_i32_1 = arith.constant 0 : i32
    return %c0_i32, %c0_i32_0 : i32, i32
  }
  func.func @transform_3(%arg0: i32, %arg1: i32) -> (i32, i32) {
    %c0_i32 = arith.constant 0 : i32
    %c0_i32_0 = arith.constant 0 : i32
    return %arg0, %c0_i32 : i32, i32
  }
  func.func @transform_4(%arg0: i32, %arg1: i32) -> (i32, i32) {
    %c0_i32 = arith.constant 0 : i32
    %c0_i32_0 = arith.constant 0 : i32
    %c0_i32_1 = arith.constant 0 : i32
    return %c0_i32, %c0_i32_0 : i32, i32
  }
  func.func @transform_5(%arg0: i32, %arg1: i32) -> (i32, i32) {
    %c0_i32 = arith.constant 0 : i32
    %c0_i32_0 = arith.constant 0 : i32
    %c0_i32_1 = arith.constant 0 : i32
    return %c0_i32, %c0_i32_0 : i32, i32
  }
  func.func @transform_6(%arg0: i32, %arg1: i32) -> (i32, i32) {
    %c0_i32 = arith.constant 0 : i32
    %c0_i32_0 = arith.constant 0 : i32
    return %arg0, %c0_i32 : i32, i32
  }
}

module attributes {stable_mosaic.version = 11 : i64} {
  func.func @_mm_bias_kernel(%arg0: i32, %arg1: i32, %arg2: i32, %arg3: memref<32x128xf32, #tpu.memory_space<vmem>>, %arg4: memref<128x512xbf16, #tpu.memory_space<vmem>>, %arg5: memref<1x512xf32, #tpu.memory_space<vmem>>, %arg6: memref<32x512xbf16, #tpu.memory_space<vmem>>, %arg7: memref<32x512xf32, #tpu.memory_space<vmem>>) attributes {dimension_semantics = [#tpu.dimension_semantics<parallel>, #tpu.dimension_semantics<parallel>, #tpu.dimension_semantics<arbitrary>], iteration_bounds = array<i64: 1, 1, 1>, scalar_prefetch = 0 : i64, scratch_operands = 1 : i64, tpu.core_type = #tpu.core_type<tc>, window_params = [{transform_indices = @transform_0, window_bounds = array<i64: 32, 128>}, {transform_indices = @transform_1, window_bounds = array<i64: 128, 512>}, {transform_indices = @transform_2, window_bounds = array<i64: 1, 512>}, {transform_indices = @transform_3, window_bounds = array<i64: 32, 512>}]} {
    %c0_i32 = arith.constant 0 : i32
    %0 = arith.cmpi eq, %arg2, %c0_i32 : i32
    %1 = arith.extui %0 : i1 to i32
    %c0_i32_0 = arith.constant 0 : i32
    %2 = arith.cmpi ne, %1, %c0_i32_0 : i32
    scf.if %2 {
      %cst_10 = arith.constant 0.000000e+00 : f32
      %13 = vector.broadcast %cst_10 : f32 to vector<32x512xf32>
      %c0_11 = arith.constant 0 : index
      %c0_12 = arith.constant 0 : index
      %14 = vector.load %arg7[%c0_11, %c0_12] : memref<32x512xf32, #tpu.memory_space<vmem>>, vector<32x512xf32>
      tpu.vector_store %arg7[%c0_11, %c0_12], %13 {strides = array<i32>} : memref<32x512xf32, #tpu.memory_space<vmem>>, vector<32x512xf32>,
    } else {
    }
    %c0 = arith.constant 0 : index
    %c0_1 = arith.constant 0 : index
    %3 = vector.load %arg7[%c0, %c0_1] : memref<32x512xf32, #tpu.memory_space<vmem>>, vector<32x512xf32>
    %c0_2 = arith.constant 0 : index
    %c0_3 = arith.constant 0 : index
    %4 = vector.load %arg3[%c0_2, %c0_3] : memref<32x128xf32, #tpu.memory_space<vmem>>, vector<32x128xf32>
    %5 = arith.truncf %4 : vector<32x128xf32> to vector<32x128xbf16>
    %c0_4 = arith.constant 0 : index
    %c0_5 = arith.constant 0 : index
    %6 = vector.load %arg4[%c0_4, %c0_5] : memref<128x512xbf16, #tpu.memory_space<vmem>>, vector<128x512xbf16>
    %cst = arith.constant dense<0.000000e+00> : vector<32x512xf32>
    %7 = tpu.matmul %5, %6, %cst {dimension_numbers = #tpu.dot_dimension_numbers<[1], [0], [0], [1], [0, 0, 1, 1], [], []>} : vector<32x128xbf16>, vector<128x512xbf16>, vector<32x512xf32> -> vector<32x512xf32>
    %8 = arith.addf %3, %7 : vector<32x512xf32>
    %c0_6 = arith.constant 0 : index
    %c0_7 = arith.constant 0 : index
    %9 = vector.load %arg7[%c0_6, %c0_7] : memref<32x512xf32, #tpu.memory_space<vmem>>, vector<32x512xf32>
    tpu.vector_store %arg7[%c0_6, %c0_7], %8 {strides = array<i32>} : memref<32x512xf32, #tpu.memory_space<vmem>>, vector<32x512xf32>,
    %c0_i32_8 = arith.constant 0 : i32
    %10 = arith.cmpi eq, %arg2, %c0_i32_8 : i32
    %11 = arith.extui %10 : i1 to i32
    %c0_i32_9 = arith.constant 0 : i32
    %12 = arith.cmpi ne, %11, %c0_i32_9 : i32
    scf.if %12 {
      %c0_10 = arith.constant 0 : index
      %c0_11 = arith.constant 0 : index
      %13 = vector.load %arg7[%c0_10, %c0_11] : memref<32x512xf32, #tpu.memory_space<vmem>>, vector<32x512xf32>
      %c0_12 = arith.constant 0 : index
      %c0_13 = arith.constant 0 : index
      %14 = vector.load %arg5[%c0_12, %c0_13] : memref<1x512xf32, #tpu.memory_space<vmem>>, vector<1x512xf32>
      %15 = vector.broadcast %14 : vector<1x512xf32> to vector<32x512xf32>
      %16 = arith.addf %13, %15 : vector<32x512xf32>
      %cst_14 = arith.constant 5.000000e-01 : f32
      %17 = vector.broadcast %cst_14 : f32 to vector<32x512xf32>
      %18 = arith.mulf %17, %16 : vector<32x512xf32>
      %cst_15 = arith.constant 0.707106769 : f32
      %19 = vector.broadcast %cst_15 : f32 to vector<32x512xf32>
      %20 = arith.mulf %16, %19 : vector<32x512xf32>
      %cst_16 = arith.constant -4.000000e+00 : f32
      %cst_17 = arith.constant 4.000000e+00 : f32
      %21 = vector.broadcast %cst_16 : f32 to vector<32x512xf32>
      %22 = arith.maximumf %21, %20 : vector<32x512xf32>
      %23 = vector.broadcast %cst_17 : f32 to vector<32x512xf32>
      %24 = arith.minimumf %23, %22 : vector<32x512xf32>
      %25 = arith.mulf %24, %24 : vector<32x512xf32>
      %cst_18 = arith.constant 2.29050653E-4 : f32
      %26 = vector.broadcast %cst_18 : f32 to vector<32x512xf32>
      %27 = arith.mulf %26, %25 : vector<32x512xf32>
      %cst_19 = arith.constant 0.00340829091 : f32
      %28 = vector.broadcast %cst_19 : f32 to vector<32x512xf32>
      %29 = arith.addf %27, %28 : vector<32x512xf32>
      %30 = arith.mulf %29, %25 : vector<32x512xf32>
      %cst_20 = arith.constant 0.0509556942 : f32
      %31 = vector.broadcast %cst_20 : f32 to vector<32x512xf32>
      %32 = arith.addf %30, %31 : vector<32x512xf32>
      %33 = arith.mulf %32, %25 : vector<32x512xf32>
      %cst_21 = arith.constant 0.185208321 : f32
      %34 = vector.broadcast %cst_21 : f32 to vector<32x512xf32>
      %35 = arith.addf %33, %34 : vector<32x512xf32>
      %36 = arith.mulf %35, %25 : vector<32x512xf32>
      %cst_22 = arith.constant 1.12837911 : f32
      %37 = vector.broadcast %cst_22 : f32 to vector<32x512xf32>
      %38 = arith.addf %36, %37 : vector<32x512xf32>
      %cst_23 = arith.constant -1.17916031E-7 : f32
      %39 = vector.broadcast %cst_23 : f32 to vector<32x512xf32>
      %40 = arith.mulf %39, %25 : vector<32x512xf32>
      %cst_24 = arith.constant 2.35479656E-5 : f32
      %41 = vector.broadcast %cst_24 : f32 to vector<32x512xf32>
      %42 = arith.addf %40, %41 : vector<32x512xf32>
      %43 = arith.mulf %42, %25 : vector<32x512xf32>
      %cst_25 = arith.constant 0.00101796258 : f32
      %44 = vector.broadcast %cst_25 : f32 to vector<32x512xf32>
      %45 = arith.addf %43, %44 : vector<32x512xf32>
      %46 = arith.mulf %45, %25 : vector<32x512xf32>
      %cst_26 = arith.constant 0.0140704699 : f32
      %47 = vector.broadcast %cst_26 : f32 to vector<32x512xf32>
      %48 = arith.addf %46, %47 : vector<32x512xf32>
      %49 = arith.mulf %48, %25 : vector<32x512xf32>
      %cst_27 = arith.constant 0.110985048 : f32
      %50 = vector.broadcast %cst_27 : f32 to vector<32x512xf32>
      %51 = arith.addf %49, %50 : vector<32x512xf32>
      %52 = arith.mulf %51, %25 : vector<32x512xf32>
      %cst_28 = arith.constant 0.497469246 : f32
      %53 = vector.broadcast %cst_28 : f32 to vector<32x512xf32>
      %54 = arith.addf %52, %53 : vector<32x512xf32>
      %55 = arith.mulf %54, %25 : vector<32x512xf32>
      %cst_29 = arith.constant 1.000000e+00 : f32
      %56 = vector.broadcast %cst_29 : f32 to vector<32x512xf32>
      %57 = arith.addf %55, %56 : vector<32x512xf32>
      %58 = arith.mulf %24, %38 : vector<32x512xf32>
      %59 = arith.divf %58, %57 : vector<32x512xf32>
      %cst_30 = arith.constant 1.000000e+00 : f32
      %60 = vector.broadcast %cst_30 : f32 to vector<32x512xf32>
      %61 = arith.addf %60, %59 : vector<32x512xf32>
      %62 = arith.mulf %18, %61 : vector<32x512xf32>
      %63 = arith.truncf %62 : vector<32x512xf32> to vector<32x512xbf16>
      %c0_31 = arith.constant 0 : index
      %c0_32 = arith.constant 0 : index
      %64 = vector.load %arg6[%c0_31, %c0_32] : memref<32x512xbf16, #tpu.memory_space<vmem>>, vector<32x512xbf16>
      tpu.vector_store %arg6[%c0_31, %c0_32], %63 {strides = array<i32>} : memref<32x512xbf16, #tpu.memory_space<vmem>>, vector<32x512xbf16>,
    } else {
    }
    return
  }
  func.func @transform_0(%arg0: i32, %arg1: i32, %arg2: i32) -> (i32, i32) {
    %c0_i32 = arith.constant 0 : i32
    return %arg0, %arg2 : i32, i32
  }
  func.func @transform_1(%arg0: i32, %arg1: i32, %arg2: i32) -> (i32, i32) {
    %c0_i32 = arith.constant 0 : i32
    return %arg2, %arg1 : i32, i32
  }
  func.func @transform_2(%arg0: i32, %arg1: i32, %arg2: i32) -> (i32, i32) {
    %c0_i32 = arith.constant 0 : i32
    %c0_i32_0 = arith.constant 0 : i32
    return %c0_i32, %arg1 : i32, i32
  }
  func.func @transform_3(%arg0: i32, %arg1: i32, %arg2: i32) -> (i32, i32) {
    %c0_i32 = arith.constant 0 : i32
    return %arg0, %arg1 : i32, i32
  }
}

module attributes {stable_mosaic.version = 11 : i64} {
  func.func @_mm_bias_resid_ln_kernel(%arg0: i32, %arg1: i32, %arg2: memref<32x256xbf16, #tpu.memory_space<vmem>>, %arg3: memref<256x128xbf16, #tpu.memory_space<vmem>>, %arg4: memref<1x128xf32, #tpu.memory_space<vmem>>, %arg5: memref<32x128xf32, #tpu.memory_space<vmem>>, %arg6: memref<1x128xf32, #tpu.memory_space<vmem>>, %arg7: memref<1x128xf32, #tpu.memory_space<vmem>>, %arg8: memref<32x128xf32, #tpu.memory_space<vmem>>, %arg9: memref<32x128xf32, #tpu.memory_space<vmem>>) attributes {dimension_semantics = [#tpu.dimension_semantics<parallel>, #tpu.dimension_semantics<arbitrary>], iteration_bounds = array<i64: 1, 2>, scalar_prefetch = 0 : i64, scratch_operands = 1 : i64, tpu.core_type = #tpu.core_type<tc>, window_params = [{transform_indices = @transform_0, window_bounds = array<i64: 32, 256>}, {transform_indices = @transform_1, window_bounds = array<i64: 256, 128>}, {pipeline_mode = #tpu.pipeline_mode<synchronous>, transform_indices = @transform_2, window_bounds = array<i64: 1, 128>}, {transform_indices = @transform_3, window_bounds = array<i64: 32, 128>}, {pipeline_mode = #tpu.pipeline_mode<synchronous>, transform_indices = @transform_4, window_bounds = array<i64: 1, 128>}, {pipeline_mode = #tpu.pipeline_mode<synchronous>, transform_indices = @transform_5, window_bounds = array<i64: 1, 128>}, {transform_indices = @transform_6, window_bounds = array<i64: 32, 128>}]} {
    %c0_i32 = arith.constant 0 : i32
    %0 = arith.cmpi eq, %arg1, %c0_i32 : i32
    %1 = arith.extui %0 : i1 to i32
    %c0_i32_0 = arith.constant 0 : i32
    %2 = arith.cmpi ne, %1, %c0_i32_0 : i32
    scf.if %2 {
      %cst_9 = arith.constant 0.000000e+00 : f32
      %12 = vector.broadcast %cst_9 : f32 to vector<32x128xf32>
      %c0_10 = arith.constant 0 : index
      %c0_11 = arith.constant 0 : index
      %13 = vector.load %arg9[%c0_10, %c0_11] : memref<32x128xf32, #tpu.memory_space<vmem>>, vector<32x128xf32>
      tpu.vector_store %arg9[%c0_10, %c0_11], %12 {strides = array<i32>} : memref<32x128xf32, #tpu.memory_space<vmem>>, vector<32x128xf32>,
    } else {
    }
    %c0 = arith.constant 0 : index
    %c0_1 = arith.constant 0 : index
    %3 = vector.load %arg9[%c0, %c0_1] : memref<32x128xf32, #tpu.memory_space<vmem>>, vector<32x128xf32>
    %c0_2 = arith.constant 0 : index
    %c0_3 = arith.constant 0 : index
    %4 = vector.load %arg2[%c0_2, %c0_3] : memref<32x256xbf16, #tpu.memory_space<vmem>>, vector<32x256xbf16>
    %c0_4 = arith.constant 0 : index
    %c0_5 = arith.constant 0 : index
    %5 = vector.load %arg3[%c0_4, %c0_5] : memref<256x128xbf16, #tpu.memory_space<vmem>>, vector<256x128xbf16>
    %cst = arith.constant dense<0.000000e+00> : vector<32x128xf32>
    %6 = tpu.matmul %4, %5, %cst {dimension_numbers = #tpu.dot_dimension_numbers<[1], [0], [0], [1], [0, 0, 1, 1], [], []>} : vector<32x256xbf16>, vector<256x128xbf16>, vector<32x128xf32> -> vector<32x128xf32>
    %7 = arith.addf %3, %6 : vector<32x128xf32>
    %c0_6 = arith.constant 0 : index
    %c0_7 = arith.constant 0 : index
    %8 = vector.load %arg9[%c0_6, %c0_7] : memref<32x128xf32, #tpu.memory_space<vmem>>, vector<32x128xf32>
    tpu.vector_store %arg9[%c0_6, %c0_7], %7 {strides = array<i32>} : memref<32x128xf32, #tpu.memory_space<vmem>>, vector<32x128xf32>,
    %c1_i32 = arith.constant 1 : i32
    %9 = arith.cmpi eq, %arg1, %c1_i32 : i32
    %10 = arith.extui %9 : i1 to i32
    %c0_i32_8 = arith.constant 0 : i32
    %11 = arith.cmpi ne, %10, %c0_i32_8 : i32
    scf.if %11 {
      %c0_9 = arith.constant 0 : index
      %c0_10 = arith.constant 0 : index
      %12 = vector.load %arg9[%c0_9, %c0_10] : memref<32x128xf32, #tpu.memory_space<vmem>>, vector<32x128xf32>
      %c0_11 = arith.constant 0 : index
      %c0_12 = arith.constant 0 : index
      %13 = vector.load %arg4[%c0_11, %c0_12] : memref<1x128xf32, #tpu.memory_space<vmem>>, vector<1x128xf32>
      %14 = vector.broadcast %13 : vector<1x128xf32> to vector<32x128xf32>
      %15 = arith.addf %12, %14 : vector<32x128xf32>
      %c0_13 = arith.constant 0 : index
      %c0_14 = arith.constant 0 : index
      %16 = vector.load %arg5[%c0_13, %c0_14] : memref<32x128xf32, #tpu.memory_space<vmem>>, vector<32x128xf32>
      %17 = arith.addf %15, %16 : vector<32x128xf32>
      %cst_15 = arith.constant dense<0.000000e+00> : vector<32xf32>
      %18 = vector.multi_reduction <add>, %17, %cst_15 [1] : vector<32x128xf32> to vector<32xf32>
      %19 = vector.shape_cast %18 : vector<32xf32> to vector<32x1xf32>
      %cst_16 = arith.constant 1.280000e+02 : f32
      %20 = vector.broadcast %cst_16 : f32 to vector<32x1xf32>
      %21 = arith.divf %19, %20 : vector<32x1xf32>
      %22 = vector.broadcast %21 : vector<32x1xf32> to vector<32x128xf32>
      %23 = arith.subf %17, %22 : vector<32x128xf32>
      %24 = arith.mulf %23, %23 : vector<32x128xf32>
      %cst_17 = arith.constant dense<0.000000e+00> : vector<32xf32>
      %25 = vector.multi_reduction <add>, %24, %cst_17 [1] : vector<32x128xf32> to vector<32xf32>
      %26 = vector.shape_cast %25 : vector<32xf32> to vector<32x1xf32>
      %cst_18 = arith.constant 1.280000e+02 : f32
      %27 = vector.broadcast %cst_18 : f32 to vector<32x1xf32>
      %28 = arith.divf %26, %27 : vector<32x1xf32>
      %29 = vector.broadcast %21 : vector<32x1xf32> to vector<32x128xf32>
      %30 = arith.subf %17, %29 : vector<32x128xf32>
      %cst_19 = arith.constant 9.99999974E-6 : f32
      %31 = vector.broadcast %cst_19 : f32 to vector<32x1xf32>
      %32 = arith.addf %28, %31 : vector<32x1xf32>
      %33 = math.rsqrt %32 : vector<32x1xf32>
      %34 = vector.broadcast %33 : vector<32x1xf32> to vector<32x128xf32>
      %35 = arith.mulf %30, %34 : vector<32x128xf32>
      %c0_20 = arith.constant 0 : index
      %c0_21 = arith.constant 0 : index
      %36 = vector.load %arg6[%c0_20, %c0_21] : memref<1x128xf32, #tpu.memory_space<vmem>>, vector<1x128xf32>
      %37 = vector.broadcast %36 : vector<1x128xf32> to vector<32x128xf32>
      %38 = arith.mulf %35, %37 : vector<32x128xf32>
      %c0_22 = arith.constant 0 : index
      %c0_23 = arith.constant 0 : index
      %39 = vector.load %arg7[%c0_22, %c0_23] : memref<1x128xf32, #tpu.memory_space<vmem>>, vector<1x128xf32>
      %40 = vector.broadcast %39 : vector<1x128xf32> to vector<32x128xf32>
      %41 = arith.addf %38, %40 : vector<32x128xf32>
      %c0_24 = arith.constant 0 : index
      %c0_25 = arith.constant 0 : index
      %42 = vector.load %arg8[%c0_24, %c0_25] : memref<32x128xf32, #tpu.memory_space<vmem>>, vector<32x128xf32>
      tpu.vector_store %arg8[%c0_24, %c0_25], %41 {strides = array<i32>} : memref<32x128xf32, #tpu.memory_space<vmem>>, vector<32x128xf32>,
    } else {
    }
    return
  }
  func.func @transform_0(%arg0: i32, %arg1: i32) -> (i32, i32) {
    %c0_i32 = arith.constant 0 : i32
    return %arg0, %arg1 : i32, i32
  }
  func.func @transform_1(%arg0: i32, %arg1: i32) -> (i32, i32) {
    %c0_i32 = arith.constant 0 : i32
    %c0_i32_0 = arith.constant 0 : i32
    return %arg1, %c0_i32 : i32, i32
  }
  func.func @transform_2(%arg0: i32, %arg1: i32) -> (i32, i32) {
    %c0_i32 = arith.constant 0 : i32
    %c0_i32_0 = arith.constant 0 : i32
    %c0_i32_1 = arith.constant 0 : i32
    return %c0_i32, %c0_i32_0 : i32, i32
  }
  func.func @transform_3(%arg0: i32, %arg1: i32) -> (i32, i32) {
    %c0_i32 = arith.constant 0 : i32
    %c0_i32_0 = arith.constant 0 : i32
    return %arg0, %c0_i32 : i32, i32
  }
  func.func @transform_4(%arg0: i32, %arg1: i32) -> (i32, i32) {
    %c0_i32 = arith.constant 0 : i32
    %c0_i32_0 = arith.constant 0 : i32
    %c0_i32_1 = arith.constant 0 : i32
    return %c0_i32, %c0_i32_0 : i32, i32
  }
  func.func @transform_5(%arg0: i32, %arg1: i32) -> (i32, i32) {
    %c0_i32 = arith.constant 0 : i32
    %c0_i32_0 = arith.constant 0 : i32
    %c0_i32_1 = arith.constant 0 : i32
    return %c0_i32, %c0_i32_0 : i32, i32
  }
  func.func @transform_6(%arg0: i32, %arg1: i32) -> (i32, i32) {
    %c0_i32 = arith.constant 0 : i32
    %c0_i32_0 = arith.constant 0 : i32
    return %arg0, %c0_i32 : i32, i32
  }
}

module attributes {stable_mosaic.version = 11 : i64} {
  func.func @_ln_kernel(%arg0: i32, %arg1: memref<32x128xf32, #tpu.memory_space<vmem>>, %arg2: memref<1x128xf32, #tpu.memory_space<vmem>>, %arg3: memref<1x128xf32, #tpu.memory_space<vmem>>, %arg4: memref<32x128xbf16, #tpu.memory_space<vmem>>) attributes {dimension_semantics = [#tpu.dimension_semantics<parallel>], iteration_bounds = array<i64: 1>, scalar_prefetch = 0 : i64, scratch_operands = 0 : i64, tpu.core_type = #tpu.core_type<tc>, window_params = [{transform_indices = @transform_0, window_bounds = array<i64: 32, 128>}, {pipeline_mode = #tpu.pipeline_mode<synchronous>, transform_indices = @transform_1, window_bounds = array<i64: 1, 128>}, {pipeline_mode = #tpu.pipeline_mode<synchronous>, transform_indices = @transform_2, window_bounds = array<i64: 1, 128>}, {transform_indices = @transform_3, window_bounds = array<i64: 32, 128>}]} {
    %c0 = arith.constant 0 : index
    %c0_0 = arith.constant 0 : index
    %0 = vector.load %arg1[%c0, %c0_0] : memref<32x128xf32, #tpu.memory_space<vmem>>, vector<32x128xf32>
    %cst = arith.constant dense<0.000000e+00> : vector<32xf32>
    %1 = vector.multi_reduction <add>, %0, %cst [1] : vector<32x128xf32> to vector<32xf32>
    %2 = vector.shape_cast %1 : vector<32xf32> to vector<32x1xf32>
    %cst_1 = arith.constant 1.280000e+02 : f32
    %3 = vector.broadcast %cst_1 : f32 to vector<32x1xf32>
    %4 = arith.divf %2, %3 : vector<32x1xf32>
    %5 = vector.broadcast %4 : vector<32x1xf32> to vector<32x128xf32>
    %6 = arith.subf %0, %5 : vector<32x128xf32>
    %7 = arith.mulf %6, %6 : vector<32x128xf32>
    %cst_2 = arith.constant dense<0.000000e+00> : vector<32xf32>
    %8 = vector.multi_reduction <add>, %7, %cst_2 [1] : vector<32x128xf32> to vector<32xf32>
    %9 = vector.shape_cast %8 : vector<32xf32> to vector<32x1xf32>
    %cst_3 = arith.constant 1.280000e+02 : f32
    %10 = vector.broadcast %cst_3 : f32 to vector<32x1xf32>
    %11 = arith.divf %9, %10 : vector<32x1xf32>
    %12 = vector.broadcast %4 : vector<32x1xf32> to vector<32x128xf32>
    %13 = arith.subf %0, %12 : vector<32x128xf32>
    %cst_4 = arith.constant 9.99999974E-6 : f32
    %14 = vector.broadcast %cst_4 : f32 to vector<32x1xf32>
    %15 = arith.addf %11, %14 : vector<32x1xf32>
    %16 = math.rsqrt %15 : vector<32x1xf32>
    %17 = vector.broadcast %16 : vector<32x1xf32> to vector<32x128xf32>
    %18 = arith.mulf %13, %17 : vector<32x128xf32>
    %c0_5 = arith.constant 0 : index
    %c0_6 = arith.constant 0 : index
    %19 = vector.load %arg2[%c0_5, %c0_6] : memref<1x128xf32, #tpu.memory_space<vmem>>, vector<1x128xf32>
    %20 = vector.broadcast %19 : vector<1x128xf32> to vector<32x128xf32>
    %21 = arith.mulf %18, %20 : vector<32x128xf32>
    %c0_7 = arith.constant 0 : index
    %c0_8 = arith.constant 0 : index
    %22 = vector.load %arg3[%c0_7, %c0_8] : memref<1x128xf32, #tpu.memory_space<vmem>>, vector<1x128xf32>
    %23 = vector.broadcast %22 : vector<1x128xf32> to vector<32x128xf32>
    %24 = arith.addf %21, %23 : vector<32x128xf32>
    %25 = arith.truncf %24 : vector<32x128xf32> to vector<32x128xbf16>
    %c0_9 = arith.constant 0 : index
    %c0_10 = arith.constant 0 : index
    %26 = vector.load %arg4[%c0_9, %c0_10] : memref<32x128xbf16, #tpu.memory_space<vmem>>, vector<32x128xbf16>
    tpu.vector_store %arg4[%c0_9, %c0_10], %25 {strides = array<i32>} : memref<32x128xbf16, #tpu.memory_space<vmem>>, vector<32x128xbf16>,
    return
  }
  func.func @transform_0(%arg0: i32) -> (i32, i32) {
    %c0_i32 = arith.constant 0 : i32
    %c0_i32_0 = arith.constant 0 : i32
    return %arg0, %c0_i32 : i32, i32
  }
  func.func @transform_1(%arg0: i32) -> (i32, i32) {
    %c0_i32 = arith.constant 0 : i32
    %c0_i32_0 = arith.constant 0 : i32
    %c0_i32_1 = arith.constant 0 : i32
    return %c0_i32, %c0_i32_0 : i32, i32
  }
  func.func @transform_2(%arg0: i32) -> (i32, i32) {
    %c0_i32 = arith.constant 0 : i32
    %c0_i32_0 = arith.constant 0 : i32
    %c0_i32_1 = arith.constant 0 : i32
    return %c0_i32, %c0_i32_0 : i32, i32
  }
  func.func @transform_3(%arg0: i32) -> (i32, i32) {
    %c0_i32 = arith.constant 0 : i32
    %c0_i32_0 = arith.constant 0 : i32
    return %arg0, %c0_i32 : i32, i32
  }
}

module attributes {stable_mosaic.version = 11 : i64} {
  func.func @_tied_logits_kernel(%arg0: i32, %arg1: i32, %arg2: i32, %arg3: memref<32x128xbf16, #tpu.memory_space<vmem>>, %arg4: memref<256x128xbf16, #tpu.memory_space<vmem>>, %arg5: memref<32x256xf32, #tpu.memory_space<vmem>>, %arg6: memref<32x256xf32, #tpu.memory_space<vmem>>) attributes {dimension_semantics = [#tpu.dimension_semantics<parallel>, #tpu.dimension_semantics<parallel>, #tpu.dimension_semantics<arbitrary>], iteration_bounds = array<i64: 1, 1, 1>, scalar_prefetch = 0 : i64, scratch_operands = 1 : i64, tpu.core_type = #tpu.core_type<tc>, window_params = [{transform_indices = @transform_0, window_bounds = array<i64: 32, 128>}, {transform_indices = @transform_1, window_bounds = array<i64: 256, 128>}, {transform_indices = @transform_2, window_bounds = array<i64: 32, 256>}]} {
    %c0_i32 = arith.constant 0 : i32
    %0 = arith.cmpi eq, %arg2, %c0_i32 : i32
    %1 = arith.extui %0 : i1 to i32
    %c0_i32_0 = arith.constant 0 : i32
    %2 = arith.cmpi ne, %1, %c0_i32_0 : i32
    scf.if %2 {
      %cst_10 = arith.constant 0.000000e+00 : f32
      %12 = vector.broadcast %cst_10 : f32 to vector<32x256xf32>
      %c0_11 = arith.constant 0 : index
      %c0_12 = arith.constant 0 : index
      %13 = vector.load %arg6[%c0_11, %c0_12] : memref<32x256xf32, #tpu.memory_space<vmem>>, vector<32x256xf32>
      tpu.vector_store %arg6[%c0_11, %c0_12], %12 {strides = array<i32>} : memref<32x256xf32, #tpu.memory_space<vmem>>, vector<32x256xf32>,
    } else {
    }
    %c0 = arith.constant 0 : index
    %c0_1 = arith.constant 0 : index
    %3 = vector.load %arg6[%c0, %c0_1] : memref<32x256xf32, #tpu.memory_space<vmem>>, vector<32x256xf32>
    %c0_2 = arith.constant 0 : index
    %c0_3 = arith.constant 0 : index
    %4 = vector.load %arg3[%c0_2, %c0_3] : memref<32x128xbf16, #tpu.memory_space<vmem>>, vector<32x128xbf16>
    %c0_4 = arith.constant 0 : index
    %c0_5 = arith.constant 0 : index
    %5 = vector.load %arg4[%c0_4, %c0_5] : memref<256x128xbf16, #tpu.memory_space<vmem>>, vector<256x128xbf16>
    %cst = arith.constant dense<0.000000e+00> : vector<32x256xf32>
    %6 = tpu.matmul %4, %5, %cst {dimension_numbers = #tpu.dot_dimension_numbers<[1], [1], [0], [0], [0, 0, 1, 0], [], []>} : vector<32x128xbf16>, vector<256x128xbf16>, vector<32x256xf32> -> vector<32x256xf32>
    %7 = arith.addf %3, %6 : vector<32x256xf32>
    %c0_6 = arith.constant 0 : index
    %c0_7 = arith.constant 0 : index
    %8 = vector.load %arg6[%c0_6, %c0_7] : memref<32x256xf32, #tpu.memory_space<vmem>>, vector<32x256xf32>
    tpu.vector_store %arg6[%c0_6, %c0_7], %7 {strides = array<i32>} : memref<32x256xf32, #tpu.memory_space<vmem>>, vector<32x256xf32>,
    %c0_i32_8 = arith.constant 0 : i32
    %9 = arith.cmpi eq, %arg2, %c0_i32_8 : i32
    %10 = arith.extui %9 : i1 to i32
    %c0_i32_9 = arith.constant 0 : i32
    %11 = arith.cmpi ne, %10, %c0_i32_9 : i32
    scf.if %11 {
      %c0_10 = arith.constant 0 : index
      %c0_11 = arith.constant 0 : index
      %12 = vector.load %arg6[%c0_10, %c0_11] : memref<32x256xf32, #tpu.memory_space<vmem>>, vector<32x256xf32>
      %c0_12 = arith.constant 0 : index
      %c0_13 = arith.constant 0 : index
      %13 = vector.load %arg5[%c0_12, %c0_13] : memref<32x256xf32, #tpu.memory_space<vmem>>, vector<32x256xf32>
      tpu.vector_store %arg5[%c0_12, %c0_13], %12 {strides = array<i32>} : memref<32x256xf32, #tpu.memory_space<vmem>>, vector<32x256xf32>,
    } else {
    }
    return
  }
  func.func @transform_0(%arg0: i32, %arg1: i32, %arg2: i32) -> (i32, i32) {
    %c0_i32 = arith.constant 0 : i32
    return %arg0, %arg2 : i32, i32
  }
  func.func @transform_1(%arg0: i32, %arg1: i32, %arg2: i32) -> (i32, i32) {
    %c0_i32 = arith.constant 0 : i32
    return %arg1, %arg2 : i32, i32
  }
  func.func @transform_2(%arg0: i32, %arg1: i32, %arg2: i32) -> (i32, i32) {
    %c0_i32 = arith.constant 0 : i32
    return %arg0, %arg1 : i32, i32
  }
}

</mosaic_0001>

<bundles_post_ra>
// kernel: transformer_forward.13
= control target key start
LH: loop header
LB: loop body
LE: loop exit
PB: predicated region body
PF: predicated region fallthrough
CT: control target
= control target key end

     0   :  { %s780_s12 = smov 0   ;;  %s782_s13 = smov 0   ;;  %s844_s0 = inlined_call_operand.vmem [shape: bf16[4,16,64], index: 0, kind: input, shape index: {}]   ;;  %s845_s1 = inlined_call_operand.vmem [shape: bf16[4,16,64], index: 1, kind: input, shape index: {}]   ;;  %s846_s2 = inlined_call_operand.vmem [shape: bf16[4,16,64], index: 2, kind: input, shape index: {}]   ;;  %s847_s3 = inlined_call_operand.vmem [shape: bf16[4,16,64], index: 3, kind: output, shape index: {}]  }
   0x1   :  { %s784_s14 = smov 0  }
   0x2 LB: > { %s32_s15 = sadd.s32 1, %s750_s13  ;;  %p647_p0 = scmp.ge.s32.totalorder %s754_s14, 1  ;;  %s754_s14 = sphi %s784_s14, %s13_s14   ;;  %s750_s13 = sphi %s782_s13, %s849_s13   ;;  %s746_s12 = sphi %s780_s12, %s848_s12  }
   0x3   : > { %p34_p1 = scmp.ge.s32.totalorder %s32_s15, 4  ;;  %p199_p2 = scmp.lt.s32.totalorder %s754_s14, 5 }
   0x5   : > { %s851_s15 = smov (%p34_p1, %s32_s15), 0  ;;  %p200_p3 = pnand %p647_p0, %p199_p2 }
   0x6   : > { %p250_p4 = scmp.lt.s32.totalorder (!%p200_p3), %s746_s12, 3  ;;  %vm299_vm0 = vcmask (!%p200_p3), 523264   ;;  %v756_v0 = vmov (!%p200_p3), 0.0   ;;  %vm757_vm1 = vmmov (!%p200_p3), 0   ;;  %vm294_vm2 = vcmask (!%p200_p3), 7168  }
   0x7   : > { %203 = sbr.rel (%p200_p3) target bundleno = 827 (0x33b), region = 32  ;;  %675 = vmatprep.subr.bf16.mxu0 (!%p200_p3), %v756_v0  ;;  %300 = vst.msk [vmem:[#allocation4] sm:$0xff] (!%p200_p3), %vm299_vm0, %v756_v0  ;;  %301 = vst.msk [vmem:[#allocation4 + $0x8] sm:$0xff] (!%p200_p3), %vm299_vm0, %v756_v0  ;;  %677 = vmatprep.mubr.msk.bf16.mxu0 (!%p200_p3), %vm757_vm1, %v756_v0  ;;  %v758_v4 = vmov (!%p200_p3), -inf   ;;  %vm366_vm3 = vcmask (!%p200_p3), 130048   ;;  %v759_v11 = vmov (!%p200_p3), 0  }
   0x8   : > { %681 = vmatprep.subr.bf16.mxu1 (!%p200_p3), %v756_v0  ;;  %683 = vmatprep.mubr.msk.bf16.mxu1 (!%p200_p3), %vm757_vm1, %v756_v0  ;;  %295 = vst.msk [vmem:[#allocation2] sm:$0xff] (!%p200_p3), %vm294_vm2, %v758_v4  ;;  %296 = vst.msk [vmem:[#allocation2 + $0x8] sm:$0xff] (!%p200_p3), %vm294_vm2, %v758_v4  ;;  %vm514_vm4 = vcmask (!%p200_p3), 519168  }
   0x9   : > { %297 = vst.msk [vmem:[#allocation3] sm:$0xff] (!%p200_p3), %vm294_vm2, %v756_v0  ;;  %298 = vst.msk [vmem:[#allocation3 + $0x8] sm:$0xff] (!%p200_p3), %vm294_vm2, %v756_v0  ;;  %715 = vset.pattern.permute.xlu1 (!%p200_p3), %v759_v11  ;;  %716 = vset.pattern.permute.xlu0 (!%p200_p3), %v759_v11 }
   0xe   : > { %s853_s12 = smov (!%p250_p4, %s746_s12), 3  ;;  %v412_v48 = vld [vmem:[#allocation4] sm:$0xff]  ;;  %v413_v50 = vld [vmem:[#allocation4 + $0x8] sm:$0xff] }
   0xf   : > { %s800_s16 = sshll.u32 %s853_s12, 3  ;;  %v364_v12 = vld [vmem:[#allocation2] sm:$0xff]  ;;  %v365_v15 = vld [vmem:[#allocation2 + $0x8] sm:$0xff] }
  0x10   : > { %s267_s19 = scalar_lea.vmem %s845_s1, %s800_s16  ;;  %s257_s22 = scalar_lea.vmem %s844_s0, %s800_s16  ;;  %v397_v36 = vld [vmem:[#allocation3] sm:$0xff]  ;;  %v398_v39 = vld [vmem:[#allocation3 + $0x8] sm:$0xff] }
  0x11   : > { %v717_v1 = vld [vmem:[%s267_s19] sm:$0xff]   ;;  %s277_s25 = scalar_lea.vmem %s846_s2, %s800_s16  ;;  %s287_s28 = scalar_lea.vmem %s847_s3, %s800_s16 }
  0x12   : > { %v321_v2 = vsel %vm299_vm0, %v717_v1, 0  ;;  %v718_v3 = vld [vmem:[%s257_s22] sm:$0xff]  }
  0x13   : > { %676 = vmatpush3.bf16.xpose.msra.mxu0 %v321_v2  ;;  %v719_v20 = vld [vmem:[%s277_s25] sm:$0xff]  }
  0x14   : > { %682 = vmatpush3.bf16.msra.mxu1 %v719_v20 }
  0x1a   : > { %678 = vmatmul.mubr.msk.bf16.vlgmr.msra.gmra.mrb[0].mxu0 %vm299_vm0, %v718_v3 }
  0xed   : > { %v357_v5 = vpop.f32.mrb[0].mxu0 }
  0xee   : > { %v679_v6 = vpop.f32.mrb[1].mxu0  ;;  %v367_v7 = vsel %vm366_vm3, %v357_v5, -inf }
  0xef   : > { %368 = vmax.xlane.f32.xlu0 %v367_v7  ;;  %v360_v8 = vpop.f32.mrb[2].mxu0 }
  0xf0   : > { %v680_v9 = vpop.f32.mrb[3].mxu0  ;;  %v370_v10 = vsel %vm366_vm3, %v360_v8, -inf }
  0xf3   : > { %371 = vmax.xlane.f32.xlu0 %v370_v10 }
 0x17c   : > { %v369_v13 = vpop.xlane.xlu0 %368 }
 0x17d   : > { %v373_v14 = vmax.f32 %v364_v12, %v369_v13 }
 0x17f   : > { %v375_v16 = vsub.f32 %v364_v12, %v373_v14  ;;  %483 = vst.msk [vmem:[#allocation2] sm:$0xff] %vm294_vm2, %v373_v14  ;;  %383 = vperm.xlu1 %715, %v373_v14  }
 0x180   : > { %v372_v17 = vpop.xlane.xlu0 %371 }
 0x181   : > { %v374_v18 = vmax.f32 %v365_v15, %v372_v17  ;;  %v377_v33 = vmul.f32 1.442695, %v375_v16 }
 0x183   : > { %v376_v19 = vsub.f32 %v365_v15, %v374_v18  ;;  %484 = vst.msk [vmem:[#allocation2 + $0x8] sm:$0xff] %vm294_vm2, %v374_v18  ;;  %388 = vperm.xlu1 %715, %v374_v18  }
 0x185   : > { %v379_v32 = vmul.f32 1.442695, %v376_v19 }
 0x1fe   : > { %v384_v21 = vpop.permute.xlu1 %383 }
 0x1ff   : > { %v391_v22 = vsub.f32 %v357_v5, %v384_v21 }
 0x201   : > { %v393_v23 = vmul.f32 1.442695, %v391_v22 }
 0x202   : > { %v389_v24 = vpop.permute.xlu1 %388 }
 0x203   : > { %720 = vpow2.f32 %v393_v23  ;;  %v392_v25 = vsub.f32 %v360_v8, %v389_v24 }
 0x205   : > { %v395_v26 = vmul.f32 1.442695, %v392_v25 }
 0x207   : > { %722 = vpow2.f32 %v395_v26 }
 0x208   : > { %724 = vpow2.f32 %v379_v32 }
 0x209   : > { %726 = vpow2.f32 %v377_v33 }
 0x20d   : > { %v721_v27 = vpop.eup %720 }
 0x20e   : > { %v401_v28 = vsel %vm366_vm3, %v721_v27, 0.0 }
 0x20f   : > { %402 = vadd.xlane.f32.xlu0 %v401_v28 }
 0x211   : > { %v723_v29 = vpop.eup %722 }
 0x212   : > { %v404_v30 = vsel %vm366_vm3, %v723_v29, 0.0  ;;  %v426_v31 = vpack.c.bf16 %v723_v29, %v721_v27  ;;  %v725_v34 = vpop.eup %724 }
 0x213   : > { %405 = vadd.xlane.f32.xlu1 %v404_v30  ;;  %v727_v35 = vpop.eup %726  ;;  %v400_v41 = vmul.f32 %v725_v34, %v398_v39 }
 0x214   : > { %684 = vmatmul.mubr.msk.bf16.vlgmr.msra.gmra.mrb[0].mxu1 %vm366_vm3, %v426_v31  ;;  %v399_v37 = vmul.f32 %v727_v35, %v397_v36 }
 0x224   : > { %421 = vperm.xlu1 %715, %v725_v34  }
 0x225   : > { %416 = vperm.xlu0 %716, %v727_v35  }
 0x29c   : > { %v403_v38 = vpop.xlane.xlu0 %402 }
 0x29d   : > { %v407_v40 = vadd.f32 %v403_v38, %v399_v37 }
 0x29f   : > { %410 = vst.msk [vmem:[#allocation3] sm:$0xff] %vm294_vm2, %v407_v40 }
 0x2a0   : > { %v406_v42 = vpop.xlane.xlu1 %405 }
 0x2a1   : > { %v408_v43 = vadd.f32 %v406_v42, %v400_v41 }
 0x2a3   : > { %411 = vst.msk [vmem:[#allocation3 + $0x8] sm:$0xff] %vm294_vm2, %v408_v43 }
 0x2a4   : > { %v417_v49 = vpop.permute.xlu0 %416  ;;  %v422_v51 = vpop.permute.xlu1 %421 }
 0x2a5   : > { %v424_v52 = vmul.f32 %v417_v49, %v412_v48  ;;  %v425_v54 = vmul.f32 %v422_v51, %v413_v50 }
 0x2a6   : > { %v488_v44 = vld [vmem:[#allocation3] sm:$0xff] }
 0x2a7   : > { %728 = vrcp.f32 %v488_v44 }
 0x2aa   : > { %v489_v45 = vld [vmem:[#allocation3 + $0x8] sm:$0xff] }
 0x2ab   : > { %730 = vrcp.f32 %v489_v45 }
 0x2b1   : > { %v729_v46 = vpop.eup %728 }
 0x2b2   : > { %496 = vperm.xlu0 %716, %v729_v46  }
 0x2b5   : > { %v731_v47 = vpop.eup %730 }
 0x2b6   : > { %501 = vperm.xlu0 %716, %v731_v47  }
 0x2e7   : > { %v472_v53 = vpop.f32.mrb[0].mxu1 }
 0x2e8   : > { %v479_v55 = vadd.f32 %v472_v53, %v424_v52  ;;  %v685_v56 = vpop.f32.mrb[1].mxu1 }
 0x2e9   : > { %v475_v57 = vpop.f32.mrb[2].mxu1 }
 0x2ea   : > { %481 = vst.msk [vmem:[#allocation4] sm:$0xff] %vm299_vm0, %v479_v55  ;;  %v480_v58 = vadd.f32 %v475_v57, %v425_v54  ;;  %v686_v59 = vpop.f32.mrb[3].mxu1 }
 0x2ec   : > { %482 = vst.msk [vmem:[#allocation4 + $0x8] sm:$0xff] %vm299_vm0, %v480_v58 }
 0x2f1   : > { %v492_v60 = vld [vmem:[#allocation4] sm:$0xff] }
 0x2f3   : > { %v493_v0 = vld [vmem:[#allocation4 + $0x8] sm:$0xff] }
 0x331   : > { %v497_v61 = vpop.permute.xlu0 %496 }
 0x332   : > { %v504_v62 = vmul.f32 %v497_v61, %v492_v60 }
 0x334   : > { %v669_v63 = vpack.c.bf16 %v504_v62, %v504_v62 }
 0x335   : > { %v502_v1 = vpop.permute.xlu0 %501 }
 0x336   : > { %515 = vst.msk [vmem:[%s287_s28] sm:$0xf] %vm514_vm4, %v669_v63  ;;  %v505_v2 = vmul.f32 %v502_v1, %v493_v0 }
 0x338   : > { %v670_v3 = vpack.c.bf16 %v505_v2, %v505_v2 }
 0x33a   : > { %516 = vst.msk [vmem:[%s287_s28 + $0x4] sm:$0xf] %vm514_vm4, %v670_v3 }
 0x33b PF: > { %s13_s14 = sadd.s32 1, %s754_s14   ;;  %s848_s12 = smov %s750_s13 }
 0x33c   : > { %p10_p5 = scmp.ge.s32.totalorder %s13_s14, 6   ;;  %s849_s13 = smov %s851_s15 }
 0x33e   :  { %12 = sbr.rel (!%p10_p5) target bundleno = 2 (0x2), region = 76 }

// kernel: transformer_forward.12
= control target key start
LH: loop header
LB: loop body
LE: loop exit
PB: predicated region body
PF: predicated region fallthrough
CT: control target
= control target key end

     0   :  { %v534_v1 = vmov 0   ;;  %v352_v31 = vlaneseq  ;;  %s668_s1 = inlined_call_operand.vmem [shape: bf16[128,384], index: 1, kind: input, shape index: {}]   ;;  %s669_s0 = inlined_call_operand.vmem [shape: f32[32,128], index: 0, kind: input, shape index: {}]   ;;  %s670_s2 = inlined_call_operand.vmem [shape: f32[1,384], index: 2, kind: input, shape index: {}]   ;;  %s671_s3 = inlined_call_operand.vmem [shape: bf16[32,384], index: 3, kind: output, shape index: {}]  }
   0x1   :  { %v502_v0 = vld [vmem:[%s668_s1 + $0x4] ss:$12 sps:$4 sm:$0xff]   ;;  %241 = vmatprep.mubr.bf16.mxu0 %v534_v1  ;;  %v504_v2 = vld [vmem:[%s668_s1] ss:$12 sps:$4 sm:$0xff]   ;;  %v505_v3 = vld [vmem:[%s668_s1 + $0x1c] ss:$12 sps:$4 sm:$0xff]  }
   0x2   :  { %209 = vmatprep.subr.bf16.mxu0 %v502_v0  ;;  %v507_v4 = vld [vmem:[%s668_s1 + $0x18] ss:$12 sps:$4 sm:$0xff]   ;;  %v508_v5 = vld [vmem:[%s668_s1 + $0x8] ss:$12 sps:$4 sm:$0xff]   ;;  %v512_v7 = vld [vmem:[%s668_s1 + $0x20] ss:$12 sps:$4 sm:$0xff]  }
   0x3   :  { %210 = vmatpush1.bf16.msra.mxu0 %v504_v2  ;;  %v509_v6 = vld [vmem:[%s668_s1 + $0x34] ss:$12 sps:$4 sm:$0xff]   ;;  %481 = vmatprep.subr.bf16.mxu1 %v508_v5  ;;  %v511_v8 = vld [vmem:[%s668_s1 + $0x30] ss:$12 sps:$4 sm:$0xff]   ;;  %v513_v9 = vld [vmem:[%s668_s1 + $0x4c] ss:$12 sps:$4 sm:$0xff]  }
   0x4   :  { %211 = vmatprep.subr.bf16.mxu0 %v505_v3  ;;  %482 = vmatpush3.bf16.msra.mxu1 %v508_v5  ;;  %v516_v10 = vld [vmem:[%s668_s1 + $0x38] ss:$12 sps:$4 sm:$0xff]   ;;  %v515_v11 = vld [vmem:[%s668_s1 + $0x48] ss:$12 sps:$4 sm:$0xff]   ;;  %v520_v12 = vld [vmem:[%s668_s1 + $0x50] ss:$12 sps:$4 sm:$0xff]  }
   0x5   :  { %483 = vmatprep.subr.bf16.mxu1 %v512_v7  ;;  %v517_v13 = vld [vmem:[%s668_s1 + $0x64] ss:$12 sps:$4 sm:$0xff]   ;;  %v519_v14 = vld [vmem:[%s668_s1 + $0x60] ss:$12 sps:$4 sm:$0xff]   ;;  %v524_v15 = vld [vmem:[%s668_s1 + $0x68] ss:$12 sps:$4 sm:$0xff]  }
   0x6   :  { %v521_v16 = vld [vmem:[%s668_s1 + $0x7c] ss:$12 sps:$4 sm:$0xff]   ;;  %v43_v17 = vld [vmem:[%s669_s0] sm:$0xff]  ;;  %v529_v25 = vld [vmem:[%s668_s1 + $0xac] ss:$12 sps:$4 sm:$0xff]   ;;  %v353_v32 = vshrl.u32 %v352_v31, 7 }
   0x7   :  { %212 = vmatpush1.bf16.msra.mxu0 %v507_v4  ;;  %v44_v18 = vld [vmem:[%s669_s0 + $0x8] sm:$0xff]  ;;  %v523_v19 = vld [vmem:[%s668_s1 + $0x78] ss:$12 sps:$4 sm:$0xff]   ;;  %v525_v22 = vld [vmem:[%s668_s1 + $0x94] ss:$12 sps:$4 sm:$0xff]  }
   0x8   :  { %213 = vmatprep.subr.bf16.mxu0 %v509_v6  ;;  %484 = vmatpush3.bf16.msra.mxu1 %v512_v7  ;;  %v528_v20 = vld [vmem:[%s668_s1 + $0x80] ss:$12 sps:$4 sm:$0xff]   ;;  %v47_v21 = vpack.c.bf16 %v44_v18, %v43_v17  ;;  %v527_v23 = vld [vmem:[%s668_s1 + $0x90] ss:$12 sps:$4 sm:$0xff]   ;;  %v532_v24 = vld [vmem:[%s668_s1 + $0x98] ss:$12 sps:$4 sm:$0xff]  }
   0x9   :  { %485 = vmatprep.subr.bf16.mxu1 %v516_v10  ;;  %v531_v26 = vld [vmem:[%s668_s1 + $0xa8] ss:$12 sps:$4 sm:$0xff]   ;;  %v533_v27 = vld [vmem:[%s668_s1 + $0xb0] ss:$12 sps:$4 sm:$0xff]   ;;  %v354_v33 = vsub.s32 0, %v353_v32  ;;  %v358_v35 = vsub.s32 1, %v353_v32 }
   0xa   :  { %497 = vmatprep.mubr.bf16.mxu1 %v47_v21  ;;  %v45_v28 = vld [vmem:[%s669_s0 + $0x10] sm:$0xff]  ;;  %v46_v29 = vld [vmem:[%s669_s0 + $0x18] sm:$0xff]  ;;  %v350_v34 = vld [vmem:[%s670_s2] sm:$0x7]  ;;  %v362_v36 = vsub.s32 2, %v353_v32 }
   0xb   :  { %214 = vmatpush1.bf16.msra.mxu0 %v511_v8  ;;  %v48_v30 = vpack.c.bf16 %v46_v29, %v45_v28  ;;  %v355_v37 = vrot.slane %v350_v34, %v354_v33  ;;  %v359_v38 = vrot.slane %v350_v34, %v358_v35 }
   0xc   :  { %215 = vmatprep.subr.bf16.mxu0 %v513_v9  ;;  %486 = vmatpush3.bf16.msra.mxu1 %v516_v10  ;;  %v363_v40 = vrot.slane %v350_v34, %v362_v36 }
   0xd   :  { %487 = vmatprep.subr.bf16.mxu1 %v520_v12 }
   0xf   :  { %216 = vmatpush1.bf16.msra.mxu0 %v515_v11 }
  0x10   :  { %217 = vmatprep.subr.bf16.mxu0 %v517_v13  ;;  %488 = vmatpush3.bf16.msra.mxu1 %v520_v12 }
  0x11   :  { %489 = vmatprep.subr.bf16.mxu1 %v524_v15 }
  0x13   :  { %218 = vmatpush1.bf16.msra.mxu0 %v519_v14 }
  0x14   :  { %219 = vmatprep.subr.bf16.mxu0 %v521_v16  ;;  %490 = vmatpush3.bf16.msra.mxu1 %v524_v15 }
  0x15   :  { %491 = vmatprep.subr.bf16.mxu1 %v528_v20 }
  0x17   :  { %220 = vmatpush1.bf16.msra.mxu0 %v523_v19 }
  0x18   :  { %221 = vmatprep.subr.bf16.mxu0 %v525_v22  ;;  %492 = vmatpush3.bf16.msra.mxu1 %v528_v20 }
  0x19   :  { %493 = vmatprep.subr.bf16.mxu1 %v532_v24 }
  0x1b   :  { %222 = vmatpush1.bf16.msra.mxu0 %v527_v23 }
  0x1c   :  { %223 = vmatprep.subr.bf16.mxu0 %v529_v25  ;;  %494 = vmatpush3.bf16.msra.mxu1 %v532_v24 }
  0x1d   :  { %495 = vmatprep.subr.bf16.mxu1 %v533_v27 }
  0x1f   :  { %224 = vmatpush1.bf16.msra.mxu0 %v531_v26 }
  0x20   :  { %496 = vmatpush3.bf16.msra.mxu1 %v533_v27 }
  0x22   :  { %242 = vmatmul.mubr.bf16.vlgmr.msra.gmra.mrb[0].mxu0 %v47_v21 }
  0x23   :  { %251 = vmatprep.mubr.bf16.mxu0 %v534_v1  ;;  %498 = vmatmul.mubr.bf16.vlgmr.msra.gmra.mrb[0].mxu1 %v48_v30 }
  0x2a   :  { %252 = vmatmul.mubr.bf16.gmra.mrb[4].mxu0 %v48_v30 }
  0xf5   :  { %v243_v39 = vpop.f32.mrb[0].mxu0 }
  0xf6   :  { %v367_v41 = vadd.f32 %v355_v37, %v243_v39  ;;  %v245_v42 = vpop.f32.mrb[1].mxu0  ;;  %v499_v47 = vpop.f32.mrb[0].mxu1 }
  0xf7   :  { %v368_v43 = vadd.f32 %v359_v38, %v245_v42  ;;  %v247_v44 = vpop.f32.mrb[2].mxu0  ;;  %v375_v50 = vadd.f32 %v499_v47, %v363_v40  ;;  %v296_v51 = vpop.f32.mrb[1].mxu1 }
  0xf8   :  { %v370_v45 = vadd.f32 %v355_v37, %v247_v44  ;;  %v249_v46 = vpop.f32.mrb[3].mxu0  ;;  %v369_v52 = vadd.f32 %v363_v40, %v296_v51  ;;  %v500_v53 = vpop.f32.mrb[2].mxu1 }
  0xf9   :  { %v463_v48 = vpack.c.bf16 %v368_v43, %v367_v41  ;;  %v371_v49 = vadd.f32 %v359_v38, %v249_v46  ;;  %v468_v55 = vpack.c.bf16 %v375_v50, %v375_v50  ;;  %v378_v56 = vadd.f32 %v500_v53, %v363_v40  ;;  %v299_v57 = vpop.f32.mrb[3].mxu1 }
  0xfa   :  { %v464_v58 = vpack.c.bf16 %v369_v52, %v369_v52  ;;  %v372_v59 = vadd.f32 %v363_v40, %v299_v57 }
  0xfb   :  { %419 = vst [vmem:[%s671_s3] sm:$0xff] %v463_v48  ;;  %v465_v54 = vpack.c.bf16 %v371_v49, %v370_v45  ;;  %424 = vst [vmem:[%s671_s3 + $0x20] sm:$0xf] %v468_v55  ;;  %v470_v60 = vpack.c.bf16 %v378_v56, %v378_v56 }
  0xfc   :  { %420 = vst [vmem:[%s671_s3 + $0x8] sm:$0xf] %v464_v58  ;;  %v466_v63 = vpack.c.bf16 %v372_v59, %v372_v59 }
  0xfd   :  { %421 = vst [vmem:[%s671_s3 + $0xc] sm:$0xff] %v465_v54  ;;  %v253_v61 = vpop.f32.mrb[4].mxu0  ;;  %426 = vst [vmem:[%s671_s3 + $0x2c] sm:$0xf] %v470_v60 }
  0xfe   :  { %v373_v62 = vadd.f32 %v355_v37, %v253_v61  ;;  %v255_v0 = vpop.f32.mrb[5].mxu0  ;;  %422 = vst [vmem:[%s671_s3 + $0x14] sm:$0xf] %v466_v63 }
  0xff   :  { %v374_v1 = vadd.f32 %v359_v38, %v255_v0  ;;  %v257_v2 = vpop.f32.mrb[6].mxu0 }
 0x100   :  { %v376_v3 = vadd.f32 %v355_v37, %v257_v2  ;;  %v259_v4 = vpop.f32.mrb[7].mxu0 }
 0x101   :  { %v467_v5 = vpack.c.bf16 %v374_v1, %v373_v62  ;;  %v377_v6 = vadd.f32 %v359_v38, %v259_v4 }
 0x103   :  { %423 = vst [vmem:[%s671_s3 + $0x18] sm:$0xff] %v467_v5  ;;  %v469_v7 = vpack.c.bf16 %v377_v6, %v376_v3 }
 0x105   :  { %425 = vst [vmem:[%s671_s3 + $0x24] sm:$0xff] %v469_v7 }

// kernel: transformer_forward.14
= control target key start
LH: loop header
LB: loop body
LE: loop exit
PB: predicated region body
PF: predicated region fallthrough
CT: control target
= control target key end

     0   :  { %s433_s1 = inlined_call_operand.vmem [shape: bf16[128,128], index: 1, kind: input, shape index: {}]   ;;  %s434_s0 = inlined_call_operand.vmem [shape: bf16[32,128], index: 0, kind: input, shape index: {}]   ;;  %s435_s2 = inlined_call_operand.vmem [shape: f32[1,128], index: 2, kind: input, shape index: {}]   ;;  %s436_s3 = inlined_call_operand.vmem [shape: f32[32,128], index: 3, kind: input, shape index: {}]   ;;  %s437_s4 = inlined_call_operand.vmem [shape: f32[1,128], index: 4, kind: input, shape index: {}]   ;;  %s438_s5 = inlined_call_operand.vmem [shape: f32[1,128], index: 5, kind: input, shape index: {}]   ;;  %s439_s6 = inlined_call_operand.vmem [shape: f32[32,128], index: 6, kind: output, shape index: {}]  }
   0x1   :  { %v317_v0 = vld [vmem:[%s433_s1] sm:$0xff]   ;;  %v318_v1 = vld [vmem:[%s433_s1 + $0x8] sm:$0xff]   ;;  %v319_v2 = vld [vmem:[%s433_s1 + $0x10] sm:$0xff]  }
   0x2   :  { %297 = vmatprep.subr.bf16.mxu0 %v317_v0  ;;  %v320_v3 = vld [vmem:[%s433_s1 + $0x18] sm:$0xff]   ;;  %v325_v4 = vld [vmem:[%s434_s0] sm:$0xff]   ;;  %v322_v6 = vld [vmem:[%s433_s1 + $0x28] sm:$0xff]  }
   0x3   :  { %298 = vmatpush3.bf16.msra.mxu0 %v317_v0  ;;  %313 = vmatprep.mubr.bf16.mxu0 %v325_v4  ;;  %v321_v5 = vld [vmem:[%s433_s1 + $0x20] sm:$0xff]   ;;  %v323_v7 = vld [vmem:[%s433_s1 + $0x30] sm:$0xff]   ;;  %v324_v8 = vld [vmem:[%s433_s1 + $0x38] sm:$0xff]  }
   0x4   :  { %299 = vmatprep.subr.bf16.mxu0 %v318_v1  ;;  %v326_v9 = vld [vmem:[%s434_s0 + $0x8] sm:$0xff]   ;;  %v284_v10 = vld [vmem:[%s435_s2] ss:$0 sm:$0xff]  ;;  %v193_v12 = vld [vmem:[%s436_s3 + $0x10] sm:$0xff] }
   0x5   :  { %v191_v15 = vld [vmem:[%s436_s3] sm:$0xff]  ;;  %v194_v23 = vld [vmem:[%s436_s3 + $0x18] sm:$0xff]  ;;  %v192_v24 = vld [vmem:[%s436_s3 + $0x8] sm:$0xff] }
   0x6   :  { %v285_v56 = vld [vmem:[%s437_s4] ss:$0 sm:$0xff] }
   0x7   :  { %300 = vmatpush3.bf16.msra.mxu0 %v318_v1  ;;  %v286_v58 = vld [vmem:[%s438_s5] ss:$0 sm:$0xff] }
   0x8   :  { %301 = vmatprep.subr.bf16.mxu0 %v319_v2 }
   0xb   :  { %302 = vmatpush3.bf16.msra.mxu0 %v319_v2 }
   0xc   :  { %303 = vmatprep.subr.bf16.mxu0 %v320_v3 }
   0xf   :  { %304 = vmatpush3.bf16.msra.mxu0 %v320_v3 }
  0x10   :  { %305 = vmatprep.subr.bf16.mxu0 %v321_v5 }
  0x13   :  { %306 = vmatpush3.bf16.msra.mxu0 %v321_v5 }
  0x14   :  { %307 = vmatprep.subr.bf16.mxu0 %v322_v6 }
  0x17   :  { %308 = vmatpush3.bf16.msra.mxu0 %v322_v6 }
  0x18   :  { %309 = vmatprep.subr.bf16.mxu0 %v323_v7 }
  0x1b   :  { %310 = vmatpush3.bf16.msra.mxu0 %v323_v7 }
  0x1c   :  { %311 = vmatprep.subr.bf16.mxu0 %v324_v8 }
  0x1f   :  { %312 = vmatpush3.bf16.msra.mxu0 %v324_v8 }
  0x22   :  { %314 = vmatmul.mubr.bf16.vlgmr.msra.gmra.mrb[0].mxu0 %v326_v9 }
  0xf5   :  { %v315_v11 = vpop.f32.mrb[0].mxu0 }
  0xf6   :  { %v189_v13 = vadd.f32 %v315_v11, %v284_v10  ;;  %v150_v14 = vpop.f32.mrb[1].mxu0 }
  0xf7   :  { %v187_v16 = vadd.f32 %v284_v10, %v150_v14  ;;  %v316_v17 = vpop.f32.mrb[2].mxu0 }
  0xf8   :  { %v190_v18 = vadd.f32 %v316_v17, %v284_v10  ;;  %v153_v19 = vpop.f32.mrb[3].mxu0  ;;  %v197_v20 = vadd.f32 %v193_v12, %v189_v13 }
  0xf9   :  { %v188_v21 = vadd.f32 %v284_v10, %v153_v19  ;;  %v195_v22 = vadd.f32 %v191_v15, %v187_v16 }
  0xfa   :  { %203 = vadd.xlane.f32.xlu1 %v197_v20  ;;  %v198_v25 = vadd.f32 %v194_v23, %v190_v18 }
  0xfb   :  { %199 = vadd.xlane.f32.xlu0 %v195_v22  ;;  %v196_v26 = vadd.f32 %v192_v24, %v188_v21 }
  0xfe   :  { %205 = vadd.xlane.f32.xlu1 %v198_v25 }
  0xff   :  { %201 = vadd.xlane.f32.xlu0 %v196_v26 }
 0x187   :  { %v204_v27 = vpop.xlane.xlu1 %203 }
 0x188   :  { %v200_v28 = vpop.xlane.xlu0 %199  ;;  %v210_v29 = vmul.f32 0.0078125, %v204_v27 }
 0x189   :  { %v208_v30 = vmul.f32 0.0078125, %v200_v28 }
 0x18a   :  { %v214_v34 = vsub.f32 %v197_v20, %v210_v29 }
 0x18b   :  { %v212_v31 = vsub.f32 %v195_v22, %v208_v30  ;;  %v206_v32 = vpop.xlane.xlu1 %205 }
 0x18c   :  { %v202_v33 = vpop.xlane.xlu0 %201  ;;  %v211_v35 = vmul.f32 0.0078125, %v206_v32  ;;  %v218_v40 = vmul.f32 %v214_v34, %v214_v34 }
 0x18d   :  { %v209_v36 = vmul.f32 0.0078125, %v202_v33  ;;  %v216_v37 = vmul.f32 %v212_v31, %v212_v31 }
 0x18e   :  { %v215_v39 = vsub.f32 %v198_v25, %v211_v35 }
 0x18f   :  { %v213_v38 = vsub.f32 %v196_v26, %v209_v36  ;;  %220 = vadd.xlane.f32.xlu0 %v216_v37 }
 0x190   :  { %v219_v42 = vmul.f32 %v215_v39, %v215_v39 }
 0x191   :  { %v217_v41 = vmul.f32 %v213_v38, %v213_v38 }
 0x193   :  { %224 = vadd.xlane.f32.xlu0 %v218_v40  ;;  %222 = vadd.xlane.f32.xlu1 %v217_v41 }
 0x197   :  { %226 = vadd.xlane.f32.xlu1 %v219_v42 }
 0x21c   :  { %v221_v43 = vpop.xlane.xlu0 %220 }
 0x21d   :  { %v228_v44 = vmul.f32 0.0078125, %v221_v43 }
 0x21f   :  { %v232_v45 = vadd.f32 1e-05, %v228_v44 }
 0x220   :  { %v223_v46 = vpop.xlane.xlu1 %222  ;;  %v225_v47 = vpop.xlane.xlu0 %224 }
 0x221   :  { %327 = vrsqrt.f32 %v232_v45  ;;  %v229_v48 = vmul.f32 0.0078125, %v223_v46  ;;  %v230_v49 = vmul.f32 0.0078125, %v225_v47 }
 0x223   :  { %v233_v50 = vadd.f32 1e-05, %v229_v48  ;;  %v234_v51 = vadd.f32 1e-05, %v230_v49 }
 0x224   :  { %v227_v52 = vpop.xlane.xlu1 %226 }
 0x225   :  { %329 = vrsqrt.f32 %v233_v50  ;;  %v231_v53 = vmul.f32 0.0078125, %v227_v52 }
 0x226   :  { %331 = vrsqrt.f32 %v234_v51 }
 0x227   :  { %v235_v54 = vadd.f32 1e-05, %v231_v53 }
 0x229   :  { %333 = vrsqrt.f32 %v235_v54 }
 0x22b   :  { %v328_v55 = vpop.eup %327 }
 0x22c   :  { %v240_v57 = vmul.f32 %v328_v55, %v212_v31 }
 0x22e   :  { %v251_v59 = vmul.f32 %v285_v56, %v240_v57 }
 0x22f   :  { %v330_v60 = vpop.eup %329 }
 0x230   :  { %v332_v61 = vpop.eup %331  ;;  %v262_v62 = vadd.f32 %v286_v58, %v251_v59  ;;  %v241_v63 = vmul.f32 %v330_v60, %v213_v38 }
 0x231   :  { %v242_v0 = vmul.f32 %v332_v61, %v214_v34 }
 0x232   :  { %266 = vst [vmem:[%s439_s6] sm:$0xff] %v262_v62  ;;  %v252_v1 = vmul.f32 %v285_v56, %v241_v63 }
 0x233   :  { %v334_v2 = vpop.eup %333  ;;  %v253_v3 = vmul.f32 %v285_v56, %v242_v0 }
 0x234   :  { %v263_v4 = vadd.f32 %v286_v58, %v252_v1  ;;  %v243_v5 = vmul.f32 %v334_v2, %v215_v39 }
 0x235   :  { %v264_v6 = vadd.f32 %v286_v58, %v253_v3 }
 0x236   :  { %267 = vst [vmem:[%s439_s6 + $0x8] sm:$0xff] %v263_v4  ;;  %v254_v7 = vmul.f32 %v285_v56, %v243_v5 }
 0x237   :  { %268 = vst [vmem:[%s439_s6 + $0x10] sm:$0xff] %v264_v6 }
 0x238   :  { %v265_v8 = vadd.f32 %v286_v58, %v254_v7 }
 0x23a   :  { %269 = vst [vmem:[%s439_s6 + $0x18] sm:$0xff] %v265_v8 }

// kernel: transformer_forward.15
= control target key start
LH: loop header
LB: loop body
LE: loop exit
PB: predicated region body
PF: predicated region fallthrough
CT: control target
= control target key end

     0   :  { %v1129_v1 = vmov 0   ;;  %v408_v39 = vlaneseq  ;;  %s1685_s1 = inlined_call_operand.vmem [shape: bf16[128,512], index: 1, kind: input, shape index: {}]   ;;  %s1686_s0 = inlined_call_operand.vmem [shape: f32[32,128], index: 0, kind: input, shape index: {}]   ;;  %s1687_s2 = inlined_call_operand.vmem [shape: f32[1,512], index: 2, kind: input, shape index: {}]   ;;  %s1688_s3 = inlined_call_operand.vmem [shape: bf16[32,512], index: 3, kind: output, shape index: {}]  }
   0x1   :  { %v1049_v0 = vld [vmem:[%s1685_s1 + $0x4] ss:$16 sps:$4 sm:$0xff]   ;;  %281 = vmatprep.mubr.bf16.mxu0 %v1129_v1  ;;  %334 = vmatprep.mubr.bf16.mxu1 %v1129_v1  ;;  %v1051_v2 = vld [vmem:[%s1685_s1 + $0xc] ss:$16 sps:$4 sm:$0xff]   ;;  %v1053_v3 = vld [vmem:[%s1685_s1] ss:$16 sps:$4 sm:$0xff]  }
   0x2   :  { %249 = vmatprep.subr.bf16.mxu0 %v1049_v0  ;;  %v1054_v4 = vld [vmem:[%s1685_s1 + $0x8] ss:$16 sps:$4 sm:$0xff]   ;;  %302 = vmatprep.subr.bf16.mxu1 %v1051_v2  ;;  %v1055_v5 = vld [vmem:[%s1685_s1 + $0x24] ss:$16 sps:$4 sm:$0xff]   ;;  %v1057_v6 = vld [vmem:[%s1685_s1 + $0x2c] ss:$16 sps:$4 sm:$0xff]  }
   0x3   :  { %250 = vmatpush1.bf16.msra.mxu0 %v1053_v3  ;;  %303 = vmatpush1.bf16.msra.mxu1 %v1054_v4  ;;  %v1059_v7 = vld [vmem:[%s1685_s1 + $0x20] ss:$16 sps:$4 sm:$0xff]   ;;  %v1060_v8 = vld [vmem:[%s1685_s1 + $0x28] ss:$16 sps:$4 sm:$0xff]   ;;  %v1061_v9 = vld [vmem:[%s1685_s1 + $0x44] ss:$16 sps:$4 sm:$0xff]  }
   0x4   :  { %251 = vmatprep.subr.bf16.mxu0 %v1055_v5  ;;  %304 = vmatprep.subr.bf16.mxu1 %v1057_v6  ;;  %v1063_v10 = vld [vmem:[%s1685_s1 + $0x4c] ss:$16 sps:$4 sm:$0xff]   ;;  %v1065_v11 = vld [vmem:[%s1685_s1 + $0x40] ss:$16 sps:$4 sm:$0xff]   ;;  %v1066_v12 = vld [vmem:[%s1685_s1 + $0x48] ss:$16 sps:$4 sm:$0xff]  }
   0x5   :  { %v1067_v13 = vld [vmem:[%s1685_s1 + $0x64] ss:$16 sps:$4 sm:$0xff]   ;;  %v1069_v14 = vld [vmem:[%s1685_s1 + $0x6c] ss:$16 sps:$4 sm:$0xff]   ;;  %v1071_v15 = vld [vmem:[%s1685_s1 + $0x60] ss:$16 sps:$4 sm:$0xff]  }
   0x6   :  { %v1072_v16 = vld [vmem:[%s1685_s1 + $0x68] ss:$16 sps:$4 sm:$0xff]   ;;  %v1073_v17 = vld [vmem:[%s1685_s1 + $0x84] ss:$16 sps:$4 sm:$0xff]   ;;  %v1075_v18 = vld [vmem:[%s1685_s1 + $0x8c] ss:$16 sps:$4 sm:$0xff]  }
   0x7   :  { %252 = vmatpush1.bf16.msra.mxu0 %v1059_v7  ;;  %305 = vmatpush1.bf16.msra.mxu1 %v1060_v8  ;;  %v1077_v19 = vld [vmem:[%s1685_s1 + $0x80] ss:$16 sps:$4 sm:$0xff]   ;;  %v1078_v20 = vld [vmem:[%s1685_s1 + $0x88] ss:$16 sps:$4 sm:$0xff]   ;;  %v1079_v21 = vld [vmem:[%s1685_s1 + $0xa4] ss:$16 sps:$4 sm:$0xff]  }
   0x8   :  { %253 = vmatprep.subr.bf16.mxu0 %v1061_v9  ;;  %306 = vmatprep.subr.bf16.mxu1 %v1063_v10  ;;  %v1081_v22 = vld [vmem:[%s1685_s1 + $0xac] ss:$16 sps:$4 sm:$0xff]   ;;  %v1083_v23 = vld [vmem:[%s1685_s1 + $0xa0] ss:$16 sps:$4 sm:$0xff]   ;;  %v1084_v24 = vld [vmem:[%s1685_s1 + $0xa8] ss:$16 sps:$4 sm:$0xff]  }
   0x9   :  { %v1085_v25 = vld [vmem:[%s1685_s1 + $0xc4] ss:$16 sps:$4 sm:$0xff]   ;;  %v1087_v26 = vld [vmem:[%s1685_s1 + $0xcc] ss:$16 sps:$4 sm:$0xff]   ;;  %v1089_v27 = vld [vmem:[%s1685_s1 + $0xc0] ss:$16 sps:$4 sm:$0xff]  }
   0xa   :  { %v1090_v28 = vld [vmem:[%s1685_s1 + $0xc8] ss:$16 sps:$4 sm:$0xff]   ;;  %v1091_v29 = vld [vmem:[%s1685_s1 + $0xe4] ss:$16 sps:$4 sm:$0xff]   ;;  %v1093_v30 = vld [vmem:[%s1685_s1 + $0xec] ss:$16 sps:$4 sm:$0xff]  }
   0xb   :  { %254 = vmatpush1.bf16.msra.mxu0 %v1065_v11  ;;  %307 = vmatpush1.bf16.msra.mxu1 %v1066_v12  ;;  %v1095_v31 = vld [vmem:[%s1685_s1 + $0xe0] ss:$16 sps:$4 sm:$0xff]   ;;  %v1096_v32 = vld [vmem:[%s1685_s1 + $0xe8] ss:$16 sps:$4 sm:$0xff]   ;;  %v409_v40 = vshrl.u32 %v408_v39, 7 }
   0xc   :  { %255 = vmatprep.subr.bf16.mxu0 %v1067_v13  ;;  %308 = vmatprep.subr.bf16.mxu1 %v1069_v14  ;;  %v51_v33 = vld [vmem:[%s1686_s0] sm:$0xff]  ;;  %v52_v34 = vld [vmem:[%s1686_s0 + $0x8] sm:$0xff]  ;;  %v53_v36 = vld [vmem:[%s1686_s0 + $0x10] sm:$0xff] }
   0xd   :  { %v55_v35 = vpack.c.bf16 %v52_v34, %v51_v33  ;;  %v54_v37 = vld [vmem:[%s1686_s0 + $0x18] sm:$0xff]  ;;  %v410_v41 = vsub.s32 0, %v409_v40  ;;  %v418_v42 = vsub.s32 2, %v409_v40  ;;  %v406_v43 = vld [vmem:[%s1687_s2] sm:$0xf]  ;;  %v414_v44 = vsub.s32 1, %v409_v40 }
   0xe   :  { %v56_v38 = vpack.c.bf16 %v54_v37, %v53_v36  ;;  %v422_v45 = vsub.s32 3, %v409_v40 }
   0xf   :  { %256 = vmatpush1.bf16.msra.mxu0 %v1071_v15  ;;  %309 = vmatpush1.bf16.msra.mxu1 %v1072_v16  ;;  %v1265_v46 = vrot.slane %v406_v43, %v410_v41  ;;  %v1267_v47 = vrot.slane %v406_v43, %v418_v42  ;;  %v1269_v48 = vrot.slane %v406_v43, %v414_v44 }
  0x10   :  { %257 = vmatprep.subr.bf16.mxu0 %v1073_v17  ;;  %310 = vmatprep.subr.bf16.mxu1 %v1075_v18  ;;  %v1271_v49 = vrot.slane %v406_v43, %v422_v45 }
  0x13   :  { %258 = vmatpush1.bf16.msra.mxu0 %v1077_v19  ;;  %311 = vmatpush1.bf16.msra.mxu1 %v1078_v20 }
  0x14   :  { %259 = vmatprep.subr.bf16.mxu0 %v1079_v21  ;;  %312 = vmatprep.subr.bf16.mxu1 %v1081_v22 }
  0x17   :  { %260 = vmatpush1.bf16.msra.mxu0 %v1083_v23  ;;  %313 = vmatpush1.bf16.msra.mxu1 %v1084_v24 }
  0x18   :  { %261 = vmatprep.subr.bf16.mxu0 %v1085_v25  ;;  %314 = vmatprep.subr.bf16.mxu1 %v1087_v26 }
  0x1b   :  { %262 = vmatpush1.bf16.msra.mxu0 %v1089_v27  ;;  %315 = vmatpush1.bf16.msra.mxu1 %v1090_v28 }
  0x1c   :  { %263 = vmatprep.subr.bf16.mxu0 %v1091_v29  ;;  %316 = vmatprep.subr.bf16.mxu1 %v1093_v30 }
  0x1f   :  { %264 = vmatpush1.bf16.msra.mxu0 %v1095_v31  ;;  %317 = vmatpush1.bf16.msra.mxu1 %v1096_v32 }
  0x22   :  { %282 = vmatmul.mubr.bf16.vlgmr.msra.gmra.mrb[0].mxu0 %v55_v35  ;;  %335 = vmatmul.mubr.bf16.vlgmr.msra.gmra.mrb[0].mxu1 %v55_v35 }
  0x23   :  { %291 = vmatprep.mubr.bf16.mxu0 %v1129_v1  ;;  %344 = vmatprep.mubr.bf16.mxu1 %v1129_v1 }
  0x2a   :  { %292 = vmatmul.mubr.bf16.gmra.mrb[4].mxu0 %v56_v38  ;;  %345 = vmatmul.mubr.bf16.gmra.mrb[4].mxu1 %v56_v38 }
  0xf5   :  { %v283_v50 = vpop.f32.mrb[0].mxu0  ;;  %v336_v51 = vpop.f32.mrb[0].mxu1 }
  0xf6   :  { %v1274_v52 = vadd.f32 %v1265_v46, %v283_v50  ;;  %v1277_v53 = vadd.f32 %v1267_v47, %v336_v51  ;;  %v285_v54 = vpop.f32.mrb[1].mxu0  ;;  %v338_v55 = vpop.f32.mrb[1].mxu1 }
  0xf7   :  { %v1280_v56 = vadd.f32 %v1269_v48, %v285_v54  ;;  %v1283_v57 = vadd.f32 %v1271_v49, %v338_v55  ;;  %v287_v58 = vpop.f32.mrb[2].mxu0  ;;  %v340_v59 = vpop.f32.mrb[2].mxu1 }
  0xf8   :  { %v460_v60 = vmul.f32 0.70710677, %v1274_v52  ;;  %v462_v61 = vmul.f32 0.70710677, %v1277_v53  ;;  %v1293_v2 = vpop.f32.mrb[3].mxu0  ;;  %v1295_v3 = vpop.f32.mrb[3].mxu1  ;;  %v1351_v55 = vadd.f32 %v1265_v46, %v287_v58 }
  0xf9   :  { %v461_v62 = vmul.f32 0.70710677, %v1280_v56  ;;  %v463_v63 = vmul.f32 0.70710677, %v1283_v57 }
  0xfa   :  { %v1289_v0 = vclamps-f32 %v460_v60, 4.0  ;;  %v1291_v1 = vclamps-f32 %v462_v61, 4.0  ;;  %v1354_v60 = vadd.f32 %v1267_v47, %v340_v59 }
  0xfb   :  { %v1297_v4 = vclamps-f32 %v461_v62, 4.0  ;;  %v1299_v5 = vclamps-f32 %v463_v63, 4.0 }
  0xfc   :  { %v1303_v6 = vmul.f32 %v1289_v0, %v1289_v0  ;;  %v1307_v7 = vmul.f32 %v1291_v1, %v1291_v1 }
  0xfd   :  { %v1311_v8 = vmul.f32 %v1297_v4, %v1297_v4  ;;  %v1313_v9 = vpop.f32.mrb[4].mxu0  ;;  %v1315_v10 = vpop.f32.mrb[4].mxu1  ;;  %v1325_v17 = vmul.f32 %v1299_v5, %v1299_v5 }
  0xfe   :  { %v524_v11 = vmul.f32 0.00022905065, %v1303_v6  ;;  %v652_v12 = vmul.f32 -1.1791603e-07, %v1303_v6  ;;  %v526_v13 = vmul.f32 0.00022905065, %v1307_v7 }
  0xff   :  { %v654_v14 = vmul.f32 -1.1791603e-07, %v1307_v7  ;;  %v525_v15 = vmul.f32 0.00022905065, %v1311_v8  ;;  %v653_v16 = vmul.f32 -1.1791603e-07, %v1311_v8 }
 0x100   :  { %v540_v18 = vadd.f32 0.003408291, %v524_v11  ;;  %v668_v19 = vadd.f32 2.3547966e-05, %v652_v12  ;;  %v542_v20 = vadd.f32 0.003408291, %v526_v13 }
 0x101   :  { %v670_v21 = vadd.f32 2.3547966e-05, %v654_v14  ;;  %v541_v22 = vadd.f32 0.003408291, %v525_v15  ;;  %v669_v23 = vadd.f32 2.3547966e-05, %v653_v16 }
 0x102   :  { %v556_v24 = vmul.f32 %v540_v18, %v1303_v6  ;;  %v684_v25 = vmul.f32 %v668_v19, %v1303_v6  ;;  %v1329_v26 = vpop.f32.mrb[5].mxu0  ;;  %v1331_v27 = vpop.f32.mrb[5].mxu1  ;;  %v558_v28 = vmul.f32 %v542_v20, %v1307_v7  ;;  %v655_v31 = vmul.f32 -1.1791603e-07, %v1325_v17 }
 0x103   :  { %v686_v29 = vmul.f32 %v670_v21, %v1307_v7  ;;  %v685_v30 = vmul.f32 %v669_v23, %v1311_v8  ;;  %v1337_v32 = vpop.f32.mrb[6].mxu0  ;;  %v1339_v33 = vpop.f32.mrb[6].mxu1  ;;  %v527_v35 = vmul.f32 0.00022905065, %v1325_v17  ;;  %v557_v37 = vmul.f32 %v541_v22, %v1311_v8 }
 0x104   :  { %v700_v34 = vadd.f32 0.0010179626, %v684_v25  ;;  %v572_v39 = vadd.f32 0.050955694, %v556_v24  ;;  %v1344_v41 = vpop.f32.mrb[7].mxu0  ;;  %v1346_v42 = vpop.f32.mrb[7].mxu1 }
 0x105   :  { %v702_v36 = vadd.f32 0.0010179626, %v686_v29  ;;  %v701_v38 = vadd.f32 0.0010179626, %v685_v30  ;;  %v574_v43 = vadd.f32 0.050955694, %v558_v28  ;;  %v1376_v29 = vadd.f32 %v1269_v48, %v1293_v2 }
 0x106   :  { %v716_v40 = vmul.f32 %v700_v34, %v1303_v6  ;;  %v671_v50 = vadd.f32 2.3547966e-05, %v655_v31  ;;  %v543_v54 = vadd.f32 0.003408291, %v527_v35  ;;  %v573_v62 = vadd.f32 0.050955694, %v557_v37 }
 0x107   :  { %v718_v44 = vmul.f32 %v702_v36, %v1307_v7  ;;  %v717_v45 = vmul.f32 %v701_v38, %v1311_v8  ;;  %v1358_v12 = vmul.f32 0.5, %v1274_v52  ;;  %v588_v13 = vmul.f32 %v572_v39, %v1303_v6 }
 0x108   :  { %v732_v51 = vadd.f32 0.01407047, %v716_v40  ;;  %v687_v11 = vmul.f32 %v671_v50, %v1325_v17  ;;  %v1363_v15 = vmul.f32 0.5, %v1277_v53  ;;  %v590_v58 = vmul.f32 %v574_v43, %v1307_v7 }
 0x109   :  { %v734_v61 = vadd.f32 0.01407047, %v718_v44  ;;  %v733_v63 = vadd.f32 0.01407047, %v717_v45  ;;  %v559_v20 = vmul.f32 %v543_v54, %v1325_v17  ;;  %v464_v52 = vmul.f32 0.70710677, %v1351_v55 }
 0x10a   :  { %v748_v14 = vmul.f32 %v732_v51, %v1303_v6  ;;  %v703_v18 = vadd.f32 0.0010179626, %v687_v11  ;;  %v466_v21 = vmul.f32 0.70710677, %v1354_v60  ;;  %v589_v23 = vmul.f32 %v573_v62, %v1311_v8 }
 0x10b   :  { %v750_v59 = vmul.f32 %v734_v61, %v1307_v7  ;;  %v749_v16 = vmul.f32 %v733_v63, %v1311_v8  ;;  %v604_v25 = vadd.f32 0.18520832, %v588_v13  ;;  %v1380_v30 = vadd.f32 %v1271_v49, %v1295_v3 }
 0x10c   :  { %v764_v19 = vadd.f32 0.11098505, %v748_v14  ;;  %v719_v53 = vmul.f32 %v703_v18, %v1325_v17  ;;  %v606_v31 = vadd.f32 0.18520832, %v590_v58  ;;  %v575_v38 = vadd.f32 0.050955694, %v559_v20 }
 0x10d   :  { %v766_v22 = vadd.f32 0.11098505, %v750_v59  ;;  %v765_v24 = vadd.f32 0.11098505, %v749_v16  ;;  %v1384_v39 = vclamps-f32 %v464_v52, 4.0  ;;  %v1386_v40 = vclamps-f32 %v466_v21, 4.0 }
 0x10e   :  { %v780_v28 = vmul.f32 %v764_v19, %v1303_v6  ;;  %v735_v36 = vadd.f32 0.01407047, %v719_v53  ;;  %v605_v44 = vadd.f32 0.18520832, %v589_v23  ;;  %v620_v3 = vmul.f32 %v604_v25, %v1303_v6 }
 0x10f   :  { %v782_v34 = vmul.f32 %v766_v22, %v1307_v7  ;;  %v781_v35 = vmul.f32 %v765_v24, %v1311_v8  ;;  %v1393_v51 = vmul.f32 %v1384_v39, %v1384_v39  ;;  %v1397_v54 = vmul.f32 %v1386_v40, %v1386_v40 }
 0x110   :  { %v796_v37 = vadd.f32 0.49746925, %v780_v28  ;;  %v751_v45 = vmul.f32 %v735_v36, %v1325_v17  ;;  %v465_v11 = vmul.f32 0.70710677, %v1376_v29  ;;  %v622_v14 = vmul.f32 %v606_v31, %v1307_v7 }
 0x111   :  { %v798_v43 = vadd.f32 0.49746925, %v782_v34  ;;  %v797_v2 = vadd.f32 0.49746925, %v781_v35  ;;  %v656_v58 = vmul.f32 -1.1791603e-07, %v1393_v51  ;;  %v621_v20 = vmul.f32 %v605_v44, %v1311_v8 }
 0x112   :  { %v812_v50 = vmul.f32 %v796_v37, %v1303_v6  ;;  %v767_v63 = vadd.f32 0.11098505, %v751_v45  ;;  %v591_v6 = vmul.f32 %v575_v38, %v1325_v17  ;;  %v528_v19 = vmul.f32 0.00022905065, %v1393_v51 }
 0x113   :  { %v814_v61 = vmul.f32 %v798_v43, %v1307_v7  ;;  %v813_v62 = vmul.f32 %v797_v2, %v1311_v8  ;;  %v672_v52 = vadd.f32 2.3547966e-05, %v656_v58  ;;  %v658_v21 = vmul.f32 -1.1791603e-07, %v1397_v54 }
 0x114   :  { %v828_v13 = vadd.f32 1.0, %v812_v50  ;;  %v783_v18 = vmul.f32 %v767_v63, %v1325_v17  ;;  %v636_v22 = vadd.f32 1.1283791, %v620_v3  ;;  %v1409_v7 = vclamps-f32 %v465_v11, 4.0 }
 0x115   :  { %v830_v59 = vadd.f32 1.0, %v814_v61  ;;  %v829_v16 = vadd.f32 1.0, %v813_v62  ;;  %v607_v24 = vadd.f32 0.18520832, %v591_v6  ;;  %v688_v53 = vmul.f32 %v672_v52, %v1393_v51 }
 0x116   :  { %1097 = vrcp.f32 %v828_v13  ;;  %v799_v23 = vadd.f32 0.49746925, %v783_v18  ;;  %v674_v25 = vadd.f32 2.3547966e-05, %v658_v21  ;;  %v544_v31 = vadd.f32 0.003408291, %v528_v19 }
 0x117   :  { %1099 = vrcp.f32 %v830_v59  ;;  %v530_v34 = vmul.f32 0.00022905065, %v1397_v54  ;;  %v1416_v8 = vmul.f32 %v1409_v7, %v1409_v7  ;;  %v638_v35 = vadd.f32 1.1283791, %v622_v14 }
 0x118   :  { %1101 = vrcp.f32 %v829_v16  ;;  %v815_v28 = vmul.f32 %v799_v23, %v1325_v17  ;;  %v704_v36 = vadd.f32 0.0010179626, %v688_v53  ;;  %v690_v37 = vmul.f32 %v674_v25, %v1397_v54 }
 0x119   :  { %v467_v38 = vmul.f32 0.70710677, %v1380_v30  ;;  %v445_v43 = vmul.f32 0.5, %v1280_v56  ;;  %v637_v44 = vadd.f32 1.1283791, %v621_v20  ;;  %v623_v3 = vmul.f32 %v607_v24, %v1325_v17 }
 0x11a   :  { %v831_v2 = vadd.f32 1.0, %v815_v28  ;;  %v529_v45 = vmul.f32 0.00022905065, %v1416_v8  ;;  %v720_v50 = vmul.f32 %v704_v36, %v1393_v51  ;;  %v706_v61 = vadd.f32 0.0010179626, %v690_v37 }
 0x11b   :  { %v657_v62 = vmul.f32 -1.1791603e-07, %v1416_v8  ;;  %v560_v63 = vmul.f32 %v544_v31, %v1393_v51  ;;  %v546_v11 = vadd.f32 0.003408291, %v530_v34  ;;  %v1426_v13 = vclamps-f32 %v467_v38, 4.0 }
 0x11c   :  { %1103 = vrcp.f32 %v831_v2  ;;  %v447_v14 = vmul.f32 0.5, %v1283_v57  ;;  %v736_v56 = vadd.f32 0.01407047, %v720_v50  ;;  %v722_v6 = vmul.f32 %v706_v61, %v1397_v54 }
 0x11d   :  { %v673_v58 = vadd.f32 2.3547966e-05, %v657_v62  ;;  %v844_v59 = vmul.f32 %v1289_v0, %v636_v22  ;;  %v846_v17 = vmul.f32 %v1291_v1, %v638_v35  ;;  %v545_v16 = vadd.f32 0.003408291, %v529_v45 }
 0x11e   :  { %v1434_v18 = vadd.f32 %v1265_v46, %v1313_v9  ;;  %v639_v20 = vadd.f32 1.1283791, %v623_v3  ;;  %v752_v52 = vmul.f32 %v736_v56, %v1393_v51  ;;  %v738_v21 = vadd.f32 0.01407047, %v722_v6 }
 0x11f   :  { %v1439_v57 = vmul.f32 %v1426_v13, %v1426_v13  ;;  %v845_v0 = vmul.f32 %v1297_v4, %v637_v44  ;;  %v576_v22 = vadd.f32 0.050955694, %v560_v63  ;;  %v562_v1 = vmul.f32 %v546_v11, %v1397_v54 }
 0x120   :  { %v1098_v19 = vpop.eup %1097  ;;  %v768_v9 = vadd.f32 0.11098505, %v752_v52  ;;  %v754_v28 = vmul.f32 %v738_v21, %v1397_v54  ;;  %v689_v31 = vmul.f32 %v673_v58, %v1416_v8  ;;  %v561_v36 = vmul.f32 %v545_v16, %v1416_v8 }
 0x121   :  { %v1100_v23 = vpop.eup %1099  ;;  %v861_v24 = vmul.f32 %v1098_v19, %v844_v59  ;;  %v1448_v37 = vadd.f32 %v1267_v47, %v1315_v10  ;;  %v847_v4 = vmul.f32 %v1299_v5, %v639_v20  ;;  %v531_v2 = vmul.f32 0.00022905065, %v1439_v57 }
 0x122   :  { %v1102_v53 = vpop.eup %1101  ;;  %v865_v25 = vmul.f32 %v1100_v23, %v846_v17  ;;  %v784_v38 = vmul.f32 %v768_v9, %v1393_v51  ;;  %v770_v44 = vadd.f32 0.11098505, %v754_v28  ;;  %v592_v50 = vmul.f32 %v576_v22, %v1393_v51 }
 0x123   :  { %v892_v34 = vadd.f32 1.0, %v861_v24  ;;  %v863_v35 = vmul.f32 %v1102_v53, %v845_v0  ;;  %v578_v61 = vadd.f32 0.050955694, %v562_v1  ;;  %v705_v56 = vadd.f32 0.0010179626, %v689_v31 }
 0x124   :  { %v894_v62 = vadd.f32 1.0, %v865_v25  ;;  %v800_v63 = vadd.f32 0.49746925, %v784_v38  ;;  %v786_v11 = vmul.f32 %v770_v44, %v1397_v54  ;;  %v577_v58 = vadd.f32 0.050955694, %v561_v36 }
 0x125   :  { %v908_v45 = vmul.f32 %v892_v34, %v1358_v12  ;;  %v893_v3 = vadd.f32 1.0, %v863_v35  ;;  %v659_v5 = vmul.f32 -1.1791603e-07, %v1439_v57  ;;  %v468_v59 = vmul.f32 0.70710677, %v1434_v18 }
 0x126   :  { %v1104_v10 = vpop.eup %1103  ;;  %v816_v16 = vmul.f32 %v800_v63, %v1393_v51  ;;  %v721_v12 = vmul.f32 %v705_v56, %v1416_v8  ;;  %v547_v19 = vadd.f32 0.003408291, %v531_v2  ;;  %v594_v52 = vmul.f32 %v578_v61, %v1397_v54 }
 0x127   :  { %v909_v6 = vmul.f32 %v893_v3, %v445_v43  ;;  %v867_v17 = vmul.f32 %v1104_v10, %v847_v4  ;;  %v802_v21 = vadd.f32 0.49746925, %v786_v11  ;;  %v675_v23 = vadd.f32 2.3547966e-05, %v659_v5 }
 0x128   :  { %v910_v24 = vmul.f32 %v894_v62, %v1363_v15  ;;  %v832_v43 = vadd.f32 1.0, %v816_v16  ;;  %v737_v22 = vadd.f32 0.01407047, %v721_v12  ;;  %v608_v1 = vadd.f32 0.18520832, %v592_v50 }
 0x129   :  { %v1040_v20 = vpack.c.bf16 %v909_v6, %v908_v45  ;;  %v895_v0 = vadd.f32 1.0, %v867_v17  ;;  %v593_v53 = vmul.f32 %v577_v58, %v1416_v8  ;;  %v691_v25 = vmul.f32 %v675_v23, %v1439_v57 }
 0x12a   :  { %v1467_v9 = vclamps-f32 %v468_v59, 4.0  ;;  %v753_v31 = vmul.f32 %v737_v22, %v1416_v8  ;;  %v563_v34 = vmul.f32 %v547_v19, %v1439_v57  ;;  %v1473_v15 = vadd.f32 %v1269_v48, %v1329_v26 }
 0x12b   :  { %972 = vst [vmem:[%s1688_s3] sm:$0xff] %v1040_v20  ;;  %v911_v28 = vmul.f32 %v895_v0, %v447_v14  ;;  %v610_v35 = vadd.f32 0.18520832, %v594_v52  ;;  %v818_v36 = vmul.f32 %v802_v21, %v1397_v54  ;;  %v707_v4 = vadd.f32 0.0010179626, %v691_v25 }
 0x12c   :  { %v1478_v38 = vmul.f32 %v1467_v9, %v1467_v9  ;;  %1105 = vrcp.f32 %v832_v43  ;;  %v769_v2 = vadd.f32 0.11098505, %v753_v31  ;;  %v470_v14 = vmul.f32 0.70710677, %v1448_v37 }
 0x12d   :  { %v1041_v44 = vpack.c.bf16 %v911_v28, %v910_v24  ;;  %v624_v45 = vmul.f32 %v608_v1, %v1393_v51  ;;  %v609_v3 = vadd.f32 0.18520832, %v593_v53  ;;  %v723_v50 = vmul.f32 %v707_v4, %v1439_v57 }
 0x12e   :  { %v660_v26 = vmul.f32 -1.1791603e-07, %v1478_v38  ;;  %v785_v61 = vmul.f32 %v769_v2, %v1416_v8  ;;  %v579_v62 = vadd.f32 0.050955694, %v563_v34  ;;  %v1488_v63 = vclamps-f32 %v470_v14, 4.0 }
 0x12f   :  { %973 = vst [vmem:[%s1688_s3 + $0x8] sm:$0xff] %v1041_v44  ;;  %v469_v11 = vmul.f32 0.70710677, %v1473_v15  ;;  %v834_v56 = vadd.f32 1.0, %v818_v36  ;;  %v739_v10 = vadd.f32 0.01407047, %v723_v50  ;;  %v626_v17 = vmul.f32 %v610_v35, %v1397_v54 }
 0x130   :  { %v676_v6 = vadd.f32 2.3547966e-05, %v660_v26  ;;  %v801_v51 = vadd.f32 0.49746925, %v785_v61  ;;  %v532_v58 = vmul.f32 0.00022905065, %v1478_v38  ;;  %v1494_v5 = vmul.f32 %v1488_v63, %v1488_v63 }
 0x131   :  { %v640_v59 = vadd.f32 1.1283791, %v624_v45  ;;  %v755_v16 = vmul.f32 %v739_v10, %v1439_v57  ;;  %v595_v20 = vmul.f32 %v579_v62, %v1439_v57  ;;  %v1502_v21 = vclamps-f32 %v469_v11, 4.0 }
 0x132   :  { %v692_v12 = vmul.f32 %v676_v6, %v1478_v38  ;;  %v817_v19 = vmul.f32 %v801_v51, %v1416_v8  ;;  %v662_v52 = vmul.f32 -1.1791603e-07, %v1494_v5  ;;  %1107 = vrcp.f32 %v834_v56 }
 0x133   :  { %v625_v23 = vmul.f32 %v609_v3, %v1416_v8  ;;  %v771_v24 = vadd.f32 0.11098505, %v755_v16  ;;  %v548_v22 = vadd.f32 0.003408291, %v532_v58  ;;  %v1507_v1 = vadd.f32 %v1265_v46, %v1337_v32 }
 0x134   :  { %v708_v0 = vadd.f32 0.0010179626, %v692_v12  ;;  %v833_v43 = vadd.f32 1.0, %v817_v19  ;;  %v678_v54 = vadd.f32 2.3547966e-05, %v662_v52  ;;  %v1514_v8 = vmul.f32 %v1502_v21, %v1502_v21 }
 0x135   :  { %v787_v53 = vmul.f32 %v771_v24, %v1439_v57  ;;  %v611_v31 = vadd.f32 0.18520832, %v595_v20  ;;  %v448_v35 = vmul.f32 0.5, %v1351_v55  ;;  %v848_v36 = vmul.f32 %v1384_v39, %v640_v59 }
 0x136   :  { %v724_v25 = vmul.f32 %v708_v0, %v1478_v38  ;;  %v1106_v28 = vpop.eup %1105  ;;  %1109 = vrcp.f32 %v833_v43  ;;  %v694_v34 = vmul.f32 %v678_v54, %v1494_v5  ;;  %v642_v4 = vadd.f32 1.1283791, %v626_v17 }
 0x137   :  { %v803_v46 = vadd.f32 0.49746925, %v787_v53  ;;  %v641_v32 = vadd.f32 1.1283791, %v625_v23  ;;  %v564_v44 = vmul.f32 %v548_v22, %v1478_v38  ;;  %v869_v45 = vmul.f32 %v1106_v28, %v848_v36 }
 0x138   :  { %v740_v2 = vadd.f32 0.01407047, %v724_v25  ;;  %v710_v14 = vadd.f32 0.0010179626, %v694_v34  ;;  %v449_v3 = vmul.f32 0.5, %v1376_v29  ;;  %v1523_v26 = vadd.f32 %v1271_v49, %v1331_v27 }
 0x139   :  { %v819_v50 = vmul.f32 %v803_v46, %v1439_v57  ;;  %v627_v55 = vmul.f32 %v611_v31, %v1439_v57  ;;  %v533_v62 = vmul.f32 0.00022905065, %v1514_v8  ;;  %v850_v11 = vmul.f32 %v1386_v40, %v642_v4 }
 0x13a   :  { %v756_v39 = vmul.f32 %v740_v2, %v1478_v38  ;;  %v726_v61 = vmul.f32 %v710_v14, %v1494_v5  ;;  %v534_v10 = vmul.f32 0.00022905065, %v1494_v5  ;;  %v661_v29 = vmul.f32 -1.1791603e-07, %v1514_v8 }
 0x13b   :  { %v835_v56 = vadd.f32 1.0, %v819_v50  ;;  %v849_v6 = vmul.f32 %v1409_v7, %v641_v32  ;;  %v580_v51 = vadd.f32 0.050955694, %v564_v44  ;;  %v896_v57 = vadd.f32 1.0, %v869_v45 }
 0x13c   :  { %v772_v27 = vadd.f32 0.11098505, %v756_v39  ;;  %v742_v58 = vadd.f32 0.01407047, %v726_v61  ;;  %v1108_v59 = vpop.eup %1107  ;;  %v677_v17 = vadd.f32 2.3547966e-05, %v661_v29 }
 0x13d   :  { %1111 = vrcp.f32 %v835_v56  ;;  %v471_v16 = vmul.f32 0.70710677, %v1523_v26  ;;  %v643_v12 = vadd.f32 1.1283791, %v627_v55  ;;  %v549_v20 = vadd.f32 0.003408291, %v533_v62 }
 0x13e   :  { %v788_v19 = vmul.f32 %v772_v27, %v1478_v38  ;;  %v758_v40 = vmul.f32 %v742_v58, %v1494_v5  ;;  %v550_v52 = vadd.f32 0.003408291, %v534_v10  ;;  %v693_v23 = vmul.f32 %v677_v17, %v1514_v8 }
 0x13f   :  { %v1537_v24 = vclamps-f32 %v471_v16, 4.0  ;;  %v472_v7 = vmul.f32 0.70710677, %v1507_v1  ;;  %v873_v43 = vmul.f32 %v1108_v59, %v850_v11  ;;  %v596_v22 = vmul.f32 %v580_v51, %v1478_v38 }
 0x140   :  { %v1110_v0 = vpop.eup %1109  ;;  %v804_v54 = vadd.f32 0.49746925, %v788_v19  ;;  %v774_v53 = vadd.f32 0.11098505, %v758_v40  ;;  %v912_v25 = vmul.f32 %v896_v57, %v448_v35  ;;  %v709_v31 = vadd.f32 0.0010179626, %v693_v23 }
 0x141   :  { %v871_v28 = vmul.f32 %v1110_v0, %v849_v6  ;;  %v1543_v34 = vmul.f32 %v1537_v24, %v1537_v24  ;;  %v565_v46 = vmul.f32 %v549_v20, %v1514_v8  ;;  %v1548_v32 = vclamps-f32 %v472_v7, 4.0 }
 0x142   :  { %v820_v36 = vmul.f32 %v804_v54, %v1478_v38  ;;  %v790_v4 = vmul.f32 %v774_v53, %v1494_v5  ;;  %v725_v2 = vmul.f32 %v709_v31, %v1514_v8  ;;  %v450_v45 = vmul.f32 0.5, %v1354_v60 }
 0x143   :  { %v897_v44 = vadd.f32 1.0, %v871_v28  ;;  %v535_v14 = vmul.f32 0.00022905065, %v1543_v34  ;;  %v663_v35 = vmul.f32 -1.1791603e-07, %v1543_v34  ;;  %v851_v50 = vmul.f32 %v1426_v13, %v643_v12 }
 0x144   :  { %v566_v55 = vmul.f32 %v550_v52, %v1494_v5  ;;  %v806_v39 = vadd.f32 0.49746925, %v790_v4  ;;  %v741_v62 = vadd.f32 0.01407047, %v725_v2  ;;  %v898_v10 = vadd.f32 1.0, %v873_v43 }
 0x145   :  { %v913_v61 = vmul.f32 %v897_v44, %v449_v3  ;;  %v551_v11 = vadd.f32 0.003408291, %v535_v14  ;;  %v679_v56 = vadd.f32 2.3547966e-05, %v663_v35  ;;  %v612_v29 = vadd.f32 0.18520832, %v596_v22 }
 0x146   :  { %v581_v6 = vadd.f32 0.050955694, %v565_v46  ;;  %v1558_v51 = vmul.f32 %v1548_v32, %v1548_v32  ;;  %v836_v59 = vadd.f32 1.0, %v820_v36  ;;  %v757_v60 = vmul.f32 %v741_v62, %v1514_v8 }
 0x147   :  { %v1112_v27 = vpop.eup %1111  ;;  %v1042_v58 = vpack.c.bf16 %v913_v61, %v912_v25  ;;  %v695_v13 = vmul.f32 %v679_v56, %v1543_v34  ;;  %v451_v57 = vmul.f32 0.5, %v1380_v30  ;;  %v822_v17 = vmul.f32 %v806_v39, %v1494_v5 }
 0x148   :  { %v875_v3 = vmul.f32 %v1112_v27, %v851_v50  ;;  %v1566_v16 = vadd.f32 %v1267_v47, %v1339_v33  ;;  %v582_v12 = vadd.f32 0.050955694, %v566_v55  ;;  %v773_v19 = vadd.f32 0.11098505, %v757_v60 }
 0x149   :  { %974 = vst [vmem:[%s1688_s3 + $0x10] sm:$0xff] %v1042_v58  ;;  %v567_v40 = vmul.f32 %v551_v11, %v1543_v34  ;;  %v711_v20 = vadd.f32 0.0010179626, %v695_v13  ;;  %v914_v52 = vmul.f32 %v898_v10, %v450_v45  ;;  %v628_v30 = vmul.f32 %v612_v29, %v1478_v38 }
 0x14a   :  { %v899_v23 = vadd.f32 1.0, %v875_v3  ;;  %v664_v7 = vmul.f32 -1.1791603e-07, %v1558_v51  ;;  %1113 = vrcp.f32 %v836_v59  ;;  %v597_v0 = vmul.f32 %v581_v6, %v1514_v8 }
 0x14b   :  { %v789_v47 = vmul.f32 %v773_v19, %v1514_v8  ;;  %v727_v33 = vmul.f32 %v711_v20, %v1543_v34  ;;  %v838_v22 = vadd.f32 1.0, %v822_v17  ;;  %v474_v53 = vmul.f32 0.70710677, %v1566_v16 }
 0x14c   :  { %v915_v43 = vmul.f32 %v899_v23, %v451_v57  ;;  %v680_v54 = vadd.f32 2.3547966e-05, %v664_v7  ;;  %v598_v25 = vmul.f32 %v582_v12, %v1494_v5  ;;  %v583_v31 = vadd.f32 0.050955694, %v567_v40 }
 0x14d   :  { %v805_v28 = vadd.f32 0.49746925, %v789_v47  ;;  %v743_v36 = vadd.f32 0.01407047, %v727_v33  ;;  %v1580_v46 = vclamps-f32 %v474_v53, 4.0  ;;  %v1584_v44 = vadd.f32 %v1269_v48, %v1344_v41 }
 0x14e   :  { %v1043_v38 = vpack.c.bf16 %v915_v43, %v914_v52  ;;  %v696_v4 = vmul.f32 %v680_v54, %v1558_v51  ;;  %v613_v2 = vadd.f32 0.18520832, %v597_v0  ;;  %v644_v45 = vadd.f32 1.1283791, %v628_v30 }
 0x14f   :  { %v821_v14 = vmul.f32 %v805_v28, %v1514_v8  ;;  %v759_v35 = vmul.f32 %v743_v36, %v1543_v34  ;;  %v1593_v55 = vmul.f32 %v1580_v46, %v1580_v46  ;;  %v614_v39 = vadd.f32 0.18520832, %v598_v25 }
 0x150   :  { %975 = vst [vmem:[%s1688_s3 + $0x18] sm:$0xff] %v1043_v38  ;;  %v712_v50 = vadd.f32 0.0010179626, %v696_v4  ;;  %1115 = vrcp.f32 %v838_v22  ;;  %v599_v41 = vmul.f32 %v583_v31, %v1543_v34  ;;  %v473_v56 = vmul.f32 0.70710677, %v1584_v44 }
 0x151   :  { %v837_v61 = vadd.f32 1.0, %v821_v14  ;;  %v775_v48 = vadd.f32 0.11098505, %v759_v35  ;;  %v666_v11 = vmul.f32 -1.1791603e-07, %v1593_v55  ;;  %v629_v10 = vmul.f32 %v613_v2, %v1514_v8 }
 0x152   :  { %v728_v62 = vmul.f32 %v712_v50, %v1558_v51  ;;  %v1603_v27 = vadd.f32 %v1271_v49, %v1346_v42  ;;  %v852_v59 = vmul.f32 %v1467_v9, %v644_v45  ;;  %v630_v60 = vmul.f32 %v614_v39, %v1494_v5 }
 0x153   :  { %1117 = vrcp.f32 %v837_v61  ;;  %v791_v29 = vmul.f32 %v775_v48, %v1543_v34  ;;  %v682_v57 = vadd.f32 2.3547966e-05, %v666_v11  ;;  %v615_v3 = vadd.f32 0.18520832, %v599_v41 }
 0x154   :  { %v744_v6 = vadd.f32 0.01407047, %v728_v62  ;;  %v1114_v58 = vpop.eup %1113  ;;  %v536_v17 = vmul.f32 0.00022905065, %v1558_v51  ;;  %v1609_v12 = vclamps-f32 %v473_v56, 4.0  ;;  %v452_v52 = vmul.f32 0.5, %v1434_v18 }
 0x155   :  { %v807_v13 = vadd.f32 0.49746925, %v791_v29  ;;  %v645_v19 = vadd.f32 1.1283791, %v629_v10  ;;  %v698_v49 = vmul.f32 %v682_v57, %v1593_v55  ;;  %v877_v42 = vmul.f32 %v1114_v58, %v852_v59 }
 0x156   :  { %v760_v8 = vmul.f32 %v744_v6, %v1558_v51  ;;  %v1615_v9 = vmul.f32 %v1609_v12, %v1609_v12  ;;  %v475_v5 = vmul.f32 0.70710677, %v1603_v27  ;;  %v646_v23 = vadd.f32 1.1283791, %v630_v60 }
 0x157   :  { %v823_v40 = vmul.f32 %v807_v13, %v1543_v34  ;;  %v714_v7 = vadd.f32 0.0010179626, %v698_v49  ;;  %v631_v0 = vmul.f32 %v615_v3, %v1543_v34  ;;  %v552_v47 = vadd.f32 0.003408291, %v536_v17 }
 0x158   :  { %v776_v20 = vadd.f32 0.11098505, %v760_v8  ;;  %v538_v33 = vmul.f32 0.00022905065, %v1593_v55  ;;  %v665_v43 = vmul.f32 -1.1791603e-07, %v1615_v9  ;;  %v853_v31 = vmul.f32 %v1502_v21, %v645_v19 }
 0x159   :  { %v839_v30 = vadd.f32 1.0, %v823_v40  ;;  %v730_v53 = vmul.f32 %v714_v7, %v1593_v55  ;;  %v1624_v25 = vclamps-f32 %v475_v5, 4.0  ;;  %v900_v28 = vadd.f32 1.0, %v877_v42 }
 0x15a   :  { %v1116_v22 = vpop.eup %1115  ;;  %v792_v54 = vmul.f32 %v776_v20, %v1558_v51  ;;  %v453_v18 = vmul.f32 0.5, %v1473_v15  ;;  %v537_v34 = vmul.f32 0.00022905065, %v1615_v9  ;;  %v854_v38 = vmul.f32 %v1488_v63, %v646_v23 }
 0x15b   :  { %1119 = vrcp.f32 %v839_v30  ;;  %v746_v4 = vadd.f32 0.01407047, %v730_v53  ;;  %v681_v2 = vadd.f32 2.3547966e-05, %v665_v43  ;;  %v1632_v14 = vmul.f32 %v1624_v25, %v1624_v25 }
 0x15c   :  { %v647_v45 = vadd.f32 1.1283791, %v631_v0  ;;  %v568_v50 = vmul.f32 %v552_v47, %v1558_v51  ;;  %v554_v39 = vadd.f32 0.003408291, %v538_v33  ;;  %v808_v61 = vadd.f32 0.49746925, %v792_v54 }
 0x15d   :  { %v1118_v36 = vpop.eup %1117  ;;  %v762_v15 = vmul.f32 %v746_v4, %v1593_v55  ;;  %v697_v21 = vmul.f32 %v681_v2, %v1615_v9  ;;  %v667_v48 = vmul.f32 -1.1791603e-07, %v1632_v14  ;;  %v916_v41 = vmul.f32 %v900_v28, %v452_v52 }
 0x15e   :  { %v879_v35 = vmul.f32 %v1118_v36, %v853_v31  ;;  %v881_v63 = vmul.f32 %v1116_v22, %v854_v38  ;;  %v553_v11 = vadd.f32 0.003408291, %v537_v34  ;;  %v855_v6 = vmul.f32 %v1537_v24, %v647_v45 }
 0x15f   :  { %v778_v56 = vadd.f32 0.11098505, %v762_v15  ;;  %v713_v10 = vadd.f32 0.0010179626, %v697_v21  ;;  %v584_v58 = vadd.f32 0.050955694, %v568_v50  ;;  %v824_v60 = vmul.f32 %v808_v61, %v1558_v51 }
 0x160   :  { %v901_v62 = vadd.f32 1.0, %v879_v35  ;;  %v539_v59 = vmul.f32 0.00022905065, %v1632_v14  ;;  %v683_v3 = vadd.f32 2.3547966e-05, %v667_v48  ;;  %v902_v17 = vadd.f32 1.0, %v881_v63 }
 0x161   :  { %v794_v13 = vmul.f32 %v778_v56, %v1593_v55  ;;  %v729_v57 = vmul.f32 %v713_v10, %v1615_v9  ;;  %v570_v19 = vmul.f32 %v554_v39, %v1593_v55  ;;  %v569_v40 = vmul.f32 %v553_v11, %v1615_v9 }
 0x162   :  { %v917_v29 = vmul.f32 %v901_v62, %v453_v18  ;;  %v699_v24 = vmul.f32 %v683_v3, %v1632_v14  ;;  %v454_v5 = vmul.f32 0.5, %v1448_v37  ;;  %v600_v23 = vmul.f32 %v584_v58, %v1558_v51 }
 0x163   :  { %v810_v42 = vadd.f32 0.49746925, %v794_v13  ;;  %v745_v20 = vadd.f32 0.01407047, %v729_v57  ;;  %v555_v30 = vadd.f32 0.003408291, %v539_v59 }
 0x164   :  { %v1044_v8 = vpack.c.bf16 %v917_v29, %v916_v41  ;;  %v455_v7 = vmul.f32 0.5, %v1523_v26  ;;  %v840_v0 = vadd.f32 1.0, %v824_v60  ;;  %v715_v33 = vadd.f32 0.0010179626, %v699_v24 }
 0x165   :  { %v1120_v49 = vpop.eup %1119  ;;  %v761_v47 = vmul.f32 %v745_v20, %v1615_v9  ;;  %v918_v43 = vmul.f32 %v902_v17, %v454_v5  ;;  %v586_v54 = vadd.f32 0.050955694, %v570_v19  ;;  %v585_v53 = vadd.f32 0.050955694, %v569_v40 }
 0x166   :  { %976 = vst [vmem:[%s1688_s3 + $0x20] sm:$0xff] %v1044_v8  ;;  %v883_v52 = vmul.f32 %v1120_v49, %v855_v6  ;;  %v826_v37 = vmul.f32 %v810_v42, %v1593_v55  ;;  %v731_v18 = vmul.f32 %v715_v33, %v1632_v14  ;;  %v616_v34 = vadd.f32 0.18520832, %v600_v23 }
 0x167   :  { %v777_v28 = vadd.f32 0.11098505, %v761_v47  ;;  %v571_v36 = vmul.f32 %v555_v30, %v1632_v14  ;;  %1121 = vrcp.f32 %v840_v0  ;;  %v602_v2 = vmul.f32 %v586_v54, %v1593_v55 }
 0x168   :  { %v903_v22 = vadd.f32 1.0, %v883_v52  ;;  %v747_v38 = vadd.f32 0.01407047, %v731_v18  ;;  %v601_v35 = vmul.f32 %v585_v53, %v1615_v9  ;;  %v842_v45 = vadd.f32 1.0, %v826_v37 }
 0x169   :  { %v793_v26 = vmul.f32 %v777_v28, %v1615_v9  ;;  %v632_v61 = vmul.f32 %v616_v34, %v1558_v51  ;;  %v587_v15 = vadd.f32 0.050955694, %v571_v36  ;;  %v618_v41 = vadd.f32 0.18520832, %v602_v2 }
 0x16a   :  { %v919_v31 = vmul.f32 %v903_v22, %v455_v7  ;;  %v763_v39 = vmul.f32 %v747_v38, %v1632_v14  ;;  %v617_v63 = vadd.f32 0.18520832, %v601_v35  ;;  %1123 = vrcp.f32 %v842_v45 }
 0x16b   :  { %v809_v50 = vadd.f32 0.49746925, %v793_v26  ;;  %v648_v56 = vadd.f32 1.1283791, %v632_v61  ;;  %v603_v10 = vmul.f32 %v587_v15, %v1632_v14  ;;  %v634_v6 = vmul.f32 %v618_v41, %v1593_v55 }
 0x16c   :  { %v1045_v4 = vpack.c.bf16 %v919_v31, %v918_v43  ;;  %v779_v48 = vadd.f32 0.11098505, %v763_v39  ;;  %v633_v58 = vmul.f32 %v617_v63, %v1615_v9  ;;  %v456_v20 = vmul.f32 0.5, %v1507_v1 }
 0x16d   :  { %v825_v21 = vmul.f32 %v809_v50, %v1615_v9  ;;  %v856_v60 = vmul.f32 %v1548_v32, %v648_v56  ;;  %v619_v13 = vadd.f32 0.18520832, %v603_v10  ;;  %v650_v17 = vadd.f32 1.1283791, %v634_v6 }
 0x16e   :  { %977 = vst [vmem:[%s1688_s3 + $0x28] sm:$0xff] %v1045_v4  ;;  %v795_v11 = vmul.f32 %v779_v48, %v1632_v14  ;;  %v649_v8 = vadd.f32 1.1283791, %v633_v58  ;;  %v457_v23 = vmul.f32 0.5, %v1584_v44  ;;  %v458_v33 = vmul.f32 0.5, %v1566_v16 }
 0x16f   :  { %v841_v62 = vadd.f32 1.0, %v825_v21  ;;  %v635_v19 = vmul.f32 %v619_v13, %v1632_v14  ;;  %v858_v42 = vmul.f32 %v1580_v46, %v650_v17  ;;  %v459_v1 = vmul.f32 0.5, %v1603_v27 }
 0x170   :  { %v811_v29 = vadd.f32 0.49746925, %v795_v11  ;;  %v857_v55 = vmul.f32 %v1609_v12, %v649_v8 }
 0x171   :  { %1125 = vrcp.f32 %v841_v62  ;;  %v1122_v51 = vpop.eup %1121  ;;  %v651_v32 = vadd.f32 1.1283791, %v635_v19 }
 0x172   :  { %v827_v59 = vmul.f32 %v811_v29, %v1632_v14  ;;  %v885_v3 = vmul.f32 %v1122_v51, %v856_v60 }
 0x173   :  { %v859_v14 = vmul.f32 %v1624_v25, %v651_v32 }
 0x174   :  { %v843_v57 = vadd.f32 1.0, %v827_v59  ;;  %v1124_v40 = vpop.eup %1123  ;;  %v904_v49 = vadd.f32 1.0, %v885_v3 }
 0x175   :  { %v889_v24 = vmul.f32 %v1124_v40, %v858_v42 }
 0x176   :  { %1127 = vrcp.f32 %v843_v57  ;;  %v920_v52 = vmul.f32 %v904_v49, %v456_v20 }
 0x177   :  { %v906_v7 = vadd.f32 1.0, %v889_v24 }
 0x179   :  { %v922_v12 = vmul.f32 %v906_v7, %v458_v33 }
 0x17b   :  { %v1126_v9 = vpop.eup %1125 }
 0x17c   :  { %v887_v5 = vmul.f32 %v1126_v9, %v857_v55 }
 0x17e   :  { %v905_v30 = vadd.f32 1.0, %v887_v5 }
 0x180   :  { %v921_v0 = vmul.f32 %v905_v30, %v457_v23  ;;  %v1128_v47 = vpop.eup %1127 }
 0x181   :  { %v891_v43 = vmul.f32 %v1128_v47, %v859_v14 }
 0x182   :  { %v1046_v46 = vpack.c.bf16 %v921_v0, %v920_v52 }
 0x183   :  { %v907_v22 = vadd.f32 1.0, %v891_v43 }
 0x184   :  { %978 = vst [vmem:[%s1688_s3 + $0x30] sm:$0xff] %v1046_v46 }
 0x185   :  { %v923_v54 = vmul.f32 %v907_v22, %v459_v1 }
 0x187   :  { %v1047_v44 = vpack.c.bf16 %v923_v54, %v922_v12 }
 0x189   :  { %979 = vst [vmem:[%s1688_s3 + $0x38] sm:$0xff] %v1047_v44 }

// kernel: transformer_forward.16
= control target key start
LH: loop header
LB: loop body
LE: loop exit
PB: predicated region body
PF: predicated region fallthrough
CT: control target
= control target key end

     0   :  { %s1013_s21 = smov 0   ;;  %s1015_s22 = smov 0   ;;  %s1137_s0 = inlined_call_operand.vmem [shape: bf16[32,512], index: 0, kind: input, shape index: {}]   ;;  %s1138_s1 = inlined_call_operand.vmem [shape: bf16[512,128], index: 1, kind: input, shape index: {}]   ;;  %s1139_s2 = inlined_call_operand.vmem [shape: f32[1,128], index: 2, kind: input, shape index: {}]   ;;  %s1140_s3 = inlined_call_operand.vmem [shape: f32[32,128], index: 3, kind: input, shape index: {}]   ;;  %s1141_s4 = inlined_call_operand.vmem [shape: f32[1,128], index: 4, kind: input, shape index: {}]   ;;  %s1142_s5 = inlined_call_operand.vmem [shape: f32[1,128], index: 5, kind: input, shape index: {}]   ;;  %s1143_s6 = inlined_call_operand.vmem [shape: f32[32,128], index: 6, kind: output, shape index: {}]  }
   0x1   :  { %s1017_s23 = smov 0   ;;  %s1019_s24 = smov 0  }
   0x2   :  { %s1021_s25 = smov 0  }
   0x3 LB: > { %s25_s26 = sadd.s32 1, %s971_s24  ;;  %p44_p1 = scmp.ne.s32.totalorder %s963_s22, %s959_s21  ;;  %s975_s25 = sphi %s1021_s25, %s16_s25   ;;  %s971_s24 = sphi %s1019_s24, %s1147_s24   ;;  %s967_s23 = sphi %s1017_s23, %s1146_s23   ;;  %s963_s22 = sphi %s1015_s22, %s1145_s22   ;;  %s959_s21 = sphi %s1013_s21, %s1144_s21  }
   0x4   : > { %p26_p0 = scmp.ge.s32.totalorder %s25_s26, 2  ;;  %p45_p2 = scmp.eq.s32.totalorder %s975_s25, 0 }
   0x5   : > { %s37_s28 = sadd.s32 1, %s963_s22  ;;  %p784_p5 = scmp.ge.s32.totalorder %s975_s25, 2 }
   0x6   : > { %s1149_s26 = smov (%p26_p0, %s25_s26), 0  ;;  %p46_p3 = por %p45_p2, %p44_p1 }
   0x7   : > { %s33_s27 = ssub.s32 %s971_s24, %s1149_s26  ;;  %229 = sbr.rel (%p784_p5) target bundleno = 21 (0x15), region = 32 }
   0x8   : > { %p35_p4 = scmp.eq.s32.totalorder %s33_s27, 0 }
   0xa   : > { %s1048_s29 = scalar_select %p35_p4, %s963_s22, %s37_s28  }
   0xe   : > { %232 = sbr.rel (!%p46_p3) target bundleno = 21 (0x15), region = 36  ;;  %s234_s30 = sand.u32 (%p46_p3), 1, %s963_s22  }
   0xf   : > { %s821_s7 = sshll.u32 (%p46_p3), %s971_s24, 3  ;;  %s785_s8 = sshll.u32 (%p46_p3), %s234_s30, 5 }
  0x10   : > { %s242_s11 = scalar_lea.vmem (%p46_p3), %s1137_s0, %s821_s7  ;;  %s236_s12 = scalar_lea.vmem (%p46_p3), [#allocation3], %s785_s8 }
  0x11   : > { %v276_v0 = vld [vmem:[%s242_s11] sm:$0xff] (%p46_p3)  ;;  %v278_v1 = vld [vmem:[%s242_s11 + $0x10] sm:$0xff] (%p46_p3) }
  0x12   : > { %v280_v2 = vld [vmem:[%s242_s11 + $0x20] sm:$0xff] (%p46_p3)  ;;  %277 = vst [vmem:[%s236_s12] sm:$0xff] (%p46_p3), %v276_v0  ;;  %279 = vst [vmem:[%s236_s12 + $0x8] sm:$0xff] (%p46_p3), %v278_v1  ;;  %v282_v3 = vld [vmem:[%s242_s11 + $0x30] sm:$0xff] (%p46_p3) }
  0x13   : > { %281 = vst [vmem:[%s236_s12 + $0x10] sm:$0xff] (%p46_p3), %v280_v2  ;;  %283 = vst [vmem:[%s236_s12 + $0x18] sm:$0xff] (%p46_p3), %v282_v3 }
  0x15 PF: > { %p788_p6 = scmp.ge.s32.totalorder %s975_s25, 1  ;;  %p297_p7 = scmp.lt.s32.totalorder %s975_s25, 3 }
  0x17   : > { %p298_p8 = pnand %p788_p6, %p297_p7 }
  0x18   : > { %s304_s13 = sand.u32 (!%p298_p8), 1, %s959_s21   ;;  %s790_s14 = sshll.u32 (!%p298_p8), %s967_s23, 5 }
  0x19   : > { %301 = sbr.rel (%p298_p8) target bundleno = 621 (0x26d), region = 78  ;;  %s789_s15 = sshll.u32 (!%p298_p8), %s304_s13, 5 }
  0x1a   : > { %p346_p9 = scmp.lt.s32.totalorder (!%p298_p8), %s790_s14, 63  ;;  %s1065_s20 = scalar_lea.vmem (!%p298_p8), [#allocation3], %s789_s15 }
  0x1b   : > { %p792_p10 = scmp.ne.s32.totalorder (!%p298_p8), %s967_s23, 0 }
  0x20   : > { %s1151_s14 = smov (!%p346_p9, %s790_s14), 63  ;;  %367 = sbr.rel (%p792_p10) target bundleno = 39 (0x27), region = 86 }
  0x21   : > { %s791_s16 = sshll.u32 %s1151_s14, 2  ;;  %v977_v4 = vmov (!%p792_p10), 0.0  }
  0x22   : > { %s1063_s19 = scalar_lea.vmem %s1138_s1, %s791_s16  ;;  %368 = vst [vmem:[#allocation2] sm:$0xff] (!%p792_p10), %v977_v4  ;;  %369 = vst [vmem:[#allocation2 + $0x8] sm:$0xff] (!%p792_p10), %v977_v4 }
  0x23   : > { %370 = vst [vmem:[#allocation2 + $0x10] sm:$0xff] (!%p792_p10), %v977_v4  ;;  %371 = vst [vmem:[#allocation2 + $0x18] sm:$0xff] (!%p792_p10), %v977_v4 }
  0x27 PF: > { %v907_v5 = vld [vmem:[%s1063_s19 + $0x40] sm:$0xff]   ;;  %v909_v7 = vld [vmem:[%s1063_s19 + $0x48] sm:$0xff]   ;;  %v911_v9 = vld [vmem:[%s1063_s19 + $0x50] sm:$0xff]   ;;  %p813_p11 = scmp.ne.s32.totalorder %s967_s23, 1 }
  0x28   : > { %v908_v6 = vld [vmem:[%s1063_s19] sm:$0xff]   ;;  %822 = vmatprep.subr.bf16.mxu0 %v907_v5  ;;  %850 = vmatprep.subr.bf16.mxu1 %v907_v5  ;;  %v910_v8 = vld [vmem:[%s1063_s19 + $0x8] sm:$0xff]   ;;  %v912_v10 = vld [vmem:[%s1063_s19 + $0x10] sm:$0xff]  }
  0x29   : > { %823 = vmatpush3.bf16.msra.mxu0 %v908_v6  ;;  %858 = vmatpush3.bf16.msra.mxu1 %v908_v6  ;;  %v913_v11 = vld [vmem:[%s1063_s19 + $0x58] sm:$0xff]   ;;  %v915_v13 = vld [vmem:[%s1063_s19 + $0x60] sm:$0xff]   ;;  %v917_v15 = vld [vmem:[%s1063_s19 + $0x68] sm:$0xff]  }
  0x2a   : > { %824 = vmatprep.subr.bf16.mxu0 %v909_v7  ;;  %851 = vmatprep.subr.bf16.mxu1 %v909_v7  ;;  %v914_v12 = vld [vmem:[%s1063_s19 + $0x18] sm:$0xff]   ;;  %v916_v14 = vld [vmem:[%s1063_s19 + $0x20] sm:$0xff]   ;;  %v918_v18 = vld [vmem:[%s1063_s19 + $0x28] sm:$0xff]  }
  0x2b   : > { %v925_v16 = vld [vmem:[%s1065_s20 + $0x4] ss:$8 sps:$4 sm:$0xff]   ;;  %v928_v17 = vld [vmem:[%s1065_s20 + $0x14] ss:$8 sps:$4 sm:$0xff]   ;;  %v923_v23 = vld [vmem:[%s1065_s20] ss:$8 sps:$4 sm:$0xff]  }
  0x2c   : > { %v919_v19 = vld [vmem:[%s1063_s19 + $0x70] sm:$0xff]   ;;  %560 = vmatprep.mubr.bf16.mxu0 %v925_v16  ;;  %568 = vmatprep.mubr.bf16.mxu1 %v928_v17  ;;  %v921_v21 = vld [vmem:[%s1063_s19 + $0x78] sm:$0xff]   ;;  %v372_v27 = vld [vmem:[#allocation2] sm:$0xff] }
  0x2d   : > { %825 = vmatpush3.bf16.msra.mxu0 %v910_v8  ;;  %859 = vmatpush3.bf16.msra.mxu1 %v910_v8  ;;  %v920_v20 = vld [vmem:[%s1063_s19 + $0x30] sm:$0xff]   ;;  %v922_v22 = vld [vmem:[%s1063_s19 + $0x38] sm:$0xff]   ;;  %v373_v35 = vld [vmem:[#allocation2 + $0x8] sm:$0xff] }
  0x2e   : > { %826 = vmatprep.subr.bf16.mxu0 %v911_v9  ;;  %852 = vmatprep.subr.bf16.mxu1 %v911_v9  ;;  %v926_v24 = vld [vmem:[%s1065_s20 + $0x10] ss:$8 sps:$4 sm:$0xff]   ;;  %v814_v46 = vld [vmem:[%s1139_s2] ss:$0 sm:$0xff] (!%p813_p11)  ;;  %v605_v54 = vld [vmem:[%s1140_s3 + $0x8] sm:$0xff] (!%p813_p11) }
  0x2f   : > { %v374_v29 = vld [vmem:[#allocation2 + $0x10] sm:$0xff]  ;;  %v375_v37 = vld [vmem:[#allocation2 + $0x18] sm:$0xff]  ;;  %v604_v47 = vld [vmem:[%s1140_s3] sm:$0xff] (!%p813_p11) }
  0x30   : > { %v606_v50 = vld [vmem:[%s1140_s3 + $0x10] sm:$0xff] (!%p813_p11)  ;;  %v607_v58 = vld [vmem:[%s1140_s3 + $0x18] sm:$0xff] (!%p813_p11) }
  0x31   : > { %827 = vmatpush3.bf16.msra.mxu0 %v912_v10  ;;  %860 = vmatpush3.bf16.msra.mxu1 %v912_v10 }
  0x32   : > { %828 = vmatprep.subr.bf16.mxu0 %v913_v11  ;;  %853 = vmatprep.subr.bf16.mxu1 %v913_v11 }
  0x35   : > { %829 = vmatpush3.bf16.msra.mxu0 %v914_v12  ;;  %861 = vmatpush3.bf16.msra.mxu1 %v914_v12 }
  0x36   : > { %830 = vmatprep.subr.bf16.mxu0 %v915_v13  ;;  %854 = vmatprep.subr.bf16.mxu1 %v915_v13 }
  0x39   : > { %831 = vmatpush3.bf16.msra.mxu0 %v916_v14  ;;  %862 = vmatpush3.bf16.msra.mxu1 %v916_v14 }
  0x3a   : > { %832 = vmatprep.subr.bf16.mxu0 %v917_v15  ;;  %855 = vmatprep.subr.bf16.mxu1 %v917_v15 }
  0x3d   : > { %833 = vmatpush3.bf16.msra.mxu0 %v918_v18  ;;  %863 = vmatpush3.bf16.msra.mxu1 %v918_v18 }
  0x3e   : > { %834 = vmatprep.subr.bf16.mxu0 %v919_v19  ;;  %856 = vmatprep.subr.bf16.mxu1 %v919_v19 }
  0x41   : > { %835 = vmatpush3.bf16.msra.mxu0 %v920_v20  ;;  %864 = vmatpush3.bf16.msra.mxu1 %v920_v20 }
  0x42   : > { %836 = vmatprep.subr.bf16.mxu0 %v921_v21  ;;  %857 = vmatprep.subr.bf16.mxu1 %v921_v21 }
  0x45   : > { %837 = vmatpush3.bf16.msra.mxu0 %v922_v22  ;;  %865 = vmatpush3.bf16.msra.mxu1 %v922_v22 }
  0x48   : > { %561 = vmatmul.mubr.bf16.vlgmr.msra.gmra.mrb[0].mxu0 %v923_v23  ;;  %569 = vmatmul.mubr.bf16.vlgmr.msra.gmra.mrb[0].mxu1 %v926_v24 }
 0x11b   : > { %v838_v25 = vpop.f32.mrb[0].mxu0  ;;  %v844_v26 = vpop.f32.mrb[0].mxu1 }
 0x11c   : > { %v839_v28 = vpop.f32.mrb[1].mxu0  ;;  %v845_v30 = vpop.f32.mrb[1].mxu1 }
 0x11d   : > { %v840_v31 = vadd.f32 %v839_v28, %v838_v25  ;;  %v846_v32 = vadd.f32 %v845_v30, %v844_v26  ;;  %v841_v33 = vpop.f32.mrb[2].mxu0  ;;  %v847_v34 = vpop.f32.mrb[2].mxu1  ;;  %588 = sbr.rel (%p813_p11) target bundleno = 621 (0x26d), region = 90 }
 0x11e   : > { %v842_v36 = vpop.f32.mrb[3].mxu0  ;;  %v848_v38 = vpop.f32.mrb[3].mxu1 }
 0x11f   : > { %v577_v39 = vadd.f32 %v840_v31, %v372_v27  ;;  %v579_v40 = vadd.f32 %v846_v32, %v374_v29  ;;  %v843_v41 = vadd.f32 %v842_v36, %v841_v33  ;;  %v849_v42 = vadd.f32 %v848_v38, %v847_v34  ;;  %v815_v27 = vld [vmem:[%s1141_s4] ss:$0 sm:$0xff] (!%p813_p11) }
 0x120   : > { %v816_v29 = vld [vmem:[%s1142_s5] ss:$0 sm:$0xff] (!%p813_p11) }
 0x121   : > { %581 = vst [vmem:[#allocation2] sm:$0xff] %v577_v39  ;;  %583 = vst [vmem:[#allocation2 + $0x10] sm:$0xff] %v579_v40  ;;  %v578_v43 = vadd.f32 %v843_v41, %v373_v35  ;;  %v580_v44 = vadd.f32 %v849_v42, %v375_v37 }
 0x123   : > { %582 = vst [vmem:[#allocation2 + $0x8] sm:$0xff] %v578_v43  ;;  %584 = vst [vmem:[#allocation2 + $0x18] sm:$0xff] %v580_v44 }
 0x128   : > { %v589_v45 = vld [vmem:[#allocation2] sm:$0xff]  ;;  %v591_v49 = vld [vmem:[#allocation2 + $0x10] sm:$0xff] }
 0x129   : > { %v600_v48 = vadd.f32 %v814_v46, %v589_v45  ;;  %v602_v52 = vadd.f32 %v814_v46, %v591_v49 }
 0x12a   : > { %v590_v51 = vld [vmem:[#allocation2 + $0x8] sm:$0xff]  ;;  %v592_v55 = vld [vmem:[#allocation2 + $0x18] sm:$0xff] }
 0x12b   : > { %v601_v53 = vadd.f32 %v814_v46, %v590_v51  ;;  %v608_v56 = vadd.f32 %v604_v47, %v600_v48  ;;  %v603_v57 = vadd.f32 %v814_v46, %v592_v55  ;;  %v610_v59 = vadd.f32 %v606_v50, %v602_v52 }
 0x12d   : > { %612 = vadd.xlane.f32.xlu0 %v608_v56  ;;  %v609_v60 = vadd.f32 %v605_v54, %v601_v53  ;;  %616 = vadd.xlane.f32.xlu1 %v610_v59  ;;  %v611_v61 = vadd.f32 %v607_v58, %v603_v57 }
 0x131   : > { %614 = vadd.xlane.f32.xlu0 %v609_v60  ;;  %618 = vadd.xlane.f32.xlu1 %v611_v61 }
 0x1ba   : > { %v613_v62 = vpop.xlane.xlu0 %612  ;;  %v617_v0 = vpop.xlane.xlu1 %616 }
 0x1bb   : > { %v621_v63 = vmul.f32 0.0078125, %v613_v62  ;;  %v623_v1 = vmul.f32 0.0078125, %v617_v0 }
 0x1bd   : > { %v625_v2 = vsub.f32 %v608_v56, %v621_v63  ;;  %v627_v3 = vsub.f32 %v610_v59, %v623_v1 }
 0x1be   : > { %v615_v4 = vpop.xlane.xlu0 %614  ;;  %v619_v7 = vpop.xlane.xlu1 %618 }
 0x1bf   : > { %v622_v5 = vmul.f32 0.0078125, %v615_v4  ;;  %v629_v6 = vmul.f32 %v625_v2, %v625_v2  ;;  %v624_v8 = vmul.f32 0.0078125, %v619_v7  ;;  %v631_v10 = vmul.f32 %v627_v3, %v627_v3 }
 0x1c1   : > { %v626_v9 = vsub.f32 %v609_v60, %v622_v5  ;;  %633 = vadd.xlane.f32.xlu0 %v629_v6  ;;  %v628_v11 = vsub.f32 %v611_v61, %v624_v8 }
 0x1c3   : > { %v630_v12 = vmul.f32 %v626_v9, %v626_v9  ;;  %v632_v13 = vmul.f32 %v628_v11, %v628_v11 }
 0x1c5   : > { %637 = vadd.xlane.f32.xlu0 %v631_v10  ;;  %635 = vadd.xlane.f32.xlu1 %v630_v12 }
 0x1c9   : > { %639 = vadd.xlane.f32.xlu1 %v632_v13 }
 0x24e   : > { %v634_v14 = vpop.xlane.xlu0 %633 }
 0x24f   : > { %v641_v15 = vmul.f32 0.0078125, %v634_v14 }
 0x251   : > { %v645_v16 = vadd.f32 1e-05, %v641_v15 }
 0x252   : > { %v636_v17 = vpop.xlane.xlu1 %635  ;;  %v638_v18 = vpop.xlane.xlu0 %637 }
 0x253   : > { %929 = vrsqrt.f32 %v645_v16  ;;  %v642_v19 = vmul.f32 0.0078125, %v636_v17  ;;  %v643_v20 = vmul.f32 0.0078125, %v638_v18 }
 0x255   : > { %v646_v21 = vadd.f32 1e-05, %v642_v19  ;;  %v647_v22 = vadd.f32 1e-05, %v643_v20 }
 0x256   : > { %v640_v23 = vpop.xlane.xlu1 %639 }
 0x257   : > { %931 = vrsqrt.f32 %v646_v21  ;;  %v644_v24 = vmul.f32 0.0078125, %v640_v23 }
 0x258   : > { %933 = vrsqrt.f32 %v647_v22 }
 0x259   : > { %v648_v25 = vadd.f32 1e-05, %v644_v24 }
 0x25b   : > { %935 = vrsqrt.f32 %v648_v25 }
 0x25d   : > { %v930_v26 = vpop.eup %929 }
 0x25e   : > { %v653_v28 = vmul.f32 %v930_v26, %v625_v2 }
 0x260   : > { %v664_v30 = vmul.f32 %v815_v27, %v653_v28 }
 0x261   : > { %v932_v31 = vpop.eup %931 }
 0x262   : > { %v934_v32 = vpop.eup %933  ;;  %v675_v33 = vadd.f32 %v816_v29, %v664_v30  ;;  %v654_v34 = vmul.f32 %v932_v31, %v626_v9 }
 0x263   : > { %v655_v35 = vmul.f32 %v934_v32, %v627_v3 }
 0x264   : > { %679 = vst [vmem:[%s1143_s6] sm:$0xff] %v675_v33  ;;  %v665_v36 = vmul.f32 %v815_v27, %v654_v34 }
 0x265   : > { %v936_v37 = vpop.eup %935  ;;  %v666_v38 = vmul.f32 %v815_v27, %v655_v35 }
 0x266   : > { %v676_v39 = vadd.f32 %v816_v29, %v665_v36  ;;  %v656_v40 = vmul.f32 %v936_v37, %v628_v11 }
 0x267   : > { %v677_v41 = vadd.f32 %v816_v29, %v666_v38 }
 0x268   : > { %680 = vst [vmem:[%s1143_s6 + $0x8] sm:$0xff] %v676_v39  ;;  %v667_v42 = vmul.f32 %v815_v27, %v656_v40 }
 0x269   : > { %681 = vst [vmem:[%s1143_s6 + $0x10] sm:$0xff] %v677_v41 }
 0x26a   : > { %v678_v43 = vadd.f32 %v816_v29, %v667_v42 }
 0x26c   : > { %682 = vst [vmem:[%s1143_s6 + $0x18] sm:$0xff] %v678_v43 }
 0x26d PF: > { %s16_s25 = sadd.s32 1, %s975_s25   ;;  %s1144_s21 = smov %s963_s22 }
 0x26e   : > { %p13_p12 = scmp.ge.s32.totalorder %s16_s25, 4   ;;  %s1145_s22 = smov %s1048_s29 }
 0x26f   : > { %s1146_s23 = smov %s971_s24  ;;  %s1147_s24 = smov %s1149_s26 }
 0x270   :  { %15 = sbr.rel (!%p13_p12) target bundleno = 3 (0x3), region = 131 }

// kernel: transformer_forward.22
= control target key start
LH: loop header
LB: loop body
LE: loop exit
PB: predicated region body
PF: predicated region fallthrough
CT: control target
= control target key end

     0   :  { %s182_s0 = inlined_call_operand.vmem [shape: f32[32,128], index: 0, kind: input, shape index: {}]   ;;  %s183_s1 = inlined_call_operand.vmem [shape: f32[1,128], index: 1, kind: input, shape index: {}]   ;;  %s184_s2 = inlined_call_operand.vmem [shape: f32[1,128], index: 2, kind: input, shape index: {}]   ;;  %s185_s3 = inlined_call_operand.vmem [shape: bf16[32,128], index: 3, kind: output, shape index: {}]  }
   0x1   :  { %v14_v0 = vld [vmem:[%s182_s0] sm:$0xff]  ;;  %v16_v1 = vld [vmem:[%s182_s0 + $0x10] sm:$0xff]  ;;  %v15_v2 = vld [vmem:[%s182_s0 + $0x8] sm:$0xff] }
   0x2   :  { %18 = vadd.xlane.f32.xlu0 %v14_v0  ;;  %22 = vadd.xlane.f32.xlu1 %v16_v1  ;;  %v17_v3 = vld [vmem:[%s182_s0 + $0x18] sm:$0xff]  ;;  %v109_v34 = vld [vmem:[%s183_s1] ss:$0 sm:$0xff] }
   0x3   :  { %v110_v39 = vld [vmem:[%s184_s2] ss:$0 sm:$0xff] }
   0x6   :  { %20 = vadd.xlane.f32.xlu0 %v15_v2  ;;  %24 = vadd.xlane.f32.xlu1 %v17_v3 }
  0x8f   :  { %v19_v4 = vpop.xlane.xlu0 %18  ;;  %v23_v5 = vpop.xlane.xlu1 %22 }
  0x90   :  { %v27_v6 = vmul.f32 0.0078125, %v19_v4  ;;  %v29_v7 = vmul.f32 0.0078125, %v23_v5 }
  0x92   :  { %v31_v8 = vsub.f32 %v14_v0, %v27_v6  ;;  %v33_v9 = vsub.f32 %v16_v1, %v29_v7 }
  0x93   :  { %v21_v10 = vpop.xlane.xlu0 %20  ;;  %v25_v11 = vpop.xlane.xlu1 %24 }
  0x94   :  { %v28_v12 = vmul.f32 0.0078125, %v21_v10  ;;  %v35_v13 = vmul.f32 %v31_v8, %v31_v8  ;;  %v30_v14 = vmul.f32 0.0078125, %v25_v11  ;;  %v37_v17 = vmul.f32 %v33_v9, %v33_v9 }
  0x96   :  { %v32_v15 = vsub.f32 %v15_v2, %v28_v12  ;;  %39 = vadd.xlane.f32.xlu0 %v35_v13  ;;  %v34_v16 = vsub.f32 %v17_v3, %v30_v14 }
  0x98   :  { %v36_v18 = vmul.f32 %v32_v15, %v32_v15  ;;  %v38_v19 = vmul.f32 %v34_v16, %v34_v16 }
  0x9a   :  { %43 = vadd.xlane.f32.xlu0 %v37_v17  ;;  %41 = vadd.xlane.f32.xlu1 %v36_v18 }
  0x9e   :  { %45 = vadd.xlane.f32.xlu1 %v38_v19 }
 0x123   :  { %v40_v20 = vpop.xlane.xlu0 %39 }
 0x124   :  { %v47_v21 = vmul.f32 0.0078125, %v40_v20 }
 0x126   :  { %v51_v22 = vadd.f32 1e-05, %v47_v21 }
 0x127   :  { %v42_v23 = vpop.xlane.xlu1 %41  ;;  %v44_v24 = vpop.xlane.xlu0 %43 }
 0x128   :  { %130 = vrsqrt.f32 %v51_v22  ;;  %v48_v25 = vmul.f32 0.0078125, %v42_v23  ;;  %v49_v26 = vmul.f32 0.0078125, %v44_v24 }
 0x12a   :  { %v52_v27 = vadd.f32 1e-05, %v48_v25  ;;  %v53_v28 = vadd.f32 1e-05, %v49_v26 }
 0x12b   :  { %v46_v29 = vpop.xlane.xlu1 %45 }
 0x12c   :  { %132 = vrsqrt.f32 %v52_v27  ;;  %v50_v30 = vmul.f32 0.0078125, %v46_v29 }
 0x12d   :  { %134 = vrsqrt.f32 %v53_v28 }
 0x12e   :  { %v54_v31 = vadd.f32 1e-05, %v50_v30 }
 0x130   :  { %136 = vrsqrt.f32 %v54_v31 }
 0x132   :  { %v131_v32 = vpop.eup %130 }
 0x133   :  { %v59_v33 = vmul.f32 %v131_v32, %v31_v8 }
 0x135   :  { %v70_v37 = vmul.f32 %v109_v34, %v59_v33 }
 0x136   :  { %v133_v35 = vpop.eup %132 }
 0x137   :  { %v135_v36 = vpop.eup %134  ;;  %v60_v38 = vmul.f32 %v133_v35, %v32_v15  ;;  %v81_v43 = vadd.f32 %v110_v39, %v70_v37 }
 0x138   :  { %v61_v40 = vmul.f32 %v135_v36, %v33_v9 }
 0x139   :  { %v71_v41 = vmul.f32 %v109_v34, %v60_v38 }
 0x13a   :  { %v137_v42 = vpop.eup %136  ;;  %v72_v45 = vmul.f32 %v109_v34, %v61_v40 }
 0x13b   :  { %v82_v44 = vadd.f32 %v110_v39, %v71_v41  ;;  %v62_v46 = vmul.f32 %v137_v42, %v34_v16 }
 0x13c   :  { %v83_v49 = vadd.f32 %v110_v39, %v72_v45 }
 0x13d   :  { %v122_v47 = vpack.c.bf16 %v82_v44, %v81_v43  ;;  %v73_v48 = vmul.f32 %v109_v34, %v62_v46 }
 0x13f   :  { %123 = vst [vmem:[%s185_s3] sm:$0xff] %v122_v47   ;;  %v84_v50 = vadd.f32 %v110_v39, %v73_v48 }
 0x141   :  { %v127_v51 = vpack.c.bf16 %v84_v50, %v83_v49 }
 0x143   :  { %129 = vst [vmem:[%s185_s3 + $0x8] sm:$0xff] %v127_v51  }

// kernel: transformer_forward.23
= control target key start
LH: loop header
LB: loop body
LE: loop exit
PB: predicated region body
PF: predicated region fallthrough
CT: control target
= control target key end

     0   :  { %s464_s0 = inlined_call_operand.vmem [shape: bf16[32,128], index: 0, kind: input, shape index: {}]   ;;  %s465_s1 = inlined_call_operand.vmem [shape: bf16[256,128], index: 1, kind: input, shape index: {}]   ;;  %s466_s2 = inlined_call_operand.hbm [shape: f32[32,256], index: 2, kind: output, shape index: {}]  }
   0x1   :  { %v338_v0 = vld [vmem:[%s465_s1 + $0x40] sm:$0xff]   ;;  %v340_v2 = vld [vmem:[%s465_s1 + $0x48] sm:$0xff]   ;;  %v342_v4 = vld [vmem:[%s465_s1 + $0x50] sm:$0xff]  }
   0x2   :  { %v339_v1 = vld [vmem:[%s465_s1] sm:$0xff]   ;;  %299 = vmatprep.subr.bf16.mxu0 %v338_v0  ;;  %319 = vmatprep.subr.bf16.mxu1 %v338_v0  ;;  %v341_v3 = vld [vmem:[%s465_s1 + $0x8] sm:$0xff]   ;;  %v343_v5 = vld [vmem:[%s465_s1 + $0x10] sm:$0xff]  }
   0x3   :  { %300 = vmatpush3.bf16.xpose.msra.mxu0 %v339_v1  ;;  %327 = vmatpush3.bf16.xpose.msra.mxu1 %v339_v1  ;;  %v344_v6 = vld [vmem:[%s465_s1 + $0x58] sm:$0xff]   ;;  %v354_v7 = vld [vmem:[%s464_s0] sm:$0xff]   ;;  %v355_v8 = vld [vmem:[%s464_s0 + $0x8] sm:$0xff]  }
   0x4   :  { %301 = vmatprep.subr.bf16.mxu0 %v340_v2  ;;  %320 = vmatprep.subr.bf16.mxu1 %v340_v2 }
   0x5   :  { %315 = vmatprep.mubr.bf16.mxu0 %v354_v7 }
   0xb   :  { %302 = vmatpush3.bf16.xpose.msra.mxu0 %v341_v3  ;;  %328 = vmatpush3.bf16.xpose.msra.mxu1 %v341_v3 }
   0xc   :  { %303 = vmatprep.subr.bf16.mxu0 %v342_v4  ;;  %321 = vmatprep.subr.bf16.mxu1 %v342_v4 }
   0xd   :  { %7 = vsyncpa [#allocation4], 0  ;;  %317 = vmatprep.mubr.bf16.mxu1 %v355_v8  ;;  %v345_v9 = vld [vmem:[%s465_s1 + $0x18] sm:$0xff]   ;;  %v346_v10 = vld [vmem:[%s465_s1 + $0x60] sm:$0xff]   ;;  %s380_s16 = smov [#allocation3]  }
   0xe   :  { %v347_v11 = vld [vmem:[%s465_s1 + $0x20] sm:$0xff]   ;;  %v348_v12 = vld [vmem:[%s465_s1 + $0x68] sm:$0xff]   ;;  %v350_v14 = vld [vmem:[%s465_s1 + $0x70] sm:$0xff]   ;;  %s270_s17 = sshll.u32 %s380_s16, 4  ;;  %s271_s17 = int_to_ptr.vmem [resolvable:$true] %s270_s17 }
   0xf   :  { %v349_v13 = vld [vmem:[%s465_s1 + $0x28] sm:$0xff]   ;;  %v351_v15 = vld [vmem:[%s465_s1 + $0x30] sm:$0xff]   ;;  %v352_v16 = vld [vmem:[%s465_s1 + $0x78] sm:$0xff]   ;;  %p361_p1 = scmp.lt.s32.totalorder %s271_s17, %s271_s17 }
  0x10   :  { %v353_v17 = vld [vmem:[%s465_s1 + $0x38] sm:$0xff]   ;;  %s356_s1 = scalar_lea.vmem %s271_s17, 1024 }
  0x11   :  { %p357_p0 = scmp.ne.s32.totalorder %s271_s17, %s356_s1  ;;  %p362_p2 = scmp.lt.s32.totalorder %s356_s1, %s356_s1 }
  0x13   :  { %304 = vmatpush3.bf16.xpose.msra.mxu0 %v343_v5  ;;  %329 = vmatpush3.bf16.xpose.msra.mxu1 %v343_v5  ;;  %p363_p3 = por %p362_p2, %p361_p1 }
  0x14   :  { %305 = vmatprep.subr.bf16.mxu0 %v344_v6  ;;  %322 = vmatprep.subr.bf16.mxu1 %v344_v6 }
  0x15   :  { %p364_p4 = pnand %p363_p3, %p357_p0 }
  0x1b   :  { %306 = vmatpush3.bf16.xpose.msra.mxu0 %v345_v9  ;;  %330 = vmatpush3.bf16.xpose.msra.mxu1 %v345_v9 }
  0x1c   :  { %307 = vmatprep.subr.bf16.mxu0 %v346_v10  ;;  %323 = vmatprep.subr.bf16.mxu1 %v346_v10 }
  0x23   :  { %308 = vmatpush3.bf16.xpose.msra.mxu0 %v347_v11  ;;  %331 = vmatpush3.bf16.xpose.msra.mxu1 %v347_v11 }
  0x24   :  { %309 = vmatprep.subr.bf16.mxu0 %v348_v12  ;;  %324 = vmatprep.subr.bf16.mxu1 %v348_v12 }
  0x2b   :  { %310 = vmatpush3.bf16.xpose.msra.mxu0 %v349_v13  ;;  %332 = vmatpush3.bf16.xpose.msra.mxu1 %v349_v13 }
  0x2c   :  { %311 = vmatprep.subr.bf16.mxu0 %v350_v14  ;;  %325 = vmatprep.subr.bf16.mxu1 %v350_v14 }
  0x33   :  { %312 = vmatpush3.bf16.xpose.msra.mxu0 %v351_v15  ;;  %333 = vmatpush3.bf16.xpose.msra.mxu1 %v351_v15 }
  0x34   :  { %313 = vmatprep.subr.bf16.mxu0 %v352_v16  ;;  %326 = vmatprep.subr.bf16.mxu1 %v352_v16 }
  0x3b   :  { %314 = vmatpush3.bf16.xpose.msra.mxu0 %v353_v17  ;;  %334 = vmatpush3.bf16.xpose.msra.mxu1 %v353_v17 }
  0x42   :  { %316 = vmatmul.mubr.bf16.vlgmr.msra.gmra.mrb[0].mxu0 %v354_v7  ;;  %318 = vmatmul.mubr.bf16.vlgmr.msra.gmra.mrb[0].mxu1 %v355_v8 }
 0x115   :  { %v211_v18 = vpop.f32.mrb[0].mxu0  ;;  %v221_v19 = vpop.f32.mrb[0].mxu1 }
 0x116   :  { %257 = vst [vmem:[#allocation3] sm:$0xff] %v211_v18  ;;  %261 = vst [vmem:[#allocation3 + $0x20] sm:$0xff] %v221_v19  ;;  %v213_v20 = vpop.f32.mrb[1].mxu0  ;;  %v223_v21 = vpop.f32.mrb[1].mxu1 }
 0x117   :  { %258 = vst [vmem:[#allocation3 + $0x8] sm:$0xff] %v213_v20  ;;  %262 = vst [vmem:[#allocation3 + $0x28] sm:$0xff] %v223_v21  ;;  %v215_v22 = vpop.f32.mrb[2].mxu0  ;;  %v225_v23 = vpop.f32.mrb[2].mxu1 }
 0x118   :  { %259 = vst [vmem:[#allocation3 + $0x10] sm:$0xff] %v215_v22  ;;  %263 = vst [vmem:[#allocation3 + $0x30] sm:$0xff] %v225_v23  ;;  %v217_v24 = vpop.f32.mrb[3].mxu0  ;;  %v227_v25 = vpop.f32.mrb[3].mxu1 }
 0x119   :  { %260 = vst [vmem:[#allocation3 + $0x18] sm:$0xff] %v217_v24  ;;  %264 = vst [vmem:[#allocation3 + $0x38] sm:$0xff] %v227_v25 }
 0x11a   :  { %367 = shalt.err (!%p364_p4)
}
 0x11b   :  { %s368_s20 = scalar_lea.hbm %s466_s2, 1024 }
 0x11c   :  { %p369_p5 = scmp.ne.s32.totalorder %s466_s2, %s368_s20  ;;  %p372_p6 = scmp.lt.u32.totalorder %s368_s20, %s466_s2 }
 0x11e   :  { %p374_p7 = pnand %p372_p6, %p369_p5 }
 0x120   :  { %377 = shalt.err (!%p374_p7)
}
 0x121   :  { %s381_s25 = smov 256   ;;  %s382_s26 = smov 16  }
 0x122   :  { %276 = dma.vmem_to_hbm [thread:$0]  %s271_s17, 1024, %s466_s2, [#allocation4], %s381_s25, %s381_s25, %s382_s26  }
 0x123   :  { %378 = dma.done.wait [#allocation4], 1024  }
 0x124   :  { %379 = vsyncadd [#allocation4], 4294966272 }
 0x125   :  { %280 = vsyncpa [#allocation4], 1 }

</bundles_post_ra>
